<compile_context>
chip_gen: v7x
topology: tpu7x:2x2x1
jax: 0.10.0
libtpu: 0.0.40
codegen_flags: <defaults>
</compile_context>

<pallas_src>
import numpy as np
import jax
import jax.numpy as jnp
from jax import lax
from jax.experimental import pallas as pl
from jax.experimental.pallas import tpu as pltpu

IMAGE_DIM = 1024      # `image_dim` in the reference
BACKBONE_CH = 2304    # EfficientNet-B6 conv_head output channels
POOL_OUT = 7          # AdaptiveAvgPool2d(output_size=[7, 7])
POOL_Q = POOL_OUT * POOL_OUT

TC = 768              # channel tile: divides 2304, multiple of 128, 3 steps/image
KT = BACKBONE_CH // TC


def _adaptive_pool_matrix(hf, wf, out_h, out_w):
    """Exact nn.AdaptiveAvgPool2d bin weights as a (out_h*out_w, hf*wf) matrix."""
    P = np.zeros((out_h * out_w, hf * wf), np.float32)
    for p in range(out_h):
        h0 = (p * hf) // out_h
        h1 = -((-(p + 1) * hf) // out_h)          # ceil
        for q in range(out_w):
            w0 = (q * wf) // out_w
            w1 = -((-(q + 1) * wf) // out_w)      # ceil
            val = 1.0 / ((h1 - h0) * (w1 - w0))
            for h in range(h0, h1):
                for w in range(w0, w1):
                    P[p * out_w + q, h * wf + w] = val
    return P


def prepare_conv_weight(conv_weight):
    """Hoisted out of the jitted forward (perf review): run ONCE at model load.

    conv_weight: (1024, 2304, 1, 1) f32 margin_cov weight (no bias)
    returns:     (KT, TC, 1024) bf16  -- K-split, (K, N)-oriented, MXU-ready.
    """
    n, c = conv_weight.shape[:2]
    assert n == IMAGE_DIM and c == BACKBONE_CH
    w_kn = jnp.transpose(conv_weight.reshape(n, c)).astype(jnp.bfloat16)   # (C, N)
    return w_kn.reshape(KT, TC, IMAGE_DIM)


def _fused_pool_conv_kernel(x_ref, p_ref, w_ref, o_ref):
    """One (image, channel-tile) grid step: adaptive pool then partial 1x1 conv.

    x_ref: (TC, HW)        f32  -- channel tile of one image, native NCHW layout
    p_ref: (49, HW)        f32  -- exact adaptive-pool bin weights (resident)
    w_ref: (KT, TC, 1024)  bf16 -- full conv weight, resident in VMEM
    o_ref: (49, 1024)      f32  -- per-image output block (resident across k)
    """
    k = pl.program_id(1)

    # Adaptive average pool of this channel tile, f32 (exact bin weights):
    #   (49, HW) . (TC, HW)^T -> (49, TC).  NT-style contraction keeps the 49
    #   rows as the streamed MXU operand and needs no relayout of X.
    pooled = lax.dot_general(
        p_ref[...], x_ref[...],
        dimension_numbers=(((1,), (1,)), ((), ())),
        preferred_element_type=jnp.float32)

    # Partial 1x1 conv for these TC channels: (49, TC) @ (TC, 1024), bf16 MXU
    # with f32 accumulation, accumulated into the resident lane-dense out block.
    part = jnp.dot(pooled.astype(jnp.bfloat16), w_ref[k],
                   preferred_element_type=jnp.float32)

    @pl.when(k == 0)
    def _init():
        o_ref[...] = part

    @pl.when(k > 0)
    def _accumulate():
        o_ref[...] += part


@jax.jit
def encoder_forward(features_nchw, w_prepped):
    """features_nchw: (B, 2304, Hf, Wf) f32 -- output of the EfficientNet backbone.
       w_prepped:     (KT, TC, 1024) bf16   -- prepare_conv_weight(margin_cov.weight)
       returns:       (B, 1024, 7, 7) f32   == downsample(margin_cov(features)).
    """
    B, C, Hf, Wf = features_nchw.shape
    assert C == BACKBONE_CH and C % TC == 0
    assert w_prepped.shape == (KT, TC, IMAGE_DIM)
    HW = Hf * Wf
    Q = POOL_Q
    N = IMAGE_DIM

    x3 = features_nchw.reshape(B, C, HW)                    # free: contiguous NCHW
    pmat = jnp.asarray(
        _adaptive_pool_matrix(Hf, Wf, POOL_OUT, POOL_OUT))  # (49, HW) f32, constant

    cost = pl.CostEstimate(
        flops=2 * B * C * HW * Q + 2 * B * Q * C * N,
        transcendentals=0,
        bytes_accessed=B * C * HW * 4 + C * N * 2 + Q * HW * 4 + B * Q * N * 4)

    out_qn = pl.pallas_call(
        _fused_pool_conv_kernel,
        out_shape=jax.ShapeDtypeStruct((B, Q, N), jnp.float32),
        grid_spec=pltpu.PrefetchScalarGridSpec(
            num_scalar_prefetch=0,
            grid=(B, KT),                                           # reduction last
            in_specs=[
                pl.BlockSpec((None, TC, HW), lambda b, k: (b, k, 0)),   # X tile
                pl.BlockSpec((Q, HW), lambda b, k: (0, 0)),             # pool matrix
                pl.BlockSpec((KT, TC, N), lambda b, k: (0, 0, 0)),      # resident W
            ],
            out_specs=pl.BlockSpec((None, Q, N), lambda b, k: (b, 0, 0)),
        ),
        compiler_params=pltpu.CompilerParams(
            # Batch axis feeds both v7x TensorCores; channel axis is a reduction.
            dimension_semantics=("parallel", "arbitrary"),
            # ~12 MB actually used (resident weight + double-buffered X tiles);
            # 48 MiB stays below physical VMEM on v5e/v6e (128 MiB) and v7x (64 MiB).
            vmem_limit_bytes=48 * 1024 * 1024),
        cost_estimate=cost,
    )(x3, pmat, w_prepped)

    # Tiny (B*49*1024) relayout to NCHW to match the PyTorch module's output.
    return jnp.transpose(out_qn, (0, 2, 1)).reshape(B, N, POOL_OUT, POOL_OUT)


def encoder_reference(features_nchw, conv_weight):
    """Plain-JAX f32 reference (conv then pool) for Hf, Wf divisible by 7."""
    B, C, Hf, Wf = features_nchw.shape
    y = jnp.einsum("bchw,oc->bohw", features_nchw,
                   conv_weight.reshape(IMAGE_DIM, C),
                   precision=lax.Precision.HIGHEST)
    y = y.reshape(B, IMAGE_DIM, POOL_OUT, Hf // POOL_OUT, POOL_OUT, Wf // POOL_OUT)
    return y.mean(axis=(3, 5))


def encoder_reference_general(features_nchw, conv_weight):
    """Plain-JAX f32 reference for arbitrary Hf, Wf (overlapping adaptive bins)."""
    B, C, Hf, Wf = features_nchw.shape
    pm = jnp.asarray(_adaptive_pool_matrix(Hf, Wf, POOL_OUT, POOL_OUT))   # (49, HW)
    y = jnp.einsum("bchw,oc->bohw", features_nchw,
                   conv_weight.reshape(IMAGE_DIM, C),
                   precision=lax.Precision.HIGHEST)
    y = jnp.einsum("bcs,qs->bcq", y.reshape(B, IMAGE_DIM, Hf * Wf), pm,
                   precision=lax.Precision.HIGHEST)
    return y.reshape(B, IMAGE_DIM, POOL_OUT, POOL_OUT)


if __name__ == "__main__":
    key = jax.random.PRNGKey(0)
    k1, k2 = jax.random.split(key)

    # Small backbone feature map consistent with the module's fixed channel dims.
    B, Hf, Wf = 2, 14, 14
    features = jax.random.normal(k1, (B, BACKBONE_CH, Hf, Wf), jnp.float32)
    # Deterministic margin_cov weight: Conv2d(2304, 1024, kernel_size=1, bias=False)
    conv_w = 0.02 * jax.random.normal(k2, (IMAGE_DIM, BACKBONE_CH, 1, 1), jnp.float32)

    # Weight relayout/cast happens once at "model load", outside the jitted forward.
    w_prepped = jax.block_until_ready(prepare_conv_weight(conv_w))

    out = jax.block_until_ready(encoder_forward(features, w_prepped))
    assert out.shape == (B, IMAGE_DIM, POOL_OUT, POOL_OUT), out.shape
    ref = jax.block_until_ready(encoder_reference(features, conv_w))
    # f32 pooling + bf16 MXU conv with f32 accumulation -> slightly relaxed tol.
    np.testing.assert_allclose(np.asarray(out), np.asarray(ref), rtol=2e-2, atol=2e-2)

    # Non-divisible spatial size (realistic B6 17x17 features, overlapping bins)
    # also exercises the B=1 path.
    B2, Hf2, Wf2 = 1, 17, 17
    features2 = jax.random.normal(k1, (B2, BACKBONE_CH, Hf2, Wf2), jnp.float32)
    out2 = jax.block_until_ready(encoder_forward(features2, w_prepped))
    ref2 = jax.block_until_ready(encoder_reference_general(features2, conv_w))
    np.testing.assert_allclose(np.asarray(out2), np.asarray(ref2), rtol=2e-2, atol=2e-2)

    print("KERNEL_OK")
</pallas_src>

<mosaic_0001>
module attributes {stable_mosaic.version = 11 : i64} {
  func.func @_fused_pool_conv_kernel(%arg0: i32, %arg1: i32, %arg2: memref<1x768x196xf32, #tpu.memory_space<vmem>>, %arg3: memref<49x196xf32, #tpu.memory_space<vmem>>, %arg4: memref<3x768x1024xbf16, #tpu.memory_space<vmem>>, %arg5: memref<1x49x1024xf32, #tpu.memory_space<vmem>>) attributes {dimension_semantics = [#tpu.dimension_semantics<parallel>, #tpu.dimension_semantics<arbitrary>], iteration_bounds = array<i64: 2, 3>, scalar_prefetch = 0 : i64, scratch_operands = 0 : i64, tpu.core_type = #tpu.core_type<tc>, window_params = [{transform_indices = @transform_0, window_bounds = array<i64: 1, 768, 196>}, {pipeline_mode = #tpu.pipeline_mode<synchronous>, transform_indices = @transform_1, window_bounds = array<i64: 49, 196>}, {pipeline_mode = #tpu.pipeline_mode<synchronous>, transform_indices = @transform_2, window_bounds = array<i64: 3, 768, 1024>}, {transform_indices = @transform_3, window_bounds = array<i64: 1, 49, 1024>}]} {
    %c0 = arith.constant 0 : index
    %c0_0 = arith.constant 0 : index
    %0 = vector.load %arg3[%c0, %c0_0] : memref<49x196xf32, #tpu.memory_space<vmem>>, vector<49x196xf32>
    %c0_1 = arith.constant 0 : index
    %c0_2 = arith.constant 0 : index
    %c0_3 = arith.constant 0 : index
    %1 = vector.load %arg2[%c0_1, %c0_2, %c0_3] : memref<1x768x196xf32, #tpu.memory_space<vmem>>, vector<1x768x196xf32>
    %2 = vector.shape_cast %1 : vector<1x768x196xf32> to vector<768x196xf32>
    %cst = arith.constant dense<0.000000e+00> : vector<49x768xf32>
    %3 = tpu.matmul %0, %2, %cst {dimension_numbers = #tpu.dot_dimension_numbers<[1], [1], [0], [0], [0, 0, 1, 0], [], []>} : vector<49x196xf32>, vector<768x196xf32>, vector<49x768xf32> -> vector<49x768xf32>
    %4 = arith.truncf %3 : vector<49x768xf32> to vector<49x768xbf16>
    %5 = arith.index_cast %arg1 : i32 to index
    %c0_4 = arith.constant 0 : index
    %c0_5 = arith.constant 0 : index
    %6 = vector.load %arg4[%5, %c0_4, %c0_5] : memref<3x768x1024xbf16, #tpu.memory_space<vmem>>, vector<1x768x1024xbf16>
    %7 = vector.shape_cast %6 : vector<1x768x1024xbf16> to vector<768x1024xbf16>
    %cst_6 = arith.constant dense<0.000000e+00> : vector<49x1024xf32>
    %8 = tpu.matmul %4, %7, %cst_6 {dimension_numbers = #tpu.dot_dimension_numbers<[1], [0], [0], [1], [0, 0, 1, 1], [], []>} : vector<49x768xbf16>, vector<768x1024xbf16>, vector<49x1024xf32> -> vector<49x1024xf32>
    %c0_i32 = arith.constant 0 : i32
    %9 = arith.cmpi eq, %arg1, %c0_i32 : i32
    %10 = arith.extui %9 : i1 to i32
    %c0_i32_7 = arith.constant 0 : i32
    %11 = arith.cmpi ne, %10, %c0_i32_7 : i32
    scf.if %11 {
      %c0_10 = arith.constant 0 : index
      %c0_11 = arith.constant 0 : index
      %c0_12 = arith.constant 0 : index
      %15 = vector.load %arg5[%c0_10, %c0_11, %c0_12] : memref<1x49x1024xf32, #tpu.memory_space<vmem>>, vector<1x49x1024xf32>
      %16 = vector.shape_cast %15 : vector<1x49x1024xf32> to vector<49x1024xf32>
      %17 = vector.shape_cast %8 : vector<49x1024xf32> to vector<1x49x1024xf32>
      tpu.vector_store %arg5[%c0_10, %c0_11, %c0_12], %17 {strides = array<i32>} : memref<1x49x1024xf32, #tpu.memory_space<vmem>>, vector<1x49x1024xf32>,
    } else {
    }
    %c0_i32_8 = arith.constant 0 : i32
    %12 = arith.cmpi sgt, %arg1, %c0_i32_8 : i32
    %13 = arith.extui %12 : i1 to i32
    %c0_i32_9 = arith.constant 0 : i32
    %14 = arith.cmpi ne, %13, %c0_i32_9 : i32
    scf.if %14 {
      %c0_10 = arith.constant 0 : index
      %c0_11 = arith.constant 0 : index
      %c0_12 = arith.constant 0 : index
      %15 = vector.load %arg5[%c0_10, %c0_11, %c0_12] : memref<1x49x1024xf32, #tpu.memory_space<vmem>>, vector<1x49x1024xf32>
      %16 = vector.shape_cast %15 : vector<1x49x1024xf32> to vector<49x1024xf32>
      %17 = arith.addf %16, %8 : vector<49x1024xf32>
      %c0_13 = arith.constant 0 : index
      %c0_14 = arith.constant 0 : index
      %c0_15 = arith.constant 0 : index
      %18 = vector.load %arg5[%c0_13, %c0_14, %c0_15] : memref<1x49x1024xf32, #tpu.memory_space<vmem>>, vector<1x49x1024xf32>
      %19 = vector.shape_cast %18 : vector<1x49x1024xf32> to vector<49x1024xf32>
      %20 = vector.shape_cast %17 : vector<49x1024xf32> to vector<1x49x1024xf32>
      tpu.vector_store %arg5[%c0_13, %c0_14, %c0_15], %20 {strides = array<i32>} : memref<1x49x1024xf32, #tpu.memory_space<vmem>>, vector<1x49x1024xf32>,
    } else {
    }
    return
  }
  func.func @transform_0(%arg0: i32, %arg1: i32) -> (i32, i32, i32) {
    %c0_i32 = arith.constant 0 : i32
    %c0_i32_0 = arith.constant 0 : i32
    return %arg0, %arg1, %c0_i32 : i32, i32, i32
  }
  func.func @transform_1(%arg0: i32, %arg1: i32) -> (i32, i32) {
    %c0_i32 = arith.constant 0 : i32
    %c0_i32_0 = arith.constant 0 : i32
    %c0_i32_1 = arith.constant 0 : i32
    return %c0_i32, %c0_i32_0 : i32, i32
  }
  func.func @transform_2(%arg0: i32, %arg1: i32) -> (i32, i32, i32) {
    %c0_i32 = arith.constant 0 : i32
    %c0_i32_0 = arith.constant 0 : i32
    %c0_i32_1 = arith.constant 0 : i32
    %c0_i32_2 = arith.constant 0 : i32
    return %c0_i32, %c0_i32_0, %c0_i32_1 : i32, i32, i32
  }
  func.func @transform_3(%arg0: i32, %arg1: i32) -> (i32, i32, i32) {
    %c0_i32 = arith.constant 0 : i32
    %c0_i32_0 = arith.constant 0 : i32
    %c0_i32_1 = arith.constant 0 : i32
    return %arg0, %c0_i32, %c0_i32_0 : i32, i32, i32
  }
}

</mosaic_0001>

<bundles_post_ra>
// kernel: encoder_forward.1
= control target key start
LH: loop header
LB: loop body
LE: loop exit
PB: predicated region body
PF: predicated region fallthrough
CT: control target
= control target key end

     0   :  { %s5514_s12 = smov 0   ;;  %s5516_s13 = smov 0   ;;  %s6993_s0 = inlined_call_operand.vmem [shape: f32[2,2304,196], index: 0, kind: input, shape index: {}]   ;;  %s6994_s1 = inlined_call_operand.vmem [shape: f32[49,196], index: 1, kind: input, shape index: {}]   ;;  %s6995_s2 = inlined_call_operand.vmem [shape: bf16[3,768,1024], index: 2, kind: input, shape index: {}]   ;;  %s6996_s3 = inlined_call_operand.vmem [shape: f32[2,49,1024], index: 3, kind: output, shape index: {}]  }
   0x1   :  { %s5518_s14 = smov 0   ;;  %s5520_s15 = smov 0  }
   0x2   :  { %s5522_s16 = smov 0  }
   0x3 LB: > { %s22_s17 = sadd.s32 1, %s5484_s14  ;;  %s25_s18 = sadd.s32 1, %s5488_s15  ;;  %s5492_s16 = sphi %s5522_s16, %s13_s16   ;;  %s5488_s15 = sphi %s5520_s15, %s7014_s15   ;;  %s5484_s14 = sphi %s5518_s14, %s7013_s14   ;;  %s5480_s13 = sphi %s5516_s13, %s7012_s13   ;;  %s5476_s12 = sphi %s5514_s12, %s7011_s12  }
   0x4   : > { %p23_p0 = scmp.ge.s32.totalorder %s22_s17, 3  ;;  %p4535_p1 = scmp.ge.s32.totalorder %s5492_s16, 1 }
   0x5   : > { %p157_p2 = scmp.lt.s32.totalorder %s5492_s16, 7 }
   0x6   : > { %s7016_s17 = smov (%p23_p0, %s22_s17), 0  ;;  %s7018_s18 = smov (!%p23_p0, %s25_s18), %s5488_s15 }
   0x7   : > { %p158_p3 = pnand %p4535_p1, %p157_p2  ;;  %p27_p4 = scmp.ge.s32.totalorder %s7018_s18, 2 }
   0x9   : > { %s7020_s18 = smov (%p27_p4, %s7018_s18), 0  ;;  %161 = sbr.rel (%p158_p3) target bundleno = 1034 (0x40a), region = 32 }
  0x10   : > { %s186_s19 = smul.u32 96, %s5476_s12  ;;  %p187_p5 = scmp.lt.s32.totalorder %s5480_s13, 1  ;;  %vm408_vm0 = vcmask 556032   ;;  %v5550_v0 = vld [vmem:[%s6994_s1 + $0x8] sm:$0xff] }
  0x11   : > { %4571 = vmatprep.mubr.msk.f32.mxu0 %vm408_vm0, %v5550_v0  ;;  %4610 = vmatprep.mubr.msk.f32.mxu1 %vm408_vm0, %v5550_v0  ;;  %vm5568_vm1 = vmpackc.low %vm408_vm0, %vm408_vm0  ;;  %p5041_p7 = scmp.ne.s32.totalorder %s5476_s12, 0 }
  0x12   : > { %s7022_s13 = smov (!%p187_p5, %s5480_s13), 1  ;;  %p189_p6 = scmp.lt.s32.totalorder %s186_s19, 287 }
  0x13   : > { %s5412_s20 = smul.u32 576, %s7022_s13 }
  0x14   : > { %s7024_s19 = smov (!%p189_p6, %s186_s19), 287  ;;  %s5413_s21 = smul.u32 448, %s7022_s13 }
  0x15   : > { %s4536_s22 = sshll.u32 %s7024_s19, 1  ;;  %s5045_s19 = smul.u32 3072, %s5476_s12 }
  0x16   : > { %s193_s25 = sadd.s32 %s5412_s20, %s4536_s22  ;;  %s5555_s28 = scalar_lea.vmem %s6996_s3, %s5413_s21 }
  0x17   : > { %s4537_s29 = sshll.u32 %s193_s25, 3  ;;  %s5887_s22 = scalar_lea.vmem %s6995_s2, %s5045_s19 }
  0x18   : > { %s5564_s5 = scalar_lea.vmem %s6993_s0, %s4537_s29 }
  0x19   : > { %v217_v2 = vld [vmem:[%s5564_s5 + $0x8] sm:$0xff]  ;;  %v219_v3 = vld [vmem:[%s5564_s5 + $0x18] sm:$0xff]  ;;  %v216_v4 = vld [vmem:[%s5564_s5] sm:$0xff] }
  0x1a   : > { %v5046_v5 = vpack.c.bf16 %v219_v3, %v217_v2  ;;  %v218_v6 = vld [vmem:[%s5564_s5 + $0x10] sm:$0xff]  ;;  %v221_v7 = vld [vmem:[%s5564_s5 + $0x28] sm:$0xff]  ;;  %v223_v8 = vld [vmem:[%s5564_s5 + $0x38] sm:$0xff] }
  0x1b   : > { %v5049_v9 = vpack.c.bf16 %v218_v6, %v216_v4  ;;  %v5051_v10 = vpack.c.bf16 %v223_v8, %v221_v7  ;;  %v220_v11 = vld [vmem:[%s5564_s5 + $0x20] sm:$0xff]  ;;  %v222_v12 = vld [vmem:[%s5564_s5 + $0x30] sm:$0xff]  ;;  %v225_v13 = vld [vmem:[%s5564_s5 + $0x48] sm:$0xff] }
  0x1c   : > { %5048 = vmatprep.subr.msk.bf16.mxu0 %vm5568_vm1, %v5046_v5  ;;  %v227_v14 = vld [vmem:[%s5564_s5 + $0x58] sm:$0xff]  ;;  %v5054_v15 = vpack.c.bf16 %v222_v12, %v220_v11  ;;  %v281_v17 = vld [vmem:[%s5564_s5 + $0x208] sm:$0xff]  ;;  %v280_v19 = vld [vmem:[%s5564_s5 + $0x200] sm:$0xff] }
  0x1d   : > { %5050 = vmatpush1.bf16.xpose.msra.mxu0 %v5049_v9  ;;  %v5056_v16 = vpack.c.bf16 %v227_v14, %v225_v13  ;;  %v283_v18 = vld [vmem:[%s5564_s5 + $0x218] sm:$0xff]  ;;  %v282_v20 = vld [vmem:[%s5564_s5 + $0x210] sm:$0xff]  ;;  %v224_v21 = vld [vmem:[%s5564_s5 + $0x40] sm:$0xff] }
  0x1e   : > { %5053 = vmatprep.subr.msk.bf16.mxu0 %vm5568_vm1, %v5051_v10  ;;  %v5126_v22 = vpack.c.bf16 %v283_v18, %v281_v17  ;;  %v5129_v23 = vpack.c.bf16 %v282_v20, %v280_v19  ;;  %v226_v24 = vld [vmem:[%s5564_s5 + $0x50] sm:$0xff]  ;;  %v285_v25 = vld [vmem:[%s5564_s5 + $0x228] sm:$0xff]  ;;  %v287_v26 = vld [vmem:[%s5564_s5 + $0x238] sm:$0xff] }
  0x1f   : > { %v229_v27 = vld [vmem:[%s5564_s5 + $0x68] sm:$0xff]  ;;  %v231_v28 = vld [vmem:[%s5564_s5 + $0x78] sm:$0xff]  ;;  %v5131_v29 = vpack.c.bf16 %v287_v26, %v285_v25  ;;  %v5059_v30 = vpack.c.bf16 %v226_v24, %v224_v21  ;;  %v284_v31 = vld [vmem:[%s5564_s5 + $0x220] sm:$0xff] }
  0x20   : > { %5128 = vmatprep.subr.msk.bf16.mxu1 %vm5568_vm1, %v5126_v22  ;;  %v286_v32 = vld [vmem:[%s5564_s5 + $0x230] sm:$0xff]  ;;  %v5061_v33 = vpack.c.bf16 %v231_v28, %v229_v27  ;;  %v289_v34 = vld [vmem:[%s5564_s5 + $0x248] sm:$0xff]  ;;  %v291_v35 = vld [vmem:[%s5564_s5 + $0x258] sm:$0xff] }
  0x21   : > { %5130 = vmatpush1.bf16.xpose.msra.mxu1 %v5129_v23  ;;  %v5134_v36 = vpack.c.bf16 %v286_v32, %v284_v31  ;;  %v5136_v37 = vpack.c.bf16 %v291_v35, %v289_v34  ;;  %v228_v38 = vld [vmem:[%s5564_s5 + $0x60] sm:$0xff]  ;;  %v230_v39 = vld [vmem:[%s5564_s5 + $0x70] sm:$0xff]  ;;  %v233_v40 = vld [vmem:[%s5564_s5 + $0x88] sm:$0xff] }
  0x22   : > { %5133 = vmatprep.subr.msk.bf16.mxu1 %vm5568_vm1, %v5131_v29  ;;  %v235_v41 = vld [vmem:[%s5564_s5 + $0x98] sm:$0xff]  ;;  %v5064_v42 = vpack.c.bf16 %v230_v39, %v228_v38  ;;  %v288_v43 = vld [vmem:[%s5564_s5 + $0x240] sm:$0xff]  ;;  %v290_v44 = vld [vmem:[%s5564_s5 + $0x250] sm:$0xff] }
  0x23   : > { %v5066_v45 = vpack.c.bf16 %v235_v41, %v233_v40  ;;  %v293_v46 = vld [vmem:[%s5564_s5 + $0x268] sm:$0xff]  ;;  %v295_v47 = vld [vmem:[%s5564_s5 + $0x278] sm:$0xff]  ;;  %v5139_v48 = vpack.c.bf16 %v290_v44, %v288_v43  ;;  %v232_v50 = vld [vmem:[%s5564_s5 + $0x80] sm:$0xff] }
  0x24   : > { %v5141_v49 = vpack.c.bf16 %v295_v47, %v293_v46  ;;  %v234_v51 = vld [vmem:[%s5564_s5 + $0x90] sm:$0xff]  ;;  %v237_v52 = vld [vmem:[%s5564_s5 + $0xa8] sm:$0xff]  ;;  %v239_v53 = vld [vmem:[%s5564_s5 + $0xb8] sm:$0xff] }
  0x25   : > { %5055 = vmatpush1.bf16.xpose.msra.mxu0 %v5054_v15  ;;  %v5069_v54 = vpack.c.bf16 %v234_v51, %v232_v50  ;;  %v292_v55 = vld [vmem:[%s5564_s5 + $0x260] sm:$0xff]  ;;  %v294_v56 = vld [vmem:[%s5564_s5 + $0x270] sm:$0xff]  ;;  %v5071_v57 = vpack.c.bf16 %v239_v53, %v237_v52  ;;  %v297_v58 = vld [vmem:[%s5564_s5 + $0x288] sm:$0xff] }
  0x26   : > { %5058 = vmatprep.subr.msk.bf16.mxu0 %vm5568_vm1, %v5056_v16  ;;  %v299_v59 = vld [vmem:[%s5564_s5 + $0x298] sm:$0xff]  ;;  %v5144_v60 = vpack.c.bf16 %v294_v56, %v292_v55  ;;  %v236_v62 = vld [vmem:[%s5564_s5 + $0xa0] sm:$0xff]  ;;  %v238_v63 = vld [vmem:[%s5564_s5 + $0xb0] sm:$0xff] }
  0x27   : > { %v5146_v61 = vpack.c.bf16 %v299_v59, %v297_v58  ;;  %v241_v2 = vld [vmem:[%s5564_s5 + $0xc8] sm:$0xff]  ;;  %v243_v3 = vld [vmem:[%s5564_s5 + $0xd8] sm:$0xff]  ;;  %v5074_v4 = vpack.c.bf16 %v238_v63, %v236_v62  ;;  %v296_v5 = vld [vmem:[%s5564_s5 + $0x280] sm:$0xff] }
  0x28   : > { %v298_v6 = vld [vmem:[%s5564_s5 + $0x290] sm:$0xff]  ;;  %v5076_v7 = vpack.c.bf16 %v243_v3, %v241_v2  ;;  %v301_v8 = vld [vmem:[%s5564_s5 + $0x2a8] sm:$0xff]  ;;  %v303_v9 = vld [vmem:[%s5564_s5 + $0x2b8] sm:$0xff] }
  0x29   : > { %5135 = vmatpush1.bf16.xpose.msra.mxu1 %v5134_v36  ;;  %v5149_v10 = vpack.c.bf16 %v298_v6, %v296_v5  ;;  %v5151_v11 = vpack.c.bf16 %v303_v9, %v301_v8  ;;  %v240_v12 = vld [vmem:[%s5564_s5 + $0xc0] sm:$0xff]  ;;  %v242_v13 = vld [vmem:[%s5564_s5 + $0xd0] sm:$0xff]  ;;  %v245_v14 = vld [vmem:[%s5564_s5 + $0xe8] sm:$0xff] }
  0x2a   : > { %5138 = vmatprep.subr.msk.bf16.mxu1 %vm5568_vm1, %v5136_v37  ;;  %v247_v15 = vld [vmem:[%s5564_s5 + $0xf8] sm:$0xff]  ;;  %v5079_v16 = vpack.c.bf16 %v242_v13, %v240_v12  ;;  %v300_v17 = vld [vmem:[%s5564_s5 + $0x2a0] sm:$0xff]  ;;  %v302_v18 = vld [vmem:[%s5564_s5 + $0x2b0] sm:$0xff] }
  0x2b   : > { %v5081_v19 = vpack.c.bf16 %v247_v15, %v245_v14  ;;  %v305_v20 = vld [vmem:[%s5564_s5 + $0x2c8] sm:$0xff]  ;;  %v307_v21 = vld [vmem:[%s5564_s5 + $0x2d8] sm:$0xff]  ;;  %v5154_v22 = vpack.c.bf16 %v302_v18, %v300_v17  ;;  %v244_v24 = vld [vmem:[%s5564_s5 + $0xe0] sm:$0xff] }
  0x2c   : > { %v5156_v23 = vpack.c.bf16 %v307_v21, %v305_v20  ;;  %v246_v25 = vld [vmem:[%s5564_s5 + $0xf0] sm:$0xff]  ;;  %v249_v26 = vld [vmem:[%s5564_s5 + $0x108] sm:$0xff]  ;;  %v251_v27 = vld [vmem:[%s5564_s5 + $0x118] sm:$0xff] }
  0x2d   : > { %5060 = vmatpush1.bf16.xpose.msra.mxu0 %v5059_v30  ;;  %v5084_v28 = vpack.c.bf16 %v246_v25, %v244_v24  ;;  %v304_v29 = vld [vmem:[%s5564_s5 + $0x2c0] sm:$0xff]  ;;  %v306_v30 = vld [vmem:[%s5564_s5 + $0x2d0] sm:$0xff]  ;;  %v5086_v31 = vpack.c.bf16 %v251_v27, %v249_v26  ;;  %v309_v32 = vld [vmem:[%s5564_s5 + $0x2e8] sm:$0xff] }
  0x2e   : > { %5063 = vmatprep.subr.msk.bf16.mxu0 %vm5568_vm1, %v5061_v33  ;;  %v311_v33 = vld [vmem:[%s5564_s5 + $0x2f8] sm:$0xff]  ;;  %v5159_v34 = vpack.c.bf16 %v306_v30, %v304_v29  ;;  %v248_v36 = vld [vmem:[%s5564_s5 + $0x100] sm:$0xff]  ;;  %v250_v37 = vld [vmem:[%s5564_s5 + $0x110] sm:$0xff] }
  0x2f   : > { %v5161_v35 = vpack.c.bf16 %v311_v33, %v309_v32  ;;  %v253_v38 = vld [vmem:[%s5564_s5 + $0x128] sm:$0xff]  ;;  %v255_v39 = vld [vmem:[%s5564_s5 + $0x138] sm:$0xff]  ;;  %v5089_v40 = vpack.c.bf16 %v250_v37, %v248_v36  ;;  %v308_v41 = vld [vmem:[%s5564_s5 + $0x2e0] sm:$0xff] }
  0x30   : > { %v5091_v43 = vpack.c.bf16 %v255_v39, %v253_v38  ;;  %v313_v44 = vld [vmem:[%s5564_s5 + $0x308] sm:$0xff]  ;;  %v259_v51 = vld [vmem:[%s5564_s5 + $0x158] sm:$0xff]  ;;  %v312_v53 = vld [vmem:[%s5564_s5 + $0x300] sm:$0xff] }
  0x31   : > { %5140 = vmatpush1.bf16.xpose.msra.mxu1 %v5139_v48  ;;  %v252_v48 = vld [vmem:[%s5564_s5 + $0x120] sm:$0xff]  ;;  %v257_v50 = vld [vmem:[%s5564_s5 + $0x148] sm:$0xff]  ;;  %v263_v63 = vld [vmem:[%s5564_s5 + $0x178] sm:$0xff] }
  0x32   : > { %5143 = vmatprep.subr.msk.bf16.mxu1 %vm5568_vm1, %v5141_v49  ;;  %v254_v49 = vld [vmem:[%s5564_s5 + $0x130] sm:$0xff]  ;;  %v5096_v55 = vpack.c.bf16 %v259_v51, %v257_v50  ;;  %v317_v56 = vld [vmem:[%s5564_s5 + $0x328] sm:$0xff]  ;;  %v316_v3 = vld [vmem:[%s5564_s5 + $0x320] sm:$0xff] }
  0x33   : > { %v5094_v52 = vpack.c.bf16 %v254_v49, %v252_v48  ;;  %v261_v62 = vld [vmem:[%s5564_s5 + $0x168] sm:$0xff]  ;;  %v267_v13 = vld [vmem:[%s5564_s5 + $0x198] sm:$0xff]  ;;  %v320_v15 = vld [vmem:[%s5564_s5 + $0x340] sm:$0xff] }
  0x34   : > { %v5101_v5 = vpack.c.bf16 %v263_v63, %v261_v62  ;;  %v321_v6 = vld [vmem:[%s5564_s5 + $0x348] sm:$0xff]  ;;  %v271_v25 = vld [vmem:[%s5564_s5 + $0x1b8] sm:$0xff]  ;;  %v324_v27 = vld [vmem:[%s5564_s5 + $0x360] sm:$0xff] }
  0x35   : > { %5065 = vmatpush1.bf16.xpose.msra.mxu0 %v5064_v42  ;;  %v310_v42 = vld [vmem:[%s5564_s5 + $0x2f0] sm:$0xff]  ;;  %v265_v12 = vld [vmem:[%s5564_s5 + $0x188] sm:$0xff]  ;;  %v275_v37 = vld [vmem:[%s5564_s5 + $0x1d8] sm:$0xff] }
  0x36   : > { %5068 = vmatprep.subr.msk.bf16.mxu0 %vm5568_vm1, %v5066_v45  ;;  %v315_v45 = vld [vmem:[%s5564_s5 + $0x318] sm:$0xff]  ;;  %v5164_v46 = vpack.c.bf16 %v310_v42, %v308_v41  ;;  %v5106_v17 = vpack.c.bf16 %v267_v13, %v265_v12  ;;  %v325_v18 = vld [vmem:[%s5564_s5 + $0x368] sm:$0xff]  ;;  %v328_v39 = vld [vmem:[%s5564_s5 + $0x380] sm:$0xff] }
  0x37   : > { %v5166_v47 = vpack.c.bf16 %v315_v45, %v313_v44  ;;  %v269_v24 = vld [vmem:[%s5564_s5 + $0x1a8] sm:$0xff]  ;;  %v279_v49 = vld [vmem:[%s5564_s5 + $0x1f8] sm:$0xff]  ;;  %v332_v51 = vld [vmem:[%s5564_s5 + $0x3a0] sm:$0xff] }
  0x38   : > { %v5111_v29 = vpack.c.bf16 %v271_v25, %v269_v24  ;;  %v329_v30 = vld [vmem:[%s5564_s5 + $0x388] sm:$0xff]  ;;  %v336_v63 = vld [vmem:[%s5564_s5 + $0x3c0] sm:$0xff]  ;;  %v355_v24 = vld [vmem:[%s5564_s5 + $0x458] sm:$0xff] }
  0x39   : > { %5145 = vmatpush1.bf16.xpose.msra.mxu1 %v5144_v60  ;;  %v256_v60 = vld [vmem:[%s5564_s5 + $0x140] sm:$0xff]  ;;  %v273_v36 = vld [vmem:[%s5564_s5 + $0x1c8] sm:$0xff] }
  0x3a   : > { %5148 = vmatprep.subr.msk.bf16.mxu1 %vm5568_vm1, %v5146_v61  ;;  %v258_v61 = vld [vmem:[%s5564_s5 + $0x150] sm:$0xff]  ;;  %v5116_v41 = vpack.c.bf16 %v275_v37, %v273_v36  ;;  %v333_v42 = vld [vmem:[%s5564_s5 + $0x3a8] sm:$0xff]  ;;  %v5771_v12 = vld [vmem:[%s6994_s1] sm:$0xff] }
  0x3b   : > { %v5099_v2 = vpack.c.bf16 %v258_v61, %v256_v60  ;;  %v277_v48 = vld [vmem:[%s5564_s5 + $0x1e8] sm:$0xff]  ;;  %v347_v61 = vld [vmem:[%s5564_s5 + $0x418] sm:$0xff]  ;;  %v5842_v36 = vld [vmem:[%s6994_s1 + $0x40] sm:$0xff] }
  0x3c   : > { %v345_v60 = vld [vmem:[%s5564_s5 + $0x408] sm:$0xff] }
  0x3d   : > { %5070 = vmatpush1.bf16.xpose.msra.mxu0 %v5069_v54  ;;  %v314_v54 = vld [vmem:[%s5564_s5 + $0x310] sm:$0xff] }
  0x3e   : > { %5073 = vmatprep.subr.msk.bf16.mxu0 %vm5568_vm1, %v5071_v57  ;;  %v319_v57 = vld [vmem:[%s5564_s5 + $0x338] sm:$0xff]  ;;  %v5169_v58 = vpack.c.bf16 %v314_v54, %v312_v53  ;;  %v5121_v53 = vpack.c.bf16 %v279_v49, %v277_v48  ;;  %v337_v54 = vld [vmem:[%s5564_s5 + $0x3c8] sm:$0xff]  ;;  %v1066_v48 = vld [vmem:[%s5887_s22] sm:$0xff] }
  0x3f   : > { %v5171_v59 = vpack.c.bf16 %v319_v57, %v317_v56  ;;  %v1070_v49 = vld [vmem:[%s5887_s22 + $0x20] sm:$0xff] }
  0x41   : > { %5150 = vmatpush1.bf16.xpose.msra.mxu1 %v5149_v10  ;;  %v260_v10 = vld [vmem:[%s5564_s5 + $0x160] sm:$0xff] }
  0x42   : > { %5153 = vmatprep.subr.msk.bf16.mxu1 %vm5568_vm1, %v5151_v11  ;;  %v262_v11 = vld [vmem:[%s5564_s5 + $0x170] sm:$0xff] }
  0x43   : > { %v5104_v14 = vpack.c.bf16 %v262_v11, %v260_v10  ;;  %v349_v10 = vld [vmem:[%s5564_s5 + $0x428] sm:$0xff]  ;;  %v351_v11 = vld [vmem:[%s5564_s5 + $0x438] sm:$0xff] }
  0x45   : > { %5075 = vmatpush1.bf16.xpose.msra.mxu0 %v5074_v4  ;;  %v318_v4 = vld [vmem:[%s5564_s5 + $0x330] sm:$0xff] }
  0x46   : > { %5078 = vmatprep.subr.msk.bf16.mxu0 %vm5568_vm1, %v5076_v7  ;;  %v323_v7 = vld [vmem:[%s5564_s5 + $0x358] sm:$0xff]  ;;  %v5174_v8 = vpack.c.bf16 %v318_v4, %v316_v3  ;;  %v5206_v3 = vpack.c.bf16 %v347_v61, %v345_v60  ;;  %v341_v4 = vld [vmem:[%s5564_s5 + $0x3e8] sm:$0xff] }
  0x47   : > { %v5176_v9 = vpack.c.bf16 %v323_v7, %v321_v6  ;;  %v367_v60 = vld [vmem:[%s5564_s5 + $0x4b8] sm:$0xff] }
  0x49   : > { %5155 = vmatpush1.bf16.xpose.msra.mxu1 %v5154_v22  ;;  %v264_v22 = vld [vmem:[%s5564_s5 + $0x180] sm:$0xff] }
  0x4a   : > { %5158 = vmatprep.subr.msk.bf16.mxu1 %vm5568_vm1, %v5156_v23  ;;  %v266_v23 = vld [vmem:[%s5564_s5 + $0x190] sm:$0xff] }
  0x4b   : > { %v5109_v26 = vpack.c.bf16 %v266_v23, %v264_v22  ;;  %v5797_v22 = vld [vmem:[%s6994_s1 + $0x28] sm:$0xff] }
  0x4c   : > { %v353_v23 = vld [vmem:[%s5564_s5 + $0x448] sm:$0xff] }
  0x4d   : > { %5080 = vmatpush1.bf16.xpose.msra.mxu0 %v5079_v16  ;;  %v322_v16 = vld [vmem:[%s5564_s5 + $0x350] sm:$0xff] }
  0x4e   : > { %5083 = vmatprep.subr.msk.bf16.mxu0 %vm5568_vm1, %v5081_v19  ;;  %v327_v19 = vld [vmem:[%s5564_s5 + $0x378] sm:$0xff]  ;;  %v5179_v20 = vpack.c.bf16 %v322_v16, %v320_v15  ;;  %v342_v15 = vld [vmem:[%s5564_s5 + $0x3f0] sm:$0xff] }
  0x4f   : > { %v5181_v21 = vpack.c.bf16 %v327_v19, %v325_v18  ;;  %v5780_v16 = vld [vmem:[%s6994_s1 + $0x18] sm:$0xff]  ;;  %v5788_v19 = vld [vmem:[%s6994_s1 + $0x10] sm:$0xff] }
  0x51   : > { %5160 = vmatpush1.bf16.xpose.msra.mxu1 %v5159_v34  ;;  %v268_v34 = vld [vmem:[%s5564_s5 + $0x1a0] sm:$0xff] }
  0x52   : > { %5163 = vmatprep.subr.msk.bf16.mxu1 %vm5568_vm1, %v5161_v35  ;;  %v270_v35 = vld [vmem:[%s5564_s5 + $0x1b0] sm:$0xff] }
  0x53   : > { %v5114_v38 = vpack.c.bf16 %v270_v35, %v268_v34  ;;  %v359_v34 = vld [vmem:[%s5564_s5 + $0x478] sm:$0xff] }
  0x55   : > { %5085 = vmatpush1.bf16.xpose.msra.mxu0 %v5084_v28  ;;  %v326_v28 = vld [vmem:[%s5564_s5 + $0x370] sm:$0xff] }
  0x56   : > { %5088 = vmatprep.subr.msk.bf16.mxu0 %vm5568_vm1, %v5086_v31  ;;  %v331_v31 = vld [vmem:[%s5564_s5 + $0x398] sm:$0xff]  ;;  %v5184_v32 = vpack.c.bf16 %v326_v28, %v324_v27  ;;  %v5216_v27 = vpack.c.bf16 %v355_v24, %v353_v23  ;;  %v368_v23 = vld [vmem:[%s5564_s5 + $0x4c0] sm:$0xff] }
  0x57   : > { %v5186_v33 = vpack.c.bf16 %v331_v31, %v329_v30  ;;  %v5812_v28 = vld [vmem:[%s6994_s1 + $0x38] sm:$0xff]  ;;  %v352_v30 = vld [vmem:[%s5564_s5 + $0x440] sm:$0xff]  ;;  %v354_v31 = vld [vmem:[%s5564_s5 + $0x450] sm:$0xff] }
  0x58   : > { %v5219_v35 = vpack.c.bf16 %v354_v31, %v352_v30  ;;  %v1118_v30 = vld [vmem:[%s5887_s22 + $0x1a0] sm:$0xff]  ;;  %v373_v31 = vld [vmem:[%s5564_s5 + $0x4e8] sm:$0xff] }
  0x59   : > { %5165 = vmatpush1.bf16.xpose.msra.mxu1 %v5164_v46  ;;  %v272_v46 = vld [vmem:[%s5564_s5 + $0x1c0] sm:$0xff] }
  0x5a   : > { %5168 = vmatprep.subr.msk.bf16.mxu1 %vm5568_vm1, %v5166_v47  ;;  %v274_v47 = vld [vmem:[%s5564_s5 + $0x1d0] sm:$0xff] }
  0x5b   : > { %v5119_v50 = vpack.c.bf16 %v274_v47, %v272_v46  ;;  %v5880_v46 = vld [vmem:[%s6994_s1 + $0x60] sm:$0x1] }
  0x5d   : > { %5090 = vmatpush1.bf16.xpose.msra.mxu0 %v5089_v40  ;;  %v330_v40 = vld [vmem:[%s5564_s5 + $0x390] sm:$0xff] }
  0x5e   : > { %5093 = vmatprep.subr.msk.bf16.mxu0 %vm5568_vm1, %v5091_v43  ;;  %v335_v43 = vld [vmem:[%s5564_s5 + $0x3b8] sm:$0xff]  ;;  %v5189_v44 = vpack.c.bf16 %v330_v40, %v328_v39  ;;  %v5858_v39 = vld [vmem:[%s6994_s1 + $0x50] sm:$0xff]  ;;  %v356_v40 = vld [vmem:[%s5564_s5 + $0x460] sm:$0xff] }
  0x5f   : > { %v5191_v45 = vpack.c.bf16 %v335_v43, %v333_v42  ;;  %v5867_v42 = vld [vmem:[%s6994_s1 + $0x68] sm:$0x1] }
  0x60   : > { %v361_v43 = vld [vmem:[%s5564_s5 + $0x488] sm:$0xff] }
  0x61   : > { %5170 = vmatpush1.bf16.xpose.msra.mxu1 %v5169_v58  ;;  %v276_v58 = vld [vmem:[%s5564_s5 + $0x1e0] sm:$0xff] }
  0x62   : > { %5173 = vmatprep.subr.msk.bf16.mxu1 %vm5568_vm1, %v5171_v59  ;;  %v278_v59 = vld [vmem:[%s5564_s5 + $0x1f0] sm:$0xff] }
  0x63   : > { %v5124_v62 = vpack.c.bf16 %v278_v59, %v276_v58  ;;  %v1086_v58 = vld [vmem:[%s5887_s22 + $0xa0] sm:$0xff]  ;;  %v365_v59 = vld [vmem:[%s5564_s5 + $0x4a8] sm:$0xff] }
  0x65   : > { %5095 = vmatpush1.bf16.xpose.msra.mxu0 %v5094_v52  ;;  %v334_v52 = vld [vmem:[%s5564_s5 + $0x3b0] sm:$0xff] }
  0x66   : > { %5098 = vmatprep.subr.msk.bf16.mxu0 %vm5568_vm1, %v5096_v55  ;;  %v339_v55 = vld [vmem:[%s5564_s5 + $0x3d8] sm:$0xff]  ;;  %v5194_v56 = vpack.c.bf16 %v334_v52, %v332_v51  ;;  %v360_v51 = vld [vmem:[%s5564_s5 + $0x480] sm:$0xff]  ;;  %v4657_v52 = vcombine.low %v1066_v48, %v1070_v49 }
  0x67   : > { %v5196_v57 = vpack.c.bf16 %v339_v55, %v337_v54  ;;  %v1078_v54 = vld [vmem:[%s5887_s22 + $0x60] sm:$0xff]  ;;  %v362_v55 = vld [vmem:[%s5564_s5 + $0x490] sm:$0xff] }
  0x68   : > { %v5229_v61 = vpack.c.bf16 %v362_v55, %v360_v51  ;;  %v377_v51 = vld [vmem:[%s5564_s5 + $0x508] sm:$0xff] }
  0x69   : > { %5175 = vmatpush1.bf16.xpose.msra.mxu1 %v5174_v8  ;;  %v344_v8 = vld [vmem:[%s5564_s5 + $0x400] sm:$0xff] }
  0x6a   : > { %5178 = vmatprep.subr.msk.bf16.mxu1 %vm5568_vm1, %v5176_v9  ;;  %v346_v9 = vld [vmem:[%s5564_s5 + $0x410] sm:$0xff] }
  0x6b   : > { %v5209_v13 = vpack.c.bf16 %v346_v9, %v344_v8  ;;  %v1098_v8 = vld [vmem:[%s5887_s22 + $0x100] sm:$0xff] }
  0x6c   : > { %v1102_v9 = vld [vmem:[%s5887_s22 + $0x120] sm:$0xff] }
  0x6d   : > { %5100 = vmatpush1.bf16.xpose.msra.mxu0 %v5099_v2  ;;  %v338_v2 = vld [vmem:[%s5564_s5 + $0x3d0] sm:$0xff] }
  0x6e   : > { %5103 = vmatprep.subr.msk.bf16.mxu0 %vm5568_vm1, %v5101_v5  ;;  %v343_v5 = vld [vmem:[%s5564_s5 + $0x3f8] sm:$0xff]  ;;  %v5199_v6 = vpack.c.bf16 %v338_v2, %v336_v63  ;;  %v5231_v63 = vpack.c.bf16 %v367_v60, %v365_v59  ;;  %v1090_v2 = vld [vmem:[%s5887_s22 + $0xc0] sm:$0xff] }
  0x6f   : > { %v5201_v7 = vpack.c.bf16 %v343_v5, %v341_v4  ;;  %v364_v5 = vld [vmem:[%s5564_s5 + $0x4a0] sm:$0xff] }
  0x70   : > { %v376_v60 = vld [vmem:[%s5564_s5 + $0x500] sm:$0xff] }
  0x71   : > { %5180 = vmatpush1.bf16.xpose.msra.mxu1 %v5179_v20  ;;  %v348_v20 = vld [vmem:[%s5564_s5 + $0x420] sm:$0xff] }
  0x72   : > { %5183 = vmatprep.subr.msk.bf16.mxu1 %vm5568_vm1, %v5181_v21  ;;  %v350_v21 = vld [vmem:[%s5564_s5 + $0x430] sm:$0xff] }
  0x73   : > { %v5214_v25 = vpack.c.bf16 %v350_v21, %v348_v20  ;;  %v1110_v20 = vld [vmem:[%s5887_s22 + $0x160] sm:$0xff]  ;;  %v4689_v21 = vcombine.low %v1098_v8, %v1102_v9 }
  0x75   : > { %5105 = vmatpush1.bf16.xpose.msra.mxu0 %v5104_v14  ;;  %v340_v14 = vld [vmem:[%s5564_s5 + $0x3e0] sm:$0xff] }
  0x76   : > { %5108 = vmatprep.subr.msk.bf16.mxu0 %vm5568_vm1, %v5106_v17  ;;  %v5211_v17 = vpack.c.bf16 %v351_v11, %v349_v10  ;;  %v5204_v18 = vpack.c.bf16 %v342_v15, %v340_v14  ;;  %v369_v10 = vld [vmem:[%s5564_s5 + $0x4c8] sm:$0xff]  ;;  %v371_v11 = vld [vmem:[%s5564_s5 + $0x4d8] sm:$0xff]  ;;  %v4690_v15 = vcombine.high %v1098_v8, %v1102_v9  ;;  %v1154_v8 = vld [vmem:[%s5887_s22 + $0x2c0] sm:$0xff] }
  0x77   : > { %v1158_v9 = vld [vmem:[%s5887_s22 + $0x2e0] sm:$0xff] }
  0x79   : > { %5185 = vmatpush1.bf16.xpose.msra.mxu1 %v5184_v32  ;;  %v5829_v32 = vld [vmem:[%s6994_s1 + $0x48] sm:$0xff] }
  0x7a   : > { %5188 = vmatprep.subr.msk.bf16.mxu1 %vm5568_vm1, %v5186_v33  ;;  %v357_v33 = vld [vmem:[%s5564_s5 + $0x468] sm:$0xff] }
  0x7b   : > { %v5221_v37 = vpack.c.bf16 %v359_v34, %v357_v33  ;;  %v375_v33 = vld [vmem:[%s5564_s5 + $0x4f8] sm:$0xff] }
  0x7d   : > { %5110 = vmatpush1.bf16.xpose.msra.mxu0 %v5109_v26  ;;  %v5807_v26 = vld [vmem:[%s6994_s1 + $0x20] sm:$0xff] }
  0x7e   : > { %5113 = vmatprep.subr.msk.bf16.mxu0 %vm5568_vm1, %v5111_v29  ;;  %v5820_v29 = vld [vmem:[%s6994_s1 + $0x30] sm:$0xff] }
  0x81   : > { %5190 = vmatpush1.bf16.xpose.msra.mxu1 %v5189_v44  ;;  %v363_v44 = vld [vmem:[%s5564_s5 + $0x498] sm:$0xff] }
  0x82   : > { %5193 = vmatprep.subr.msk.bf16.mxu1 %vm5568_vm1, %v5191_v45  ;;  %v5226_v47 = vpack.c.bf16 %v363_v44, %v361_v43  ;;  %v1126_v43 = vld [vmem:[%s5887_s22 + $0x1e0] sm:$0xff] }
  0x85   : > { %5115 = vmatpush1.bf16.xpose.msra.mxu0 %v5114_v38  ;;  %v5847_v38 = vld [vmem:[%s6994_s1 + $0x58] sm:$0xff] }
  0x86   : > { %5118 = vmatprep.subr.msk.bf16.mxu0 %vm5568_vm1, %v5116_v41  ;;  %v358_v41 = vld [vmem:[%s5564_s5 + $0x470] sm:$0xff] }
  0x87   : > { %v5224_v45 = vpack.c.bf16 %v358_v41, %v356_v40  ;;  %v5241_v40 = vpack.c.bf16 %v375_v33, %v373_v31  ;;  %v1122_v41 = vld [vmem:[%s5887_s22 + $0x1c0] sm:$0xff] }
  0x89   : > { %5195 = vmatpush1.bf16.xpose.msra.mxu1 %v5194_v56 }
  0x8a   : > { %5198 = vmatprep.subr.msk.bf16.mxu1 %vm5568_vm1, %v5196_v57  ;;  %v1082_v57 = vld [vmem:[%s5887_s22 + $0x80] sm:$0xff] }
  0x8b   : > { %v4673_v4 = vcombine.low %v1082_v57, %v1086_v58 }
  0x8d   : > { %5120 = vmatpush1.bf16.xpose.msra.mxu0 %v5119_v50  ;;  %v1074_v50 = vld [vmem:[%s5887_s22 + $0x40] sm:$0xff] }
  0x8e   : > { %5123 = vmatprep.subr.msk.bf16.mxu0 %vm5568_vm1, %v5121_v53  ;;  %v4658_v53 = vcombine.high %v1066_v48, %v1070_v49  ;;  %v4666_v56 = vcombine.high %v1074_v50, %v1078_v54  ;;  %v374_v48 = vld [vmem:[%s5564_s5 + $0x4f0] sm:$0xff]  ;;  %v1130_v49 = vld [vmem:[%s5887_s22 + $0x200] sm:$0xff] }
  0x91   : > { %5200 = vmatpush1.bf16.xpose.msra.mxu1 %v5199_v6 }
  0x92   : > { %5203 = vmatprep.subr.msk.bf16.mxu1 %vm5568_vm1, %v5201_v7  ;;  %v366_v7 = vld [vmem:[%s5564_s5 + $0x4b0] sm:$0xff] }
  0x93   : > { %v5234_v14 = vpack.c.bf16 %v366_v7, %v364_v5 }
  0x95   : > { %5125 = vmatpush1.bf16.xpose.msra.mxu0 %v5124_v62  ;;  %v4674_v62 = vcombine.high %v1082_v57, %v1086_v58  ;;  %v1138_v57 = vld [vmem:[%s5887_s22 + $0x240] sm:$0xff] }
  0x96   : > { %5208 = vmatprep.subr.msk.bf16.mxu0 %vm5568_vm1, %v5206_v3  ;;  %v1094_v3 = vld [vmem:[%s5887_s22 + $0xe0] sm:$0xff] }
  0x97   : > { %v4682_v6 = vcombine.high %v1090_v2, %v1094_v3  ;;  %v1142_v58 = vld [vmem:[%s5887_s22 + $0x260] sm:$0xff] }
  0x99   : > { %5205 = vmatpush1.bf16.xpose.msra.mxu1 %v5204_v18  ;;  %v1106_v18 = vld [vmem:[%s5887_s22 + $0x140] sm:$0xff] }
  0x9a   : > { %3370 = vmatprep.subr.bf16.mxu1 %v4658_v53  ;;  %v4698_v24 = vcombine.high %v1106_v18, %v1110_v20  ;;  %v4697_v34 = vcombine.low %v1106_v18, %v1110_v20  ;;  %v4713_v53 = vcombine.low %v1122_v41, %v1126_v43  ;;  %v385_v18 = vld [vmem:[%s5564_s5 + $0x548] sm:$0xff]  ;;  %v387_v20 = vld [vmem:[%s5564_s5 + $0x558] sm:$0xff] }
  0x9c   : > { %783 = vmatmul.mubr.f32.vlgmr.msra.gmra.mrb[0].mxu0 %v5771_v12 }
  0x9d   : > { %5210 = vmatpush1.bf16.xpose.msra.mxu0 %v5209_v13  ;;  %4572 = vmatprep.mubr.msk.f32.mxu0 %vm408_vm0, %v5780_v16  ;;  %v4681_v13 = vcombine.low %v1090_v2, %v1094_v3  ;;  %v381_v2 = vld [vmem:[%s5564_s5 + $0x528] sm:$0xff]  ;;  %v383_v3 = vld [vmem:[%s5564_s5 + $0x538] sm:$0xff] }
  0x9e   : > { %5213 = vmatprep.subr.msk.bf16.mxu0 %vm5568_vm1, %v5211_v17  ;;  %v5236_v17 = vpack.c.bf16 %v371_v11, %v369_v10  ;;  %v5251_v7 = vpack.c.bf16 %v383_v3, %v381_v2  ;;  %v380_v11 = vld [vmem:[%s5564_s5 + $0x520] sm:$0xff]  ;;  %v397_v3 = vld [vmem:[%s5564_s5 + $0x5a8] sm:$0xff] }
  0xa0   : > { %789 = vmatmul.mubr.f32.gmra.mrb[2].mxu0 %v5788_v19  ;;  %890 = vmatmul.mubr.f32.vlgmr.msra.gmra.mrb[0].mxu1 %v5771_v12 }
  0xa1   : > { %4573 = vmatprep.mubr.msk.f32.mxu0 %vm408_vm0, %v5797_v22  ;;  %4611 = vmatprep.mubr.msk.f32.mxu1 %vm408_vm0, %v5780_v16 }
  0xa2   : > { %3371 = vmatpush1.bf16.msra.mxu1 %v4657_v52  ;;  %v379_v52 = vld [vmem:[%s5564_s5 + $0x518] sm:$0xff] }
  0xa3   : > { %3372 = vmatprep.subr.bf16.mxu1 %v4666_v56  ;;  %v5246_v56 = vpack.c.bf16 %v379_v52, %v377_v51  ;;  %v393_v52 = vld [vmem:[%s5564_s5 + $0x588] sm:$0xff] }
  0xa4   : > { %795 = vmatmul.mubr.f32.gmra.mrb[4].mxu0 %v5807_v26  ;;  %896 = vmatmul.mubr.f32.gmra.mrb[2].mxu1 %v5788_v19 }
  0xa5   : > { %5215 = vmatpush1.bf16.xpose.msra.mxu0 %v5214_v25  ;;  %4574 = vmatprep.mubr.msk.f32.mxu0 %vm408_vm0, %v5812_v28  ;;  %v370_v25 = vld [vmem:[%s5564_s5 + $0x4d0] sm:$0xff] }
  0xa6   : > { %5218 = vmatprep.subr.msk.bf16.mxu0 %vm5568_vm1, %v5216_v27  ;;  %4612 = vmatprep.mubr.msk.f32.mxu1 %vm408_vm0, %v5797_v22  ;;  %v1114_v27 = vld [vmem:[%s5887_s22 + $0x180] sm:$0xff] }
  0xa7   : > { %v4705_v44 = vcombine.low %v1114_v27, %v1118_v30 }
  0xa8   : > { %801 = vmatmul.mubr.f32.gmra.mrb[6].mxu0 %v5820_v29  ;;  %902 = vmatmul.mubr.f32.gmra.mrb[4].mxu1 %v5807_v26 }
  0xa9   : > { %4575 = vmatprep.mubr.msk.f32.mxu0 %vm408_vm0, %v5829_v32  ;;  %4613 = vmatprep.mubr.msk.f32.mxu1 %vm408_vm0, %v5812_v28 }
  0xac   : > { %807 = vmatmul.mubr.f32.gmra.mrb[8].mxu0 %v5842_v36  ;;  %908 = vmatmul.mubr.f32.gmra.mrb[6].mxu1 %v5820_v29 }
  0xad   : > { %5220 = vmatpush1.bf16.xpose.msra.mxu0 %v5219_v35  ;;  %4576 = vmatprep.mubr.msk.f32.mxu0 %vm408_vm0, %v5847_v38  ;;  %v5239_v35 = vpack.c.bf16 %v370_v25, %v368_v23  ;;  %v5256_v25 = vpack.c.bf16 %v387_v20, %v385_v18  ;;  %v407_v18 = vld [vmem:[%s5564_s5 + $0x5f8] sm:$0xff] }
  0xae   : > { %5223 = vmatprep.subr.msk.bf16.mxu0 %vm5568_vm1, %v5221_v37  ;;  %4614 = vmatprep.mubr.msk.f32.mxu1 %vm408_vm0, %v5829_v32  ;;  %v4706_v37 = vcombine.high %v1114_v27, %v1118_v30  ;;  %v1170_v27 = vld [vmem:[%s5887_s22 + $0x340] sm:$0xff] }
  0xaf   : > { %v1174_v30 = vld [vmem:[%s5887_s22 + $0x360] sm:$0xff] }
  0xb0   : > { %813 = vmatmul.mubr.f32.gmra.mrb[10].mxu0 %v5858_v39  ;;  %914 = vmatmul.mubr.f32.gmra.mrb[8].mxu1 %v5842_v36  ;;  %v4762_v33 = vcombine.high %v1170_v27, %v1174_v30 }
  0xb1   : > { %4577 = vmatprep.mubr.msk.f32.mxu0 %vm408_vm0, %v5867_v42  ;;  %4615 = vmatprep.mubr.msk.f32.mxu1 %vm408_vm0, %v5847_v38 }
  0xb4   : > { %819 = vmatmul.mubr.f32.gmra.mrb[12].mxu0 %v5880_v46  ;;  %920 = vmatmul.mubr.f32.gmra.mrb[10].mxu1 %v5858_v39 }
  0xb5   : > { %5225 = vmatpush1.bf16.xpose.msra.mxu0 %v5224_v45  ;;  %4649 = vmatprep.mubr.msk.f32.mxu0 %vm408_vm0, %v5550_v0  ;;  %v4665_v0 = vcombine.low %v1074_v50, %v1078_v54  ;;  %v372_v45 = vld [vmem:[%s5564_s5 + $0x4e0] sm:$0xff] }
  0xb6   : > { %5228 = vmatprep.subr.msk.bf16.mxu0 %vm5568_vm1, %v5226_v47  ;;  %4616 = vmatprep.mubr.msk.f32.mxu1 %vm408_vm0, %v5867_v42  ;;  %v4714_v47 = vcombine.high %v1122_v41, %v1126_v43  ;;  %v1134_v50 = vld [vmem:[%s5887_s22 + $0x220] sm:$0xff]  ;;  %v5244_v54 = vpack.c.bf16 %v374_v48, %v372_v45  ;;  %v4761_v41 = vcombine.low %v1170_v27, %v1174_v30  ;;  %v1199_v27 = vld [vmem:[%s5887_s22 + $0x428] sm:$0xff] }
  0xb7   : > { %3373 = vmatpush1.bf16.msra.mxu1 %v4665_v0  ;;  %v4722_v55 = vcombine.high %v1130_v49, %v1134_v50  ;;  %v4721_v59 = vcombine.low %v1130_v49, %v1134_v50  ;;  %v4730_v0 = vcombine.high %v1138_v57, %v1142_v58  ;;  %v1178_v45 = vld [vmem:[%s5887_s22 + $0x380] sm:$0xff]  ;;  %v390_v50 = vld [vmem:[%s5564_s5 + $0x570] sm:$0xff] }
  0xb8   : > { %3374 = vmatprep.subr.bf16.mxu1 %v4674_v62  ;;  %926 = vmatmul.mubr.f32.gmra.mrb[12].mxu1 %v5880_v46  ;;  %v1146_v62 = vld [vmem:[%s5887_s22 + $0x280] sm:$0xff] }
  0xb9   : > { %v388_v49 = vld [vmem:[%s5564_s5 + $0x560] sm:$0xff] }
  0xbb   : > { %3375 = vmatpush1.bf16.msra.mxu1 %v4673_v4  ;;  %v4729_v4 = vcombine.low %v1138_v57, %v1142_v58 }
  0xbc   : > { %3376 = vmatprep.subr.bf16.mxu1 %v4682_v6 }
  0xbd   : > { %5230 = vmatpush1.bf16.xpose.msra.mxu0 %v5229_v61  ;;  %v378_v61 = vld [vmem:[%s5564_s5 + $0x510] sm:$0xff] }
  0xbe   : > { %5233 = vmatprep.subr.msk.bf16.mxu0 %vm5568_vm1, %v5231_v63  ;;  %v1150_v63 = vld [vmem:[%s5887_s22 + $0x2a0] sm:$0xff]  ;;  %v5249_v5 = vpack.c.bf16 %v378_v61, %v376_v60 }
  0xbf   : > { %3377 = vmatpush1.bf16.msra.mxu1 %v4681_v13  ;;  %v4738_v6 = vcombine.high %v1146_v62, %v1150_v63  ;;  %v4737_v10 = vcombine.low %v1146_v62, %v1150_v63  ;;  %v4746_v13 = vcombine.high %v1154_v8, %v1158_v9  ;;  %v5982_v60 = vld [vmem:[%s5887_s22 + $0x400] sm:$0xff]  ;;  %v394_v63 = vld [vmem:[%s5564_s5 + $0x590] sm:$0xff] }
  0xc0   : > { %3378 = vmatprep.subr.bf16.mxu1 %v4690_v15  ;;  %v1162_v15 = vld [vmem:[%s5887_s22 + $0x300] sm:$0xff] }
  0xc1   : > { %v392_v62 = vld [vmem:[%s5564_s5 + $0x580] sm:$0xff] }
  0xc3   : > { %3379 = vmatpush1.bf16.msra.mxu1 %v4689_v21  ;;  %v4745_v21 = vcombine.low %v1154_v8, %v1158_v9  ;;  %v398_v8 = vld [vmem:[%s5564_s5 + $0x5b0] sm:$0xff]  ;;  %v401_v9 = vld [vmem:[%s5564_s5 + $0x5c8] sm:$0xff] }
  0xc4   : > { %3380 = vmatprep.subr.bf16.mxu1 %v4698_v24 }
  0xc5   : > { %5235 = vmatpush1.bf16.xpose.msra.mxu0 %v5234_v14  ;;  %v382_v14 = vld [vmem:[%s5564_s5 + $0x530] sm:$0xff] }
  0xc6   : > { %5238 = vmatprep.subr.msk.bf16.mxu0 %vm5568_vm1, %v5236_v17  ;;  %v1166_v17 = vld [vmem:[%s5887_s22 + $0x320] sm:$0xff]  ;;  %v5254_v23 = vpack.c.bf16 %v382_v14, %v380_v11 }
  0xc7   : > { %3381 = vmatpush1.bf16.msra.mxu1 %v4697_v34  ;;  %v4754_v24 = vcombine.high %v1162_v15, %v1166_v17  ;;  %v4753_v31 = vcombine.low %v1162_v15, %v1166_v17  ;;  %v384_v34 = vld [vmem:[%s5564_s5 + $0x540] sm:$0xff]  ;;  %v402_v15 = vld [vmem:[%s5564_s5 + $0x5d0] sm:$0xff]  ;;  %v405_v17 = vld [vmem:[%s5564_s5 + $0x5e8] sm:$0xff] }
  0xc8   : > { %3382 = vmatprep.subr.bf16.mxu1 %v4706_v37  ;;  %v389_v37 = vld [vmem:[%s5564_s5 + $0x568] sm:$0xff]  ;;  %v400_v14 = vld [vmem:[%s5564_s5 + $0x5c0] sm:$0xff] }
  0xc9   : > { %v5279_v20 = vpack.c.bf16 %v402_v15, %v400_v14  ;;  %v1303_v14 = vld [vmem:[%s5887_s22 + $0x768] sm:$0xff] }
  0xcb   : > { %3383 = vmatpush1.bf16.msra.mxu1 %v4705_v44 }
  0xcc   : > { %3384 = vmatprep.subr.bf16.mxu1 %v4714_v47  ;;  %v1182_v47 = vld [vmem:[%s5887_s22 + $0x3a0] sm:$0xff] }
  0xcd   : > { %5240 = vmatpush1.bf16.xpose.msra.mxu0 %v5239_v35  ;;  %v386_v35 = vld [vmem:[%s5564_s5 + $0x550] sm:$0xff]  ;;  %v4770_v48 = vcombine.high %v1178_v45, %v1182_v47  ;;  %v4769_v51 = vcombine.low %v1178_v45, %v1182_v47  ;;  %v1223_v45 = vld [vmem:[%s5887_s22 + $0x4e8] sm:$0xff] }
  0xce   : > { %5243 = vmatprep.subr.msk.bf16.mxu0 %vm5568_vm1, %v5241_v40  ;;  %v391_v40 = vld [vmem:[%s5564_s5 + $0x578] sm:$0xff]  ;;  %v5259_v43 = vpack.c.bf16 %v386_v35, %v384_v34  ;;  %v1207_v34 = vld [vmem:[%s5887_s22 + $0x468] sm:$0xff] }
  0xcf   : > { %3385 = vmatpush1.bf16.msra.mxu1 %v4713_v53  ;;  %v5261_v44 = vpack.c.bf16 %v391_v40, %v389_v37  ;;  %v395_v53 = vld [vmem:[%s5564_s5 + $0x598] sm:$0xff]  ;;  %v1211_v40 = vld [vmem:[%s5887_s22 + $0x488] sm:$0xff] }
  0xd0   : > { %3386 = vmatprep.subr.bf16.mxu1 %v4722_v55  ;;  %v1190_v55 = vld [vmem:[%s5887_s22 + $0x3e0] sm:$0xff]  ;;  %v5266_v58 = vpack.c.bf16 %v395_v53, %v393_v52  ;;  %v1243_v52 = vld [vmem:[%s5887_s22 + $0x588] sm:$0xff] }
  0xd3   : > { %3387 = vmatpush1.bf16.msra.mxu1 %v4721_v59 }
  0xd4   : > { %3388 = vmatprep.subr.bf16.mxu1 %v4730_v0  ;;  %v5985_v0 = vld [vmem:[%s5887_s22 + $0x420] sm:$0xff] }
  0xd5   : > { %5245 = vmatpush1.bf16.xpose.msra.mxu0 %v5244_v54  ;;  %v1186_v54 = vld [vmem:[%s5887_s22 + $0x3c0] sm:$0xff]  ;;  %v4786_v61 = vcombine.high %v5982_v60, %v5985_v0  ;;  %v4785_v2 = vcombine.low %v5982_v60, %v5985_v0 }
  0xd6   : > { %5248 = vmatprep.subr.msk.bf16.mxu0 %vm5568_vm1, %v5246_v56  ;;  %v5264_v56 = vpack.c.bf16 %v390_v50, %v388_v49  ;;  %v4778_v57 = vcombine.high %v1186_v54, %v1190_v55  ;;  %v4777_v59 = vcombine.low %v1186_v54, %v1190_v55  ;;  %v1235_v50 = vld [vmem:[%s5887_s22 + $0x548] sm:$0xff] }
  0xd7   : > { %3389 = vmatpush1.bf16.msra.mxu1 %v4729_v4  ;;  %v399_v4 = vld [vmem:[%s5564_s5 + $0x5b8] sm:$0xff]  ;;  %v1251_v54 = vld [vmem:[%s5887_s22 + $0x5c8] sm:$0xff] }
  0xd8   : > { %3390 = vmatprep.subr.bf16.mxu1 %v4738_v6  ;;  %v5271_v6 = vpack.c.bf16 %v399_v4, %v397_v3  ;;  %v1283_v4 = vld [vmem:[%s5887_s22 + $0x6c8] sm:$0xff] }
  0xdb   : > { %3391 = vmatpush1.bf16.msra.mxu1 %v4737_v10  ;;  %v403_v10 = vld [vmem:[%s5564_s5 + $0x5d8] sm:$0xff] }
  0xdc   : > { %3392 = vmatprep.subr.bf16.mxu1 %v4746_v13  ;;  %v5276_v13 = vpack.c.bf16 %v403_v10, %v401_v9  ;;  %v1295_v9 = vld [vmem:[%s5887_s22 + $0x728] sm:$0xff] }
  0xdd   : > { %5250 = vmatpush1.bf16.xpose.msra.mxu0 %v5249_v5  ;;  %v5269_v5 = vpack.c.bf16 %v394_v63, %v392_v62  ;;  %v1275_v62 = vld [vmem:[%s5887_s22 + $0x688] sm:$0xff] }
  0xde   : > { %5253 = vmatprep.subr.msk.bf16.mxu0 %vm5568_vm1, %v5251_v7  ;;  %v396_v7 = vld [vmem:[%s5564_s5 + $0x5a0] sm:$0xff]  ;;  %v1279_v63 = vld [vmem:[%s5887_s22 + $0x6a8] sm:$0xff] }
  0xdf   : > { %3393 = vmatpush1.bf16.msra.mxu1 %v4745_v21  ;;  %v5274_v11 = vpack.c.bf16 %v398_v8, %v396_v7  ;;  %v5281_v21 = vpack.c.bf16 %v407_v18, %v405_v17  ;;  %v1291_v8 = vld [vmem:[%s5887_s22 + $0x708] sm:$0xff] }
  0xe0   : > { %3394 = vmatprep.subr.bf16.mxu1 %v4754_v24  ;;  %v406_v24 = vld [vmem:[%s5564_s5 + $0x5f0] sm:$0xff]  ;;  %v4883_v15 = vcombine.low %v1291_v8, %v1295_v9  ;;  %v1307_v18 = vld [vmem:[%s5887_s22 + $0x788] sm:$0xff] }
  0xe3   : > { %3395 = vmatpush1.bf16.msra.mxu1 %v4753_v31 }
  0xe4   : > { %3396 = vmatprep.subr.bf16.mxu1 %v4762_v33  ;;  %v1203_v33 = vld [vmem:[%s5887_s22 + $0x448] sm:$0xff] }
  0xe5   : > { %5255 = vmatpush1.bf16.xpose.msra.mxu0 %v5254_v23  ;;  %v404_v23 = vld [vmem:[%s5564_s5 + $0x5e0] sm:$0xff]  ;;  %v4796_v37 = vcombine.high %v1203_v33, %v1207_v34  ;;  %v4795_v1 = vcombine.low %v1203_v33, %v1207_v34  ;;  %v6068_v33 = vld [vmem:[%s5887_s22 + $0x828] sm:$0xff] }
  0xe6   : > { %5258 = vmatprep.subr.msk.bf16.mxu0 %vm5568_vm1, %v5256_v25  ;;  %v1195_v25 = vld [vmem:[%s5887_s22 + $0x408] sm:$0xff]  ;;  %v5284_v30 = vpack.c.bf16 %v406_v24, %v404_v23 }
  0xe7   : > { %3397 = vmatpush1.bf16.msra.mxu1 %v4761_v41  ;;  %v4788_v31 = vcombine.high %v1195_v25, %v1199_v27  ;;  %v4787_v35 = vcombine.low %v1195_v25, %v1199_v27  ;;  %v1215_v41 = vld [vmem:[%s5887_s22 + $0x4a8] sm:$0xff] }
  0xe8   : > { %3398 = vmatprep.subr.bf16.mxu1 %v4770_v48  ;;  %v4803_v47 = vcombine.low %v1211_v40, %v1215_v41  ;;  %v1227_v48 = vld [vmem:[%s5887_s22 + $0x508] sm:$0xff] }
  0xe9   : > { %v1315_v24 = vld [vmem:[%s5887_s22 + $0x7c8] sm:$0xff] }
  0xea   : > { %v1319_v25 = vld [vmem:[%s5887_s22 + $0x7e8] sm:$0xff] }
  0xeb   : > { %3399 = vmatpush1.bf16.msra.mxu1 %v4769_v51  ;;  %v4907_v34 = vcombine.low %v1315_v24, %v1319_v25 }
  0xec   : > { %3400 = vmatprep.subr.bf16.mxu1 %v4778_v57 }
  0xed   : > { %5260 = vmatpush1.bf16.xpose.msra.mxu0 %v5259_v43  ;;  %v4804_v43 = vcombine.high %v1211_v40, %v1215_v41 }
  0xee   : > { %5263 = vmatprep.subr.msk.bf16.mxu0 %vm5568_vm1, %v5261_v44  ;;  %v1219_v44 = vld [vmem:[%s5887_s22 + $0x4c8] sm:$0xff] }
  0xef   : > { %3401 = vmatpush1.bf16.msra.mxu1 %v4777_v59  ;;  %v4811_v49 = vcombine.low %v1219_v44, %v1223_v45  ;;  %v1271_v59 = vld [vmem:[%s5887_s22 + $0x668] sm:$0xff] }
  0xf0   : > { %3441 = vmatprep.subr.bf16.mxu1 %v4786_v61 }
  0xf5   : > { %5265 = vmatpush1.bf16.xpose.msra.mxu0 %v5264_v56  ;;  %v1263_v56 = vld [vmem:[%s5887_s22 + $0x628] sm:$0xff] }
  0xf6   : > { %5268 = vmatprep.subr.msk.bf16.mxu0 %vm5568_vm1, %v5266_v58 }
  0xfd   : > { %5270 = vmatpush1.bf16.xpose.msra.mxu0 %v5269_v5  ;;  %v1287_v5 = vld [vmem:[%s5887_s22 + $0x6e8] sm:$0xff] }
  0xfe   : > { %5273 = vmatprep.subr.msk.bf16.mxu0 %vm5568_vm1, %v5271_v6  ;;  %v4867_v6 = vcombine.low %v1275_v62, %v1279_v63  ;;  %v4876_v7 = vcombine.high %v1283_v4, %v1287_v5  ;;  %v4875_v10 = vcombine.low %v1283_v4, %v1287_v5  ;;  %v1343_v4 = vld [vmem:[%s5887_s22 + $0x8a8] sm:$0xff] }
 0x105   : > { %5275 = vmatpush1.bf16.xpose.msra.mxu0 %v5274_v11  ;;  %v4884_v11 = vcombine.high %v1291_v8, %v1295_v9 }
 0x106   : > { %5278 = vmatprep.subr.msk.bf16.mxu0 %vm5568_vm1, %v5276_v13  ;;  %v1299_v13 = vld [vmem:[%s5887_s22 + $0x748] sm:$0xff] }
 0x107   : > { %v4892_v17 = vcombine.high %v1299_v13, %v1303_v14 }
 0x10d   : > { %5280 = vmatpush1.bf16.xpose.msra.mxu0 %v5279_v20  ;;  %v1311_v20 = vld [vmem:[%s5887_s22 + $0x7a8] sm:$0xff] }
 0x10e   : > { %5283 = vmatprep.subr.msk.bf16.mxu0 %vm5568_vm1, %v5281_v21  ;;  %v4891_v21 = vcombine.low %v1299_v13, %v1303_v14  ;;  %v4900_v23 = vcombine.high %v1307_v18, %v1311_v20  ;;  %v4899_v27 = vcombine.low %v1307_v18, %v1311_v20  ;;  %v1347_v20 = vld [vmem:[%s5887_s22 + $0x8c8] sm:$0xff] }
 0x115   : > { %5285 = vmatpush1.bf16.xpose.msra.mxu0 %v5284_v30  ;;  %v4908_v30 = vcombine.high %v1315_v24, %v1319_v25  ;;  %v1242_v24 = vld [vmem:[%s5887_s22 + $0x580] sm:$0xff] }
 0x116   : > { %3654 = vmatprep.subr.bf16.mxu0 %v4788_v31  ;;  %v6065_v31 = vld [vmem:[%s5887_s22 + $0x808] sm:$0xff]  ;;  %v1246_v25 = vld [vmem:[%s5887_s22 + $0x5a0] sm:$0xff] }
 0x11c   : > { %997 = vmatmul.mubr.f32.vlgmr.msra.gmra.mrb[14].mxu0 %v5771_v12  ;;  %v4812_v12 = vcombine.high %v1219_v44, %v1223_v45 }
 0x11d   : > { %4650 = vmatprep.mubr.msk.f32.mxu0 %vm408_vm0, %v5780_v16  ;;  %3655 = vmatpush1.bf16.msra.mxu0 %v4787_v35  ;;  %v1231_v16 = vld [vmem:[%s5887_s22 + $0x528] sm:$0xff]  ;;  %v4916_v35 = vcombine.high %v6065_v31, %v6068_v33 }
 0x11e   : > { %3656 = vmatprep.subr.bf16.mxu0 %v4796_v37  ;;  %v4819_v51 = vcombine.low %v1227_v48, %v1231_v16 }
 0x120   : > { %1003 = vmatmul.mubr.f32.gmra.mrb[16].mxu0 %v5788_v19  ;;  %v4820_v19 = vcombine.high %v1227_v48, %v1231_v16  ;;  %v1210_v48 = vld [vmem:[%s5887_s22 + $0x480] sm:$0xff] }
 0x121   : > { %4651 = vmatprep.mubr.msk.f32.mxu0 %vm408_vm0, %v5797_v22  ;;  %3657 = vmatpush1.bf16.msra.mxu0 %v4795_v1  ;;  %v1239_v22 = vld [vmem:[%s5887_s22 + $0x568] sm:$0xff]  ;;  %v1202_v1 = vld [vmem:[%s5887_s22 + $0x440] sm:$0xff] }
 0x122   : > { %3658 = vmatprep.subr.bf16.mxu0 %v4804_v43  ;;  %v4827_v53 = vcombine.low %v1235_v50, %v1239_v22  ;;  %v1206_v43 = vld [vmem:[%s5887_s22 + $0x460] sm:$0xff] }
 0x123   : > { %v1214_v16 = vld [vmem:[%s5887_s22 + $0x4a0] sm:$0xff] }
 0x124   : > { %1009 = vmatmul.mubr.f32.gmra.mrb[18].mxu0 %v5807_v26  ;;  %v4828_v26 = vcombine.high %v1235_v50, %v1239_v22  ;;  %v4793_v50 = vcombine.low %v1202_v1, %v1206_v43  ;;  %v4802_v22 = vcombine.high %v1210_v48, %v1214_v16 }
 0x125   : > { %4652 = vmatprep.mubr.msk.f32.mxu0 %vm408_vm0, %v5812_v28  ;;  %3659 = vmatpush1.bf16.msra.mxu0 %v4803_v47  ;;  %v1247_v28 = vld [vmem:[%s5887_s22 + $0x5a8] sm:$0xff] }
 0x126   : > { %3660 = vmatprep.subr.bf16.mxu0 %v4812_v12  ;;  %v4835_v55 = vcombine.low %v1243_v52, %v1247_v28  ;;  %v4794_v12 = vcombine.high %v1202_v1, %v1206_v43  ;;  %v4834_v1 = vcombine.high %v1242_v24, %v1246_v25  ;;  %v1250_v43 = vld [vmem:[%s5887_s22 + $0x5c0] sm:$0xff] }
 0x128   : > { %1015 = vmatmul.mubr.f32.gmra.mrb[20].mxu0 %v5820_v29  ;;  %v4836_v29 = vcombine.high %v1243_v52, %v1247_v28  ;;  %v1222_v52 = vld [vmem:[%s5887_s22 + $0x4e0] sm:$0xff] }
 0x129   : > { %4653 = vmatprep.mubr.msk.f32.mxu0 %vm408_vm0, %v5829_v32  ;;  %3661 = vmatpush1.bf16.msra.mxu0 %v4811_v49  ;;  %v1255_v32 = vld [vmem:[%s5887_s22 + $0x5e8] sm:$0xff] }
 0x12a   : > { %3662 = vmatprep.subr.bf16.mxu0 %v4820_v19  ;;  %v4843_v57 = vcombine.low %v1251_v54, %v1255_v32 }
 0x12c   : > { %1021 = vmatmul.mubr.f32.gmra.mrb[22].mxu0 %v5842_v36  ;;  %v4844_v36 = vcombine.high %v1251_v54, %v1255_v32  ;;  %v4801_v32 = vcombine.low %v1210_v48, %v1214_v16  ;;  %v1355_v48 = vld [vmem:[%s5887_s22 + $0x908] sm:$0xff] }
 0x12d   : > { %4654 = vmatprep.mubr.msk.f32.mxu0 %vm408_vm0, %v5847_v38  ;;  %3663 = vmatpush1.bf16.msra.mxu0 %v4819_v51  ;;  %v1259_v38 = vld [vmem:[%s5887_s22 + $0x608] sm:$0xff] }
 0x12e   : > { %3664 = vmatprep.subr.bf16.mxu0 %v4828_v26  ;;  %v4852_v58 = vcombine.high %v1259_v38, %v1263_v56  ;;  %v1218_v26 = vld [vmem:[%s5887_s22 + $0x4c0] sm:$0xff]  ;;  %v1359_v16 = vld [vmem:[%s5887_s22 + $0x928] sm:$0xff] }
 0x12f   : > { %v4810_v60 = vcombine.high %v1218_v26, %v1222_v52 }
 0x130   : > { %1027 = vmatmul.mubr.f32.gmra.mrb[24].mxu0 %v5858_v39  ;;  %v1267_v39 = vld [vmem:[%s5887_s22 + $0x648] sm:$0xff] }
 0x131   : > { %4655 = vmatprep.mubr.msk.f32.mxu0 %vm408_vm0, %v5867_v42  ;;  %3665 = vmatpush1.bf16.msra.mxu0 %v4827_v53  ;;  %v4851_v42 = vcombine.low %v1259_v38, %v1263_v56  ;;  %v4860_v61 = vcombine.high %v1267_v39, %v1271_v59  ;;  %v4859_v3 = vcombine.low %v1267_v39, %v1271_v59  ;;  %v1226_v38 = vld [vmem:[%s5887_s22 + $0x500] sm:$0xff] }
 0x132   : > { %3666 = vmatprep.subr.bf16.mxu0 %v4836_v29  ;;  %v1230_v56 = vld [vmem:[%s5887_s22 + $0x520] sm:$0xff] }
 0x133   : > { %v4817_v14 = vcombine.low %v1226_v38, %v1230_v56 }
 0x134   : > { %1033 = vmatmul.mubr.f32.gmra.mrb[26].mxu0 %v5880_v46  ;;  %v4868_v46 = vcombine.high %v1275_v62, %v1279_v63  ;;  %v4809_v62 = vcombine.low %v1218_v26, %v1222_v52  ;;  %v4948_v26 = vcombine.high %v1355_v48, %v1359_v16  ;;  %v1363_v52 = vld [vmem:[%s5887_s22 + $0x948] sm:$0xff] }
 0x135   : > { %3667 = vmatpush1.bf16.msra.mxu0 %v4835_v55 }
 0x136   : > { %3668 = vmatprep.subr.bf16.mxu0 %v4844_v36  ;;  %v1335_v36 = vld [vmem:[%s5887_s22 + $0x868] sm:$0xff] }
 0x139   : > { %3669 = vmatpush1.bf16.msra.mxu0 %v4843_v57 }
 0x13a   : > { %3670 = vmatprep.subr.bf16.mxu0 %v4852_v58 }
 0x13d   : > { %3671 = vmatpush1.bf16.msra.mxu0 %v4851_v42 }
 0x13e   : > { %3672 = vmatprep.subr.bf16.mxu0 %v4860_v61  ;;  %v4915_v61 = vcombine.low %v6065_v31, %v6068_v33 }
 0x141   : > { %3673 = vmatpush1.bf16.msra.mxu0 %v4859_v3  ;;  %v4818_v3 = vcombine.high %v1226_v38, %v1230_v56 }
 0x142   : > { %3674 = vmatprep.subr.bf16.mxu0 %v4868_v46  ;;  %v1339_v46 = vld [vmem:[%s5887_s22 + $0x888] sm:$0xff] }
 0x145   : > { %3675 = vmatpush1.bf16.msra.mxu0 %v4867_v6  ;;  %v1234_v6 = vld [vmem:[%s5887_s22 + $0x540] sm:$0xff] }
 0x146   : > { %3676 = vmatprep.subr.bf16.mxu0 %v4876_v7  ;;  %v1238_v7 = vld [vmem:[%s5887_s22 + $0x560] sm:$0xff] }
 0x147   : > { %v4826_v18 = vcombine.high %v1234_v6, %v1238_v7 }
 0x149   : > { %3677 = vmatpush1.bf16.msra.mxu0 %v4875_v10 }
 0x14a   : > { %3678 = vmatprep.subr.bf16.mxu0 %v4884_v11 }
 0x14d   : > { %3679 = vmatpush1.bf16.msra.mxu0 %v4883_v15 }
 0x14e   : > { %3680 = vmatprep.subr.bf16.mxu0 %v4892_v17  ;;  %v4932_v17 = vcombine.high %v1339_v46, %v1343_v4 }
 0x151   : > { %3681 = vmatpush1.bf16.msra.mxu0 %v4891_v21  ;;  %v1351_v21 = vld [vmem:[%s5887_s22 + $0x8e8] sm:$0xff] }
 0x152   : > { %3682 = vmatprep.subr.bf16.mxu0 %v4900_v23 }
 0x155   : > { %3683 = vmatpush1.bf16.msra.mxu0 %v4899_v27 }
 0x156   : > { %3684 = vmatprep.subr.bf16.mxu0 %v4908_v30 }
 0x159   : > { %3685 = vmatpush1.bf16.msra.mxu0 %v4907_v34  ;;  %v4931_v34 = vcombine.low %v1339_v46, %v1343_v4 }
 0x15a   : > { %3725 = vmatprep.subr.bf16.mxu0 %v4916_v35 }
 0x16f   : > { %v784_v37 = vpop.f32.mrb[0].mxu0 }
 0x170   : > { %v786_v40 = vpop.f32.mrb[1].mxu0 }
 0x173   : > { %v790_v41 = vpop.f32.mrb[2].mxu0  ;;  %v891_v51 = vpop.f32.mrb[0].mxu1 }
 0x174   : > { %v6074_v44 = vpack.c.bf16 %v790_v41, %v784_v37  ;;  %v792_v45 = vpop.f32.mrb[3].mxu0  ;;  %v893_v53 = vpop.f32.mrb[1].mxu1  ;;  %v4825_v37 = vcombine.low %v1234_v6, %v1238_v7  ;;  %v4940_v41 = vcombine.high %v1347_v20, %v1351_v21 }
 0x175   : > { %v6076_v47 = vpack.c.bf16 %v792_v45, %v786_v40 }
 0x177   : > { %3402 = vmatprep.mubr.bf16.mxu1 %v6076_v47  ;;  %v796_v49 = vpop.f32.mrb[4].mxu0  ;;  %v897_v0 = vpop.f32.mrb[2].mxu1 }
 0x178   : > { %3403 = vmatmul.mubr.bf16.vlgmr.msra.gmra.mrb[16].mxu1 %v6074_v44  ;;  %v798_v19 = vpop.f32.mrb[5].mxu0  ;;  %v6096_v58 = vpack.c.bf16 %v897_v0, %v891_v51  ;;  %v899_v39 = vpop.f32.mrb[3].mxu1 }
 0x179   : > { %3442 = vmatpush1.bf16.msra.mxu1 %v4785_v2  ;;  %v1331_v2 = vld [vmem:[%s5887_s22 + $0x848] sm:$0xff]  ;;  %v6099_v42 = vpack.c.bf16 %v899_v39, %v893_v53 }
 0x17a   : > { %3443 = vmatprep.subr.bf16.mxu1 %v4794_v12  ;;  %v4924_v63 = vcombine.high %v1331_v2, %v1335_v36  ;;  %v4923_v13 = vcombine.low %v1331_v2, %v1335_v36  ;;  %v1254_v12 = vld [vmem:[%s5887_s22 + $0x5e0] sm:$0xff]  ;;  %v4947_v2 = vcombine.low %v1355_v48, %v1359_v16  ;;  %v1371_v39 = vld [vmem:[%s5887_s22 + $0x988] sm:$0xff] }
 0x17b   : > { %v802_v28 = vpop.f32.mrb[6].mxu0  ;;  %3686 = vmatprep.mubr.bf16.mxu0 %v6099_v42  ;;  %v903_v5 = vpop.f32.mrb[4].mxu1  ;;  %v4842_v51 = vcombine.high %v1250_v43, %v1254_v12  ;;  %v4841_v38 = vcombine.low %v1250_v43, %v1254_v12  ;;  %v1290_v43 = vld [vmem:[%s5887_s22 + $0x700] sm:$0xff] }
 0x17c   : > { %v6087_v29 = vpack.c.bf16 %v802_v28, %v796_v49  ;;  %v804_v54 = vpop.f32.mrb[7].mxu0  ;;  %3687 = vmatmul.mubr.bf16.vlgmr.msra.gmra.mrb[28].mxu0 %v6096_v58  ;;  %v905_v9 = vpop.f32.mrb[5].mxu1  ;;  %v1367_v28 = vld [vmem:[%s5887_s22 + $0x968] sm:$0xff] }
 0x17d   : > { %3444 = vmatpush1.bf16.msra.mxu1 %v4793_v50  ;;  %v6089_v55 = vpack.c.bf16 %v804_v54, %v798_v19  ;;  %3726 = vmatpush1.bf16.msra.mxu0 %v4915_v61  ;;  %v4939_v50 = vcombine.low %v1347_v20, %v1351_v21  ;;  %v1258_v54 = vld [vmem:[%s5887_s22 + $0x600] sm:$0xff]  ;;  %v4956_v56 = vcombine.high %v1363_v52, %v1367_v28  ;;  %v1387_v21 = vld [vmem:[%s5887_s22 + $0xa08] sm:$0xff] }
 0x17e   : > { %3445 = vmatprep.subr.bf16.mxu1 %v4802_v22  ;;  %3727 = vmatprep.subr.bf16.mxu0 %v4924_v63  ;;  %v4833_v22 = vcombine.low %v1242_v24, %v1246_v25  ;;  %v1270_v63 = vld [vmem:[%s5887_s22 + $0x660] sm:$0xff]  ;;  %v4955_v46 = vcombine.low %v1363_v52, %v1367_v28 }
 0x17f   : > { %3412 = vmatprep.mubr.bf16.mxu1 %v6089_v55  ;;  %v808_v57 = vpop.f32.mrb[8].mxu0  ;;  %v909_v23 = vpop.f32.mrb[6].mxu1  ;;  %v1282_v25 = vld [vmem:[%s5887_s22 + $0x6c0] sm:$0xff] }
 0x180   : > { %3413 = vmatmul.mubr.bf16.gmra.mrb[20].mxu1 %v6087_v29  ;;  %v810_v59 = vpop.f32.mrb[9].mxu0  ;;  %v6118_v30 = vpack.c.bf16 %v909_v23, %v903_v5  ;;  %v911_v31 = vpop.f32.mrb[7].mxu1  ;;  %v1391_v23 = vld [vmem:[%s5887_s22 + $0xa28] sm:$0xff] }
 0x181   : > { %3446 = vmatpush1.bf16.msra.mxu1 %v4801_v32  ;;  %3728 = vmatpush1.bf16.msra.mxu0 %v4923_v13  ;;  %v6121_v35 = vpack.c.bf16 %v911_v31, %v905_v9  ;;  %v1262_v32 = vld [vmem:[%s5887_s22 + $0x620] sm:$0xff]  ;;  %v1383_v9 = vld [vmem:[%s5887_s22 + $0x9e8] sm:$0xff]  ;;  %v4979_v12 = vcombine.low %v1387_v21, %v1391_v23 }
 0x182   : > { %3447 = vmatprep.subr.bf16.mxu1 %v4810_v60  ;;  %3729 = vmatprep.subr.bf16.mxu0 %v4932_v17  ;;  %v4849_v5 = vcombine.low %v1258_v54, %v1262_v32  ;;  %v1278_v13 = vld [vmem:[%s5887_s22 + $0x6a0] sm:$0xff] }
 0x183   : > { %v814_v8 = vpop.f32.mrb[10].mxu0  ;;  %3696 = vmatprep.mubr.bf16.mxu0 %v6121_v35  ;;  %v915_v45 = vpop.f32.mrb[8].mxu1 }
 0x184   : > { %v6109_v10 = vpack.c.bf16 %v814_v8, %v808_v57  ;;  %v816_v11 = vpop.f32.mrb[11].mxu0  ;;  %3697 = vmatmul.mubr.bf16.gmra.mrb[32].mxu0 %v6118_v30  ;;  %v917_v49 = vpop.f32.mrb[9].mxu1  ;;  %v4850_v57 = vcombine.high %v1258_v54, %v1262_v32  ;;  %v1379_v8 = vld [vmem:[%s5887_s22 + $0x9c8] sm:$0xff] }
 0x185   : > { %3448 = vmatpush1.bf16.msra.mxu1 %v4809_v62  ;;  %v6111_v15 = vpack.c.bf16 %v816_v11, %v810_v59  ;;  %3730 = vmatpush1.bf16.msra.mxu0 %v4931_v34  ;;  %v1375_v59 = vld [vmem:[%s5887_s22 + $0x9a8] sm:$0xff]  ;;  %v1266_v62 = vld [vmem:[%s5887_s22 + $0x640] sm:$0xff]  ;;  %v4971_v31 = vcombine.low %v1379_v8, %v1383_v9  ;;  %v4980_v34 = vcombine.high %v1387_v21, %v1391_v23 }
 0x186   : > { %3449 = vmatprep.subr.bf16.mxu1 %v4818_v3  ;;  %3731 = vmatprep.subr.bf16.mxu0 %v4940_v41  ;;  %v4964_v6 = vcombine.high %v1371_v39, %v1375_v59  ;;  %v4858_v7 = vcombine.high %v1266_v62, %v1270_v63  ;;  %v1274_v11 = vld [vmem:[%s5887_s22 + $0x680] sm:$0xff]  ;;  %v4857_v17 = vcombine.low %v1266_v62, %v1270_v63  ;;  %v1395_v41 = vld [vmem:[%s5887_s22 + $0xa48] sm:$0xff] }
 0x187   : > { %3422 = vmatprep.mubr.bf16.mxu1 %v6111_v15  ;;  %v820_v27 = vpop.f32.mrb[12].mxu0  ;;  %v921_v53 = vpop.f32.mrb[10].mxu1  ;;  %v4866_v20 = vcombine.high %v1274_v11, %v1278_v13  ;;  %v1411_v32 = vld [vmem:[%s5887_s22 + $0xac8] sm:$0xff]  ;;  %v1314_v63 = vld [vmem:[%s5887_s22 + $0x7c0] sm:$0xff] }
 0x188   : > { %3423 = vmatmul.mubr.bf16.gmra.mrb[24].mxu1 %v6109_v10  ;;  %v822_v33 = vpop.f32.mrb[13].mxu0  ;;  %v6132_v19 = vpack.c.bf16 %v820_v27, %v820_v27  ;;  %v6138_v60 = vpack.c.bf16 %v921_v53, %v915_v45  ;;  %v923_v0 = vpop.f32.mrb[11].mxu1  ;;  %v1286_v27 = vld [vmem:[%s5887_s22 + $0x6e0] sm:$0xff]  ;;  %v1423_v62 = vld [vmem:[%s5887_s22 + $0xb28] sm:$0xff] }
 0x189   : > { %3450 = vmatpush1.bf16.msra.mxu1 %v4817_v14  ;;  %v6123_v40 = vpack.c.bf16 %v822_v33, %v822_v33  ;;  %3732 = vmatpush1.bf16.msra.mxu0 %v4939_v50  ;;  %v6141_v36 = vpack.c.bf16 %v923_v0, %v917_v49  ;;  %v4963_v14 = vcombine.low %v1371_v39, %v1375_v59  ;;  %v1294_v45 = vld [vmem:[%s5887_s22 + $0x720] sm:$0xff]  ;;  %v1403_v50 = vld [vmem:[%s5887_s22 + $0xa88] sm:$0xff] }
 0x18a   : > { %3451 = vmatprep.subr.bf16.mxu1 %v4826_v18  ;;  %3733 = vmatprep.subr.bf16.mxu0 %v4948_v26  ;;  %v4972_v18 = vcombine.high %v1379_v8, %v1383_v9  ;;  %v4865_v33 = vcombine.low %v1274_v11, %v1278_v13  ;;  %v4873_v48 = vcombine.low %v1282_v25, %v1286_v27  ;;  %v1302_v26 = vld [vmem:[%s5887_s22 + $0x760] sm:$0xff]  ;;  %v1415_v0 = vld [vmem:[%s5887_s22 + $0xae8] sm:$0xff] }
 0x18b   : > { %3432 = vmatprep.mubr.bf16.mxu1 %v6123_v40  ;;  %v927_v61 = vpop.f32.mrb[12].mxu1  ;;  %3706 = vmatprep.mubr.bf16.mxu0 %v6141_v36  ;;  %v4882_v49 = vcombine.high %v1290_v43, %v1294_v45  ;;  %v4881_v28 = vcombine.low %v1290_v43, %v1294_v45  ;;  %v5004_v39 = vcombine.high %v1411_v32, %v1415_v0  ;;  %v1427_v8 = vld [vmem:[%s5887_s22 + $0xb48] sm:$0xff]  ;;  %v1322_v11 = vld [vmem:[%s5887_s22 + $0x800] sm:$0xff] }
 0x18c   : > { %v929_v3 = vpop.f32.mrb[13].mxu1  ;;  %3707 = vmatmul.mubr.bf16.gmra.mrb[36].mxu0 %v6138_v60  ;;  %v6159_v24 = vpack.c.bf16 %v927_v61, %v927_v61  ;;  %v1419_v61 = vld [vmem:[%s5887_s22 + $0xb08] sm:$0xff]  ;;  %v1326_v13 = vld [vmem:[%s5887_s22 + $0x820] sm:$0xff] }
 0x18d   : > { %3452 = vmatpush1.bf16.msra.mxu1 %v4825_v37  ;;  %3734 = vmatpush1.bf16.msra.mxu0 %v4947_v2  ;;  %v6149_v4 = vpack.c.bf16 %v929_v3, %v929_v3  ;;  %v4874_v37 = vcombine.high %v1282_v25, %v1286_v27  ;;  %v1306_v2 = vld [vmem:[%s5887_s22 + $0x780] sm:$0xff]  ;;  %v1431_v9 = vld [vmem:[%s5887_s22 + $0xb68] sm:$0xff] }
 0x18e   : > { %3453 = vmatprep.subr.bf16.mxu1 %v4834_v1  ;;  %3735 = vmatprep.subr.bf16.mxu0 %v4956_v56  ;;  %v1399_v1 = vld [vmem:[%s5887_s22 + $0xa68] sm:$0xff]  ;;  %v1318_v3 = vld [vmem:[%s5887_s22 + $0x7e0] sm:$0xff] }
 0x18f   : > { %3716 = vmatprep.mubr.bf16.mxu0 %v6149_v4  ;;  %v4988_v16 = vcombine.high %v1395_v41, %v1399_v1  ;;  %v4987_v52 = vcombine.low %v1395_v41, %v1399_v1  ;;  %v1330_v21 = vld [vmem:[%s5887_s22 + $0x840] sm:$0xff]  ;;  %v1435_v25 = vld [vmem:[%s5887_s22 + $0xb88] sm:$0xff] }
 0x190   : > { %3433 = vmatmul.mubr.bf16.gmra.mrb[28].mxu1 %v6132_v19  ;;  %v1334_v23 = vld [vmem:[%s5887_s22 + $0x860] sm:$0xff]  ;;  %v1439_v27 = vld [vmem:[%s5887_s22 + $0xba8] sm:$0xff] }
 0x191   : > { %3454 = vmatpush1.bf16.msra.mxu1 %v4833_v22  ;;  %3473 = vmatprep.mubr.bf16.mxu1 %v6099_v42  ;;  %v1407_v22 = vld [vmem:[%s5887_s22 + $0xaa8] sm:$0xff]  ;;  %v1338_v43 = vld [vmem:[%s5887_s22 + $0x880] sm:$0xff] }
 0x192   : > { %3455 = vmatprep.subr.bf16.mxu1 %v4842_v51  ;;  %3736 = vmatpush1.bf16.msra.mxu0 %v4955_v46  ;;  %v1298_v51 = vld [vmem:[%s5887_s22 + $0x740] sm:$0xff]  ;;  %v4996_v53 = vcombine.high %v1403_v50, %v1407_v22  ;;  %v4995_v56 = vcombine.low %v1403_v50, %v1407_v22  ;;  %v5003_v46 = vcombine.low %v1411_v32, %v1415_v0  ;;  %v1443_v41 = vld [vmem:[%s5887_s22 + $0xbc8] sm:$0xff] }
 0x193   : > { %3737 = vmatprep.subr.bf16.mxu0 %v4964_v6  ;;  %v4890_v54 = vcombine.high %v1298_v51, %v1302_v26  ;;  %v5012_v6 = vcombine.high %v1419_v61, %v1423_v62  ;;  %v1447_v1 = vld [vmem:[%s5887_s22 + $0xbe8] sm:$0xff]  ;;  %v1342_v45 = vld [vmem:[%s5887_s22 + $0x8a0] sm:$0xff] }
 0x194   : > { %3717 = vmatmul.mubr.bf16.gmra.mrb[40].mxu0 %v6159_v24  ;;  %v1346_v50 = vld [vmem:[%s5887_s22 + $0x8c0] sm:$0xff] }
 0x195   : > { %3456 = vmatpush1.bf16.msra.mxu1 %v4841_v38  ;;  %v1310_v38 = vld [vmem:[%s5887_s22 + $0x7a0] sm:$0xff] }
 0x196   : > { %3457 = vmatprep.subr.bf16.mxu1 %v4850_v57  ;;  %3738 = vmatpush1.bf16.msra.mxu0 %v4963_v14  ;;  %v4889_v57 = vcombine.low %v1298_v51, %v1302_v26  ;;  %v4898_v59 = vcombine.high %v1306_v2, %v1310_v38  ;;  %v5011_v14 = vcombine.low %v1419_v61, %v1423_v62  ;;  %v1350_v22 = vld [vmem:[%s5887_s22 + $0x8e0] sm:$0xff]  ;;  %v6197_v51 = vld [vmem:[%s5887_s22 + $0x18] sm:$0xff] }
 0x197   : > { %3739 = vmatprep.subr.bf16.mxu0 %v4972_v18  ;;  %v5020_v18 = vcombine.high %v1427_v8, %v1431_v9  ;;  %v6200_v26 = vld [vmem:[%s5887_s22 + $0x38] sm:$0xff]  ;;  %v1354_v32 = vld [vmem:[%s5887_s22 + $0x900] sm:$0xff] }
 0x198   : > { %v1358_v0 = vld [vmem:[%s5887_s22 + $0x920] sm:$0xff] }
 0x199   : > { %3458 = vmatpush1.bf16.msra.mxu1 %v4849_v5  ;;  %v4897_v5 = vcombine.low %v1306_v2, %v1310_v38  ;;  %v4937_v2 = vcombine.low %v1346_v50, %v1350_v22  ;;  %v4946_v38 = vcombine.high %v1354_v32, %v1358_v0  ;;  %v1370_v61 = vld [vmem:[%s5887_s22 + $0x980] sm:$0xff] }
 0x19a   : > { %3459 = vmatprep.subr.bf16.mxu1 %v4858_v7  ;;  %3740 = vmatpush1.bf16.msra.mxu0 %v4971_v31  ;;  %v4906_v7 = vcombine.high %v1314_v63, %v1318_v3  ;;  %v5019_v31 = vcombine.low %v1427_v8, %v1431_v9  ;;  %v1374_v62 = vld [vmem:[%s5887_s22 + $0x9a0] sm:$0xff] }
 0x19b   : > { %3741 = vmatprep.subr.bf16.mxu0 %v4980_v34  ;;  %v4922_v34 = vcombine.high %v1330_v21, %v1334_v23  ;;  %v1386_v8 = vld [vmem:[%s5887_s22 + $0xa00] sm:$0xff] }
 0x19c   : > { %v1390_v9 = vld [vmem:[%s5887_s22 + $0xa20] sm:$0xff] }
 0x19d   : > { %3460 = vmatpush1.bf16.msra.mxu1 %v4857_v17  ;;  %v4905_v17 = vcombine.low %v1314_v63, %v1318_v3  ;;  %v4962_v3 = vcombine.high %v1370_v61, %v1374_v62 }
 0x19e   : > { %3461 = vmatprep.subr.bf16.mxu1 %v4866_v20  ;;  %3742 = vmatpush1.bf16.msra.mxu0 %v4979_v12  ;;  %v4914_v20 = vcombine.high %v1322_v11, %v1326_v13  ;;  %v5027_v12 = vcombine.low %v1435_v25, %v1439_v27 }
 0x19f   : > { %3743 = vmatprep.subr.bf16.mxu0 %v4988_v16  ;;  %v5036_v16 = vcombine.high %v1443_v41, %v1447_v1 }
 0x1a1   : > { %3462 = vmatpush1.bf16.msra.mxu1 %v4865_v33  ;;  %v4913_v33 = vcombine.low %v1322_v11, %v1326_v13  ;;  %v4978_v13 = vcombine.high %v1386_v8, %v1390_v9 }
 0x1a2   : > { %3463 = vmatprep.subr.bf16.mxu1 %v4874_v37  ;;  %3744 = vmatpush1.bf16.msra.mxu0 %v4987_v52  ;;  %v5028_v37 = vcombine.high %v1435_v25, %v1439_v27  ;;  %v5035_v52 = vcombine.low %v1443_v41, %v1447_v1  ;;  %v1418_v41 = vld [vmem:[%s5887_s22 + $0xb00] sm:$0xff] }
 0x1a3   : > { %3745 = vmatprep.subr.bf16.mxu0 %v4996_v53  ;;  %v4938_v53 = vcombine.high %v1346_v50, %v1350_v22  ;;  %v1422_v1 = vld [vmem:[%s5887_s22 + $0xb20] sm:$0xff] }
 0x1a4   : > { %v1434_v50 = vld [vmem:[%s5887_s22 + $0xb80] sm:$0xff] }
 0x1a5   : > { %3464 = vmatpush1.bf16.msra.mxu1 %v4873_v48  ;;  %v4921_v48 = vcombine.low %v1330_v21, %v1334_v23  ;;  %v1402_v21 = vld [vmem:[%s5887_s22 + $0xa80] sm:$0xff] }
 0x1a6   : > { %3465 = vmatprep.subr.bf16.mxu1 %v4882_v49  ;;  %3746 = vmatpush1.bf16.msra.mxu0 %v4995_v56  ;;  %v4930_v49 = vcombine.high %v1338_v43, %v1342_v45  ;;  %v1362_v56 = vld [vmem:[%s5887_s22 + $0x940] sm:$0xff] }
 0x1a7   : > { %3747 = vmatprep.subr.bf16.mxu0 %v5004_v39  ;;  %v4945_v39 = vcombine.low %v1354_v32, %v1358_v0  ;;  %v1406_v23 = vld [vmem:[%s5887_s22 + $0xaa0] sm:$0xff] }
 0x1a8   : > { %v4994_v27 = vcombine.high %v1402_v21, %v1406_v23  ;;  %v1438_v22 = vld [vmem:[%s5887_s22 + $0xba0] sm:$0xff] }
 0x1a9   : > { %3466 = vmatpush1.bf16.msra.mxu1 %v4881_v28  ;;  %v4929_v28 = vcombine.low %v1338_v43, %v1342_v45  ;;  %v5010_v45 = vcombine.high %v1418_v41, %v1422_v1  ;;  %v5025_v32 = vcombine.low %v1434_v50, %v1438_v22 }
 0x1aa   : > { %3467 = vmatprep.subr.bf16.mxu1 %v4890_v54  ;;  %3748 = vmatpush1.bf16.msra.mxu0 %v5003_v46  ;;  %v4664_v54 = vcombine.high %v6197_v51, %v6200_v26  ;;  %v1378_v46 = vld [vmem:[%s5887_s22 + $0x9c0] sm:$0xff] }
 0x1ab   : > { %3749 = vmatprep.subr.bf16.mxu0 %v5012_v6  ;;  %v4961_v6 = vcombine.low %v1370_v61, %v1374_v62  ;;  %v1075_v61 = vld [vmem:[%s5887_s22 + $0x48] sm:$0xff] }
 0x1ad   : > { %3468 = vmatpush1.bf16.msra.mxu1 %v4889_v57  ;;  %v1366_v57 = vld [vmem:[%s5887_s22 + $0x960] sm:$0xff] }
 0x1ae   : > { %3469 = vmatprep.subr.bf16.mxu1 %v4898_v59  ;;  %3750 = vmatpush1.bf16.msra.mxu0 %v5011_v14  ;;  %v4954_v59 = vcombine.high %v1362_v56, %v1366_v57  ;;  %v4953_v63 = vcombine.low %v1362_v56, %v1366_v57  ;;  %v1394_v14 = vld [vmem:[%s5887_s22 + $0xa40] sm:$0xff]  ;;  %v1071_v56 = vld [vmem:[%s5887_s22 + $0x28] sm:$0xff] }
 0x1af   : > { %3751 = vmatprep.subr.bf16.mxu0 %v5020_v18  ;;  %v4977_v18 = vcombine.low %v1386_v8, %v1390_v9  ;;  %v4663_v9 = vcombine.low %v6197_v51, %v6200_v26 }
 0x1b1   : > { %3470 = vmatpush1.bf16.msra.mxu1 %v4897_v5  ;;  %v1382_v5 = vld [vmem:[%s5887_s22 + $0x9e0] sm:$0xff] }
 0x1b2   : > { %3471 = vmatprep.subr.bf16.mxu1 %v4906_v7  ;;  %3752 = vmatpush1.bf16.msra.mxu0 %v5019_v31  ;;  %v4970_v7 = vcombine.high %v1378_v46, %v1382_v5  ;;  %v4969_v11 = vcombine.low %v1378_v46, %v1382_v5  ;;  %v1410_v31 = vld [vmem:[%s5887_s22 + $0xac0] sm:$0xff]  ;;  %v1081_v46 = vld [vmem:[%s5887_s22 + $0x78] sm:$0xff] }
 0x1b3   : > { %3753 = vmatprep.subr.bf16.mxu0 %v5028_v37 }
 0x1b5   : > { %3472 = vmatpush1.bf16.msra.mxu1 %v4905_v17  ;;  %v1398_v17 = vld [vmem:[%s5887_s22 + $0xa60] sm:$0xff] }
 0x1b6   : > { %3512 = vmatprep.subr.bf16.mxu1 %v4914_v20  ;;  %3754 = vmatpush1.bf16.msra.mxu0 %v5027_v12  ;;  %v4986_v20 = vcombine.high %v1394_v14, %v1398_v17  ;;  %v4985_v25 = vcombine.low %v1394_v14, %v1398_v17  ;;  %v1426_v12 = vld [vmem:[%s5887_s22 + $0xb40] sm:$0xff]  ;;  %v1083_v14 = vld [vmem:[%s5887_s22 + $0x88] sm:$0xff] }
 0x1b7   : > { %3755 = vmatprep.subr.bf16.mxu0 %v5036_v16  ;;  %v5009_v16 = vcombine.low %v1418_v41, %v1422_v1  ;;  %v1097_v41 = vld [vmem:[%s5887_s22 + $0xf8] sm:$0xff] }
 0x1b8   : > { %3474 = vmatmul.mubr.bf16.vlgmr.msra.gmra.mrb[16].mxu1 %v6096_v58 }
 0x1b9   : > { %3513 = vmatpush1.bf16.msra.mxu1 %v4913_v33  ;;  %3483 = vmatprep.mubr.bf16.mxu1 %v6121_v35  ;;  %v1414_v33 = vld [vmem:[%s5887_s22 + $0xae0] sm:$0xff] }
 0x1ba   : > { %3514 = vmatprep.subr.bf16.mxu1 %v4922_v34  ;;  %3756 = vmatpush1.bf16.msra.mxu0 %v5035_v52  ;;  %v4993_v34 = vcombine.low %v1402_v21, %v1406_v23  ;;  %v5002_v37 = vcombine.high %v1410_v31, %v1414_v33  ;;  %v5001_v43 = vcombine.low %v1410_v31, %v1414_v33  ;;  %v1089_v21 = vld [vmem:[%s5887_s22 + $0xb8] sm:$0xff]  ;;  %v1091_v31 = vld [vmem:[%s5887_s22 + $0xc8] sm:$0xff] }
 0x1bb   : > { %4009 = vmatprep.subr.bf16.mxu0 %v4664_v54  ;;  %v1446_v54 = vld [vmem:[%s5887_s22 + $0xbe0] sm:$0xff] }
 0x1bd   : > { %3515 = vmatpush1.bf16.msra.mxu1 %v4921_v48  ;;  %v1430_v48 = vld [vmem:[%s5887_s22 + $0xb60] sm:$0xff] }
 0x1be   : > { %3516 = vmatprep.subr.bf16.mxu1 %v4930_v49  ;;  %v5018_v49 = vcombine.high %v1426_v12, %v1430_v48  ;;  %v5017_v52 = vcombine.low %v1426_v12, %v1430_v48 }
 0x1c0   : > { %3484 = vmatmul.mubr.bf16.gmra.mrb[20].mxu1 %v6118_v30 }
 0x1c1   : > { %3517 = vmatpush1.bf16.msra.mxu1 %v4929_v28  ;;  %3493 = vmatprep.mubr.bf16.mxu1 %v6141_v36  ;;  %v5026_v28 = vcombine.high %v1434_v50, %v1438_v22  ;;  %v1099_v50 = vld [vmem:[%s5887_s22 + $0x108] sm:$0xff] }
 0x1c2   : > { %3518 = vmatprep.subr.bf16.mxu1 %v4938_v53  ;;  %v1442_v53 = vld [vmem:[%s5887_s22 + $0xbc0] sm:$0xff] }
 0x1c3   : > { %v5034_v0 = vcombine.high %v1442_v53, %v1446_v54 }
 0x1c5   : > { %3519 = vmatpush1.bf16.msra.mxu1 %v4937_v2 }
 0x1c6   : > { %3520 = vmatprep.subr.bf16.mxu1 %v4946_v38  ;;  %v1067_v38 = vld [vmem:[%s5887_s22 + $0x8] sm:$0xff] }
 0x1c7   : > { %v4659_v8 = vcombine.low %v1067_v38, %v1071_v56 }
 0x1c8   : > { %3494 = vmatmul.mubr.bf16.gmra.mrb[24].mxu1 %v6138_v60 }
 0x1c9   : > { %3521 = vmatpush1.bf16.msra.mxu1 %v4945_v39  ;;  %3503 = vmatprep.mubr.bf16.mxu1 %v6149_v4  ;;  %v5033_v39 = vcombine.low %v1442_v53, %v1446_v54  ;;  %v1105_v53 = vld [vmem:[%s5887_s22 + $0x138] sm:$0xff] }
 0x1ca   : > { %3522 = vmatprep.subr.bf16.mxu1 %v4954_v59  ;;  %v4660_v59 = vcombine.high %v1067_v38, %v1071_v56  ;;  %v1107_v56 = vld [vmem:[%s5887_s22 + $0x148] sm:$0xff] }
 0x1cd   : > { %3523 = vmatpush1.bf16.msra.mxu1 %v4953_v63  ;;  %v1079_v63 = vld [vmem:[%s5887_s22 + $0x68] sm:$0xff] }
 0x1ce   : > { %3524 = vmatprep.subr.bf16.mxu1 %v4962_v3  ;;  %v1077_v3 = vld [vmem:[%s5887_s22 + $0x58] sm:$0xff]  ;;  %v4667_v26 = vcombine.low %v1075_v61, %v1079_v63 }
 0x1cf   : > { %v4671_v23 = vcombine.low %v1077_v3, %v1081_v46 }
 0x1d0   : > { %3504 = vmatmul.mubr.bf16.gmra.mrb[28].mxu1 %v6159_v24 }
 0x1d1   : > { %3525 = vmatpush1.bf16.msra.mxu1 %v4961_v6 }
 0x1d2   : > { %3526 = vmatprep.subr.bf16.mxu1 %v4970_v7 }
 0x1d5   : > { %3527 = vmatpush1.bf16.msra.mxu1 %v4969_v11  ;;  %v4668_v11 = vcombine.high %v1075_v61, %v1079_v63  ;;  %v1113_v61 = vld [vmem:[%s5887_s22 + $0x178] sm:$0xff] }
 0x1d6   : > { %3528 = vmatprep.subr.bf16.mxu1 %v4978_v13  ;;  %v4672_v13 = vcombine.high %v1077_v3, %v1081_v46 }
 0x1d9   : > { %3529 = vmatpush1.bf16.msra.mxu1 %v4977_v18  ;;  %v1087_v18 = vld [vmem:[%s5887_s22 + $0xa8] sm:$0xff] }
 0x1da   : > { %3530 = vmatprep.subr.bf16.mxu1 %v4986_v20  ;;  %v1085_v20 = vld [vmem:[%s5887_s22 + $0x98] sm:$0xff]  ;;  %v4675_v12 = vcombine.low %v1083_v14, %v1087_v18 }
 0x1db   : > { %v4679_v48 = vcombine.low %v1085_v20, %v1089_v21 }
 0x1dd   : > { %3531 = vmatpush1.bf16.msra.mxu1 %v4985_v25  ;;  %v4676_v25 = vcombine.high %v1083_v14, %v1087_v18  ;;  %v1119_v14 = vld [vmem:[%s5887_s22 + $0x1a8] sm:$0xff]  ;;  %v1121_v18 = vld [vmem:[%s5887_s22 + $0x1b8] sm:$0xff] }
 0x1de   : > { %3532 = vmatprep.subr.bf16.mxu1 %v4994_v27  ;;  %v4680_v27 = vcombine.high %v1085_v20, %v1089_v21 }
 0x1e1   : > { %3533 = vmatpush1.bf16.msra.mxu1 %v4993_v34  ;;  %v1095_v34 = vld [vmem:[%s5887_s22 + $0xe8] sm:$0xff] }
 0x1e2   : > { %3534 = vmatprep.subr.bf16.mxu1 %v5002_v37  ;;  %v1093_v37 = vld [vmem:[%s5887_s22 + $0xd8] sm:$0xff] }
 0x1e5   : > { %3535 = vmatpush1.bf16.msra.mxu1 %v5001_v43 }
 0x1e6   : > { %3536 = vmatprep.subr.bf16.mxu1 %v5010_v45 }
 0x1e9   : > { %3537 = vmatpush1.bf16.msra.mxu1 %v5009_v16  ;;  %v4684_v16 = vcombine.high %v1091_v31, %v1095_v34 }
 0x1ea   : > { %3538 = vmatprep.subr.bf16.mxu1 %v5018_v49  ;;  %v4688_v49 = vcombine.high %v1093_v37, %v1097_v41 }
 0x1ed   : > { %3539 = vmatpush1.bf16.msra.mxu1 %v5017_v52  ;;  %v1103_v52 = vld [vmem:[%s5887_s22 + $0x128] sm:$0xff] }
 0x1ee   : > { %3540 = vmatprep.subr.bf16.mxu1 %v5026_v28  ;;  %v1101_v28 = vld [vmem:[%s5887_s22 + $0x118] sm:$0xff]  ;;  %v4691_v46 = vcombine.low %v1099_v50, %v1103_v52 }
 0x1ef   : > { %v998_v2 = vpop.f32.mrb[14].mxu0  ;;  %v4696_v38 = vcombine.high %v1101_v28, %v1105_v53 }
 0x1f0   : > { %v1000_v57 = vpop.f32.mrb[15].mxu0 }
 0x1f1   : > { %3541 = vmatpush1.bf16.msra.mxu1 %v5025_v32  ;;  %v4683_v32 = vcombine.low %v1091_v31, %v1095_v34  ;;  %v1125_v34 = vld [vmem:[%s5887_s22 + $0x1d8] sm:$0xff] }
 0x1f2   : > { %3542 = vmatprep.subr.bf16.mxu1 %v5034_v0  ;;  %v4687_v0 = vcombine.low %v1093_v37, %v1097_v41  ;;  %v1129_v37 = vld [vmem:[%s5887_s22 + $0x1f8] sm:$0xff] }
 0x1f3   : > { %v1004_v62 = vpop.f32.mrb[16].mxu0 }
 0x1f4   : > { %v6239_v5 = vpack.c.bf16 %v1004_v62, %v998_v2  ;;  %v1006_v6 = vpop.f32.mrb[17].mxu0  ;;  %v4692_v2 = vcombine.high %v1099_v50, %v1103_v52  ;;  %v1133_v50 = vld [vmem:[%s5887_s22 + $0x218] sm:$0xff] }
 0x1f5   : > { %v6241_v7 = vpack.c.bf16 %v1006_v6, %v1000_v57  ;;  %3543 = vmatpush1.bf16.msra.mxu1 %v5033_v39  ;;  %v1111_v39 = vld [vmem:[%s5887_s22 + $0x168] sm:$0xff]  ;;  %v4695_v6 = vcombine.low %v1101_v28, %v1105_v53  ;;  %v4719_v28 = vcombine.low %v1125_v34, %v1129_v37 }
 0x1f6   : > { %3583 = vmatprep.subr.bf16.mxu1 %v4660_v59  ;;  %v1109_v59 = vld [vmem:[%s5887_s22 + $0x158] sm:$0xff]  ;;  %v4699_v21 = vcombine.low %v1107_v56, %v1111_v39 }
 0x1f7   : > { %3544 = vmatprep.mubr.bf16.mxu1 %v6241_v7  ;;  %3757 = vmatprep.mubr.bf16.mxu0 %v6241_v7  ;;  %v1010_v17 = vpop.f32.mrb[18].mxu0 }
 0x1f8   : > { %3545 = vmatmul.mubr.bf16.vlgmr.msra.gmra.mrb[16].mxu1 %v6239_v5  ;;  %3758 = vmatmul.mubr.bf16.vlgmr.msra.gmra.mrb[28].mxu0 %v6239_v5  ;;  %v1012_v51 = vpop.f32.mrb[19].mxu0 }
 0x1f9   : > { %3584 = vmatpush1.bf16.msra.mxu1 %v4659_v8  ;;  %4010 = vmatpush1.bf16.msra.mxu0 %v4663_v9  ;;  %v4700_v8 = vcombine.high %v1107_v56, %v1111_v39  ;;  %v4704_v9 = vcombine.high %v1109_v59, %v1113_v61 }
 0x1fa   : > { %3585 = vmatprep.subr.bf16.mxu1 %v4668_v11  ;;  %4011 = vmatprep.subr.bf16.mxu0 %v4672_v13  ;;  %v1115_v11 = vld [vmem:[%s5887_s22 + $0x188] sm:$0xff] }
 0x1fb   : > { %v1016_v33 = vpop.f32.mrb[20].mxu0  ;;  %v4707_v41 = vcombine.low %v1115_v11, %v1119_v14 }
 0x1fc   : > { %v6257_v1 = vpack.c.bf16 %v1016_v33, %v1010_v17  ;;  %v1018_v43 = vpop.f32.mrb[21].mxu0  ;;  %v1117_v17 = vld [vmem:[%s5887_s22 + $0x198] sm:$0xff]  ;;  %v1127_v33 = vld [vmem:[%s5887_s22 + $0x1e8] sm:$0xff] }
 0x1fd   : > { %v6259_v45 = vpack.c.bf16 %v1018_v43, %v1012_v51  ;;  %3586 = vmatpush1.bf16.msra.mxu1 %v4667_v26  ;;  %4012 = vmatpush1.bf16.msra.mxu0 %v4671_v23  ;;  %v4703_v51 = vcombine.low %v1109_v59, %v1113_v61  ;;  %v4708_v23 = vcombine.high %v1115_v11, %v1119_v14  ;;  %v1147_v61 = vld [vmem:[%s5887_s22 + $0x288] sm:$0xff] }
 0x1fe   : > { %3587 = vmatprep.subr.bf16.mxu1 %v4676_v25  ;;  %4013 = vmatprep.subr.bf16.mxu0 %v4680_v27  ;;  %v4712_v25 = vcombine.high %v1117_v17, %v1121_v18  ;;  %v1123_v27 = vld [vmem:[%s5887_s22 + $0x1c8] sm:$0xff]  ;;  %v4711_v43 = vcombine.low %v1117_v17, %v1121_v18  ;;  %v1157_v18 = vld [vmem:[%s5887_s22 + $0x2d8] sm:$0xff] }
 0x1ff   : > { %3554 = vmatprep.mubr.bf16.mxu1 %v6259_v45  ;;  %3767 = vmatprep.mubr.bf16.mxu0 %v6259_v45  ;;  %v1022_v22 = vpop.f32.mrb[22].mxu0  ;;  %v4715_v52 = vcombine.low %v1123_v27, %v1127_v33  ;;  %v1155_v14 = vld [vmem:[%s5887_s22 + $0x2c8] sm:$0xff] }
 0x200   : > { %3555 = vmatmul.mubr.bf16.gmra.mrb[20].mxu1 %v6257_v1  ;;  %3768 = vmatmul.mubr.bf16.gmra.mrb[32].mxu0 %v6257_v1  ;;  %v1024_v54 = vpop.f32.mrb[23].mxu0  ;;  %v1159_v17 = vld [vmem:[%s5887_s22 + $0x2e8] sm:$0xff] }
 0x201   : > { %3588 = vmatpush1.bf16.msra.mxu1 %v4675_v12  ;;  %4014 = vmatpush1.bf16.msra.mxu0 %v4679_v48  ;;  %v1131_v12 = vld [vmem:[%s5887_s22 + $0x208] sm:$0xff]  ;;  %v4716_v48 = vcombine.high %v1123_v27, %v1127_v33 }
 0x202   : > { %3589 = vmatprep.subr.bf16.mxu1 %v4684_v16  ;;  %4015 = vmatprep.subr.bf16.mxu0 %v4688_v49  ;;  %v4720_v16 = vcombine.high %v1125_v34, %v1129_v37  ;;  %v1135_v49 = vld [vmem:[%s5887_s22 + $0x228] sm:$0xff]  ;;  %v1165_v34 = vld [vmem:[%s5887_s22 + $0x318] sm:$0xff] }
 0x203   : > { %v1028_v57 = vpop.f32.mrb[24].mxu0  ;;  %v4724_v53 = vcombine.high %v1131_v12, %v1135_v49  ;;  %v4723_v56 = vcombine.low %v1131_v12, %v1135_v49  ;;  %v1163_v27 = vld [vmem:[%s5887_s22 + $0x308] sm:$0xff]  ;;  %v1169_v37 = vld [vmem:[%s5887_s22 + $0x338] sm:$0xff] }
 0x204   : > { %v6273_v62 = vpack.c.bf16 %v1028_v57, %v1022_v22  ;;  %v1030_v63 = vpop.f32.mrb[25].mxu0  ;;  %v1137_v22 = vld [vmem:[%s5887_s22 + $0x238] sm:$0xff]  ;;  %v1167_v33 = vld [vmem:[%s5887_s22 + $0x328] sm:$0xff] }
 0x205   : > { %v6275_v3 = vpack.c.bf16 %v1030_v63, %v1024_v54  ;;  %3590 = vmatpush1.bf16.msra.mxu1 %v4683_v32  ;;  %4016 = vmatpush1.bf16.msra.mxu0 %v4687_v0  ;;  %v4728_v54 = vcombine.high %v1133_v50, %v1137_v22  ;;  %v1139_v32 = vld [vmem:[%s5887_s22 + $0x248] sm:$0xff]  ;;  %v4727_v57 = vcombine.low %v1133_v50, %v1137_v22  ;;  %v1173_v50 = vld [vmem:[%s5887_s22 + $0x358] sm:$0xff] }
 0x206   : > { %3591 = vmatprep.subr.bf16.mxu1 %v4692_v2  ;;  %4017 = vmatprep.subr.bf16.mxu0 %v4696_v38  ;;  %v1143_v0 = vld [vmem:[%s5887_s22 + $0x268] sm:$0xff]  ;;  %v1141_v2 = vld [vmem:[%s5887_s22 + $0x258] sm:$0xff]  ;;  %v4756_v12 = vcombine.high %v1163_v27, %v1167_v33 }
 0x207   : > { %3564 = vmatprep.mubr.bf16.mxu1 %v6275_v3  ;;  %3777 = vmatprep.mubr.bf16.mxu0 %v6275_v3  ;;  %v1034_v13 = vpop.f32.mrb[26].mxu0  ;;  %v1145_v38 = vld [vmem:[%s5887_s22 + $0x278] sm:$0xff]  ;;  %v4732_v39 = vcombine.high %v1139_v32, %v1143_v0  ;;  %v1151_v63 = vld [vmem:[%s5887_s22 + $0x2a8] sm:$0xff] }
 0x208   : > { %3565 = vmatmul.mubr.bf16.gmra.mrb[24].mxu1 %v6273_v62  ;;  %3778 = vmatmul.mubr.bf16.gmra.mrb[36].mxu0 %v6273_v62  ;;  %v1036_v20 = vpop.f32.mrb[27].mxu0  ;;  %v6290_v31 = vpack.c.bf16 %v1034_v13, %v1034_v13  ;;  %v4736_v59 = vcombine.high %v1141_v2, %v1145_v38  ;;  %v4740_v11 = vcombine.high %v1147_v61, %v1151_v63  ;;  %v1175_v49 = vld [vmem:[%s5887_s22 + $0x368] sm:$0xff]  ;;  %v1177_v22 = vld [vmem:[%s5887_s22 + $0x378] sm:$0xff] }
 0x209   : > { %3592 = vmatpush1.bf16.msra.mxu1 %v4691_v46  ;;  %4018 = vmatpush1.bf16.msra.mxu0 %v4695_v6  ;;  %v6285_v26 = vpack.c.bf16 %v1036_v20, %v1036_v20  ;;  %v1149_v46 = vld [vmem:[%s5887_s22 + $0x298] sm:$0xff] }
 0x20a   : > { %3593 = vmatprep.subr.bf16.mxu1 %v4700_v8  ;;  %4019 = vmatprep.subr.bf16.mxu0 %v4704_v9  ;;  %v1153_v6 = vld [vmem:[%s5887_s22 + $0x2b8] sm:$0xff]  ;;  %v4731_v8 = vcombine.low %v1139_v32, %v1143_v0  ;;  %v4735_v9 = vcombine.low %v1141_v2, %v1145_v38  ;;  %v1179_v32 = vld [vmem:[%s5887_s22 + $0x388] sm:$0xff] }
 0x20b   : > { %3574 = vmatprep.mubr.bf16.mxu1 %v6285_v26  ;;  %3787 = vmatprep.mubr.bf16.mxu0 %v6285_v26  ;;  %v4744_v13 = vcombine.high %v1149_v46, %v1153_v6  ;;  %v1161_v20 = vld [vmem:[%s5887_s22 + $0x2f8] sm:$0xff]  ;;  %v1183_v0 = vld [vmem:[%s5887_s22 + $0x3a8] sm:$0xff] }
 0x20c   : > { %v1181_v2 = vld [vmem:[%s5887_s22 + $0x398] sm:$0xff] }
 0x20d   : > { %3594 = vmatpush1.bf16.msra.mxu1 %v4699_v21  ;;  %4020 = vmatpush1.bf16.msra.mxu0 %v4703_v51  ;;  %v4739_v21 = vcombine.low %v1147_v61, %v1151_v63  ;;  %v4743_v51 = vcombine.low %v1149_v46, %v1153_v6  ;;  %v1185_v38 = vld [vmem:[%s5887_s22 + $0x3b8] sm:$0xff]  ;;  %v1187_v61 = vld [vmem:[%s5887_s22 + $0x3c8] sm:$0xff] }
 0x20e   : > { %3595 = vmatprep.subr.bf16.mxu1 %v4708_v23  ;;  %4021 = vmatprep.subr.bf16.mxu0 %v4712_v25  ;;  %v4748_v23 = vcombine.high %v1155_v14, %v1159_v17  ;;  %v4752_v25 = vcombine.high %v1157_v18, %v1161_v20  ;;  %v1191_v63 = vld [vmem:[%s5887_s22 + $0x3e8] sm:$0xff]  ;;  %v1189_v46 = vld [vmem:[%s5887_s22 + $0x3d8] sm:$0xff] }
 0x20f   : > { %v1193_v6 = vld [vmem:[%s5887_s22 + $0x3f8] sm:$0xff] }
 0x210   : > { %3575 = vmatmul.mubr.bf16.gmra.mrb[28].mxu1 %v6290_v31  ;;  %3788 = vmatmul.mubr.bf16.gmra.mrb[40].mxu0 %v6290_v31 }
 0x211   : > { %3596 = vmatpush1.bf16.msra.mxu1 %v4707_v41  ;;  %4022 = vmatpush1.bf16.msra.mxu0 %v4711_v43  ;;  %v4747_v41 = vcombine.low %v1155_v14, %v1159_v17  ;;  %v4751_v43 = vcombine.low %v1157_v18, %v1161_v20  ;;  %v1068_v14 = vld [vmem:[%s5887_s22 + $0x10] sm:$0xff]  ;;  %v1197_v18 = vld [vmem:[%s5887_s22 + $0x418] sm:$0xff] }
 0x212   : > { %3615 = vmatprep.mubr.bf16.mxu1 %v6076_v47  ;;  %4041 = vmatprep.mubr.bf16.mxu0 %v6076_v47  ;;  %v1072_v17 = vld [vmem:[%s5887_s22 + $0x30] sm:$0xff]  ;;  %v1201_v20 = vld [vmem:[%s5887_s22 + $0x438] sm:$0xff] }
 0x213   : > { %3597 = vmatprep.subr.bf16.mxu1 %v4716_v48  ;;  %4023 = vmatprep.subr.bf16.mxu0 %v4720_v16  ;;  %v4760_v48 = vcombine.high %v1165_v34, %v1169_v37  ;;  %v1171_v16 = vld [vmem:[%s5887_s22 + $0x348] sm:$0xff] }
 0x215   : > { %3598 = vmatpush1.bf16.msra.mxu1 %v4715_v52  ;;  %4024 = vmatpush1.bf16.msra.mxu0 %v4719_v28  ;;  %v4755_v52 = vcombine.low %v1163_v27, %v1167_v33  ;;  %v4759_v28 = vcombine.low %v1165_v34, %v1169_v37  ;;  %v1076_v27 = vld [vmem:[%s5887_s22 + $0x50] sm:$0xff]  ;;  %v1205_v34 = vld [vmem:[%s5887_s22 + $0x458] sm:$0xff] }
 0x216   : > { %3599 = vmatprep.subr.bf16.mxu1 %v4724_v53  ;;  %4025 = vmatprep.subr.bf16.mxu0 %v4728_v54  ;;  %v4764_v53 = vcombine.high %v1171_v16, %v1175_v49  ;;  %v4768_v54 = vcombine.high %v1173_v50, %v1177_v22  ;;  %v1080_v33 = vld [vmem:[%s5887_s22 + $0x70] sm:$0xff]  ;;  %v1209_v37 = vld [vmem:[%s5887_s22 + $0x478] sm:$0xff] }
 0x219   : > { %3600 = vmatpush1.bf16.msra.mxu1 %v4723_v56  ;;  %4026 = vmatpush1.bf16.msra.mxu0 %v4727_v57  ;;  %v4763_v56 = vcombine.low %v1171_v16, %v1175_v49  ;;  %v4767_v57 = vcombine.low %v1173_v50, %v1177_v22  ;;  %v1084_v16 = vld [vmem:[%s5887_s22 + $0x90] sm:$0xff]  ;;  %v1213_v50 = vld [vmem:[%s5887_s22 + $0x498] sm:$0xff] }
 0x21a   : > { %3601 = vmatprep.subr.bf16.mxu1 %v4732_v39  ;;  %4027 = vmatprep.subr.bf16.mxu0 %v4736_v59  ;;  %v4772_v39 = vcombine.high %v1179_v32, %v1183_v0  ;;  %v4776_v59 = vcombine.high %v1181_v2, %v1185_v38  ;;  %v1088_v49 = vld [vmem:[%s5887_s22 + $0xb0] sm:$0xff]  ;;  %v1217_v22 = vld [vmem:[%s5887_s22 + $0x4b8] sm:$0xff] }
 0x21d   : > { %3602 = vmatpush1.bf16.msra.mxu1 %v4731_v8  ;;  %4028 = vmatpush1.bf16.msra.mxu0 %v4735_v9  ;;  %v4771_v8 = vcombine.low %v1179_v32, %v1183_v0  ;;  %v4775_v9 = vcombine.low %v1181_v2, %v1185_v38  ;;  %v1092_v32 = vld [vmem:[%s5887_s22 + $0xd0] sm:$0xff]  ;;  %v1221_v2 = vld [vmem:[%s5887_s22 + $0x4d8] sm:$0xff] }
 0x21e   : > { %3603 = vmatprep.subr.bf16.mxu1 %v4740_v11  ;;  %4029 = vmatprep.subr.bf16.mxu0 %v4744_v13  ;;  %v4780_v11 = vcombine.high %v1187_v61, %v1191_v63  ;;  %v4784_v13 = vcombine.high %v1189_v46, %v1193_v6  ;;  %v1096_v0 = vld [vmem:[%s5887_s22 + $0xf0] sm:$0xff]  ;;  %v1225_v38 = vld [vmem:[%s5887_s22 + $0x4f8] sm:$0xff] }
 0x221   : > { %3604 = vmatpush1.bf16.msra.mxu1 %v4739_v21  ;;  %4030 = vmatpush1.bf16.msra.mxu0 %v4743_v51  ;;  %v4779_v21 = vcombine.low %v1187_v61, %v1191_v63  ;;  %v4783_v51 = vcombine.low %v1189_v46, %v1193_v6  ;;  %v1100_v61 = vld [vmem:[%s5887_s22 + $0x110] sm:$0xff]  ;;  %v1229_v46 = vld [vmem:[%s5887_s22 + $0x518] sm:$0xff] }
 0x222   : > { %3605 = vmatprep.subr.bf16.mxu1 %v4748_v23  ;;  %4031 = vmatprep.subr.bf16.mxu0 %v4752_v25  ;;  %v4662_v23 = vcombine.high %v1068_v14, %v1072_v17  ;;  %v4792_v25 = vcombine.high %v1197_v18, %v1201_v20  ;;  %v1104_v63 = vld [vmem:[%s5887_s22 + $0x130] sm:$0xff]  ;;  %v1233_v6 = vld [vmem:[%s5887_s22 + $0x538] sm:$0xff] }
 0x225   : > { %3606 = vmatpush1.bf16.msra.mxu1 %v4747_v41  ;;  %4032 = vmatpush1.bf16.msra.mxu0 %v4751_v43  ;;  %v4661_v41 = vcombine.low %v1068_v14, %v1072_v17  ;;  %v4791_v43 = vcombine.low %v1197_v18, %v1201_v20  ;;  %v1108_v14 = vld [vmem:[%s5887_s22 + $0x150] sm:$0xff]  ;;  %v1237_v18 = vld [vmem:[%s5887_s22 + $0x558] sm:$0xff] }
 0x226   : > { %3607 = vmatprep.subr.bf16.mxu1 %v4756_v12  ;;  %4033 = vmatprep.subr.bf16.mxu0 %v4760_v48  ;;  %v4670_v12 = vcombine.high %v1076_v27, %v1080_v33  ;;  %v4800_v48 = vcombine.high %v1205_v34, %v1209_v37  ;;  %v1112_v17 = vld [vmem:[%s5887_s22 + $0x170] sm:$0xff]  ;;  %v1241_v20 = vld [vmem:[%s5887_s22 + $0x578] sm:$0xff] }
 0x229   : > { %3608 = vmatpush1.bf16.msra.mxu1 %v4755_v52  ;;  %4034 = vmatpush1.bf16.msra.mxu0 %v4759_v28  ;;  %v4669_v52 = vcombine.low %v1076_v27, %v1080_v33  ;;  %v4799_v28 = vcombine.low %v1205_v34, %v1209_v37  ;;  %v1116_v27 = vld [vmem:[%s5887_s22 + $0x190] sm:$0xff]  ;;  %v1245_v34 = vld [vmem:[%s5887_s22 + $0x598] sm:$0xff] }
 0x22a   : > { %3609 = vmatprep.subr.bf16.mxu1 %v4764_v53  ;;  %4035 = vmatprep.subr.bf16.mxu0 %v4768_v54  ;;  %v4678_v53 = vcombine.high %v1084_v16, %v1088_v49  ;;  %v4808_v54 = vcombine.high %v1213_v50, %v1217_v22  ;;  %v1120_v33 = vld [vmem:[%s5887_s22 + $0x1b0] sm:$0xff]  ;;  %v1249_v37 = vld [vmem:[%s5887_s22 + $0x5b8] sm:$0xff] }
 0x22d   : > { %3610 = vmatpush1.bf16.msra.mxu1 %v4763_v56  ;;  %4036 = vmatpush1.bf16.msra.mxu0 %v4767_v57  ;;  %v4677_v56 = vcombine.low %v1084_v16, %v1088_v49  ;;  %v4807_v57 = vcombine.low %v1213_v50, %v1217_v22  ;;  %v1124_v16 = vld [vmem:[%s5887_s22 + $0x1d0] sm:$0xff]  ;;  %v1253_v50 = vld [vmem:[%s5887_s22 + $0x5d8] sm:$0xff] }
 0x22e   : > { %3611 = vmatprep.subr.bf16.mxu1 %v4772_v39  ;;  %4037 = vmatprep.subr.bf16.mxu0 %v4776_v59  ;;  %v4686_v39 = vcombine.high %v1092_v32, %v1096_v0  ;;  %v4816_v59 = vcombine.high %v1221_v2, %v1225_v38  ;;  %v1128_v49 = vld [vmem:[%s5887_s22 + $0x1f0] sm:$0xff]  ;;  %v1257_v22 = vld [vmem:[%s5887_s22 + $0x5f8] sm:$0xff] }
 0x231   : > { %3612 = vmatpush1.bf16.msra.mxu1 %v4771_v8  ;;  %4038 = vmatpush1.bf16.msra.mxu0 %v4775_v9  ;;  %v4685_v8 = vcombine.low %v1092_v32, %v1096_v0  ;;  %v4815_v9 = vcombine.low %v1221_v2, %v1225_v38  ;;  %v1132_v32 = vld [vmem:[%s5887_s22 + $0x210] sm:$0xff]  ;;  %v1261_v2 = vld [vmem:[%s5887_s22 + $0x618] sm:$0xff] }
 0x232   : > { %3613 = vmatprep.subr.bf16.mxu1 %v4780_v11  ;;  %4039 = vmatprep.subr.bf16.mxu0 %v4784_v13  ;;  %v4694_v11 = vcombine.high %v1100_v61, %v1104_v63  ;;  %v4824_v13 = vcombine.high %v1229_v46, %v1233_v6  ;;  %v1136_v0 = vld [vmem:[%s5887_s22 + $0x230] sm:$0xff]  ;;  %v1265_v38 = vld [vmem:[%s5887_s22 + $0x638] sm:$0xff] }
 0x235   : > { %3614 = vmatpush1.bf16.msra.mxu1 %v4779_v21  ;;  %4040 = vmatpush1.bf16.msra.mxu0 %v4783_v51  ;;  %v4693_v21 = vcombine.low %v1100_v61, %v1104_v63  ;;  %v4823_v51 = vcombine.low %v1229_v46, %v1233_v6  ;;  %v1140_v61 = vld [vmem:[%s5887_s22 + $0x250] sm:$0xff]  ;;  %v1269_v46 = vld [vmem:[%s5887_s22 + $0x658] sm:$0xff] }
 0x236   : > { %3796 = vmatprep.subr.bf16.mxu1 %v4662_v23  ;;  %4080 = vmatprep.subr.bf16.mxu0 %v4792_v25  ;;  %v4702_v23 = vcombine.high %v1108_v14, %v1112_v17  ;;  %v4832_v25 = vcombine.high %v1237_v18, %v1241_v20  ;;  %v1144_v63 = vld [vmem:[%s5887_s22 + $0x270] sm:$0xff]  ;;  %v1273_v6 = vld [vmem:[%s5887_s22 + $0x678] sm:$0xff] }
 0x238   : > { %3616 = vmatmul.mubr.bf16.vlgmr.msra.gmra.mrb[32].mxu1 %v6074_v44  ;;  %4042 = vmatmul.mubr.bf16.vlgmr.msra.gmra.mrb[44].mxu0 %v6074_v44 }
 0x239   : > { %3625 = vmatprep.mubr.bf16.mxu1 %v6089_v55  ;;  %3797 = vmatpush1.bf16.msra.mxu1 %v4661_v41  ;;  %v4701_v41 = vcombine.low %v1108_v14, %v1112_v17  ;;  %v1152_v14 = vld [vmem:[%s5887_s22 + $0x2b0] sm:$0xff]  ;;  %v1277_v17 = vld [vmem:[%s5887_s22 + $0x698] sm:$0xff] }
 0x23a   : > { %4051 = vmatprep.mubr.bf16.mxu0 %v6089_v55  ;;  %4081 = vmatpush1.bf16.msra.mxu0 %v4791_v43  ;;  %v4831_v43 = vcombine.low %v1237_v18, %v1241_v20  ;;  %v1281_v18 = vld [vmem:[%s5887_s22 + $0x6b8] sm:$0xff]  ;;  %v4733_v20 = vcombine.low %v1140_v61, %v1144_v63 }
 0x23b   : > { %3798 = vmatprep.subr.bf16.mxu1 %v4670_v12  ;;  %4082 = vmatprep.subr.bf16.mxu0 %v4800_v48  ;;  %v4710_v12 = vcombine.high %v1116_v27, %v1120_v33  ;;  %v4840_v48 = vcombine.high %v1245_v34, %v1249_v37 }
 0x23d   : > { %3799 = vmatpush1.bf16.msra.mxu1 %v4669_v52  ;;  %v4709_v52 = vcombine.low %v1116_v27, %v1120_v33  ;;  %v1160_v27 = vld [vmem:[%s5887_s22 + $0x2f0] sm:$0xff]  ;;  %v1285_v33 = vld [vmem:[%s5887_s22 + $0x6d8] sm:$0xff] }
 0x23e   : > { %4083 = vmatpush1.bf16.msra.mxu0 %v4799_v28  ;;  %3800 = vmatprep.subr.bf16.mxu1 %v4678_v53  ;;  %v4839_v28 = vcombine.low %v1245_v34, %v1249_v37  ;;  %v4718_v53 = vcombine.high %v1124_v16, %v1128_v49  ;;  %v1289_v34 = vld [vmem:[%s5887_s22 + $0x6f8] sm:$0xff] }
 0x23f   : > { %4084 = vmatprep.subr.bf16.mxu0 %v4808_v54  ;;  %v4848_v54 = vcombine.high %v1253_v50, %v1257_v22 }
 0x240   : > { %3626 = vmatmul.mubr.bf16.gmra.mrb[36].mxu1 %v6087_v29  ;;  %4052 = vmatmul.mubr.bf16.gmra.mrb[48].mxu0 %v6087_v29 }
 0x241   : > { %3635 = vmatprep.mubr.bf16.mxu1 %v6111_v15  ;;  %3801 = vmatpush1.bf16.msra.mxu1 %v4677_v56  ;;  %v4717_v56 = vcombine.low %v1124_v16, %v1128_v49  ;;  %v1168_v16 = vld [vmem:[%s5887_s22 + $0x330] sm:$0xff]  ;;  %v1293_v49 = vld [vmem:[%s5887_s22 + $0x718] sm:$0xff] }
 0x242   : > { %4061 = vmatprep.mubr.bf16.mxu0 %v6111_v15  ;;  %4085 = vmatpush1.bf16.msra.mxu0 %v4807_v57  ;;  %v4847_v57 = vcombine.low %v1253_v50, %v1257_v22  ;;  %v1297_v50 = vld [vmem:[%s5887_s22 + $0x738] sm:$0xff] }
 0x243   : > { %3802 = vmatprep.subr.bf16.mxu1 %v4686_v39  ;;  %4086 = vmatprep.subr.bf16.mxu0 %v4816_v59  ;;  %v4726_v39 = vcombine.high %v1132_v32, %v1136_v0  ;;  %v4856_v59 = vcombine.high %v1261_v2, %v1265_v38 }
 0x245   : > { %3803 = vmatpush1.bf16.msra.mxu1 %v4685_v8  ;;  %v4725_v8 = vcombine.low %v1132_v32, %v1136_v0  ;;  %v1176_v32 = vld [vmem:[%s5887_s22 + $0x370] sm:$0xff]  ;;  %v1301_v0 = vld [vmem:[%s5887_s22 + $0x758] sm:$0xff] }
 0x246   : > { %4087 = vmatpush1.bf16.msra.mxu0 %v4815_v9  ;;  %3804 = vmatprep.subr.bf16.mxu1 %v4694_v11  ;;  %v4734_v9 = vcombine.high %v1140_v61, %v1144_v63  ;;  %v4864_v11 = vcombine.high %v1269_v46, %v1273_v6  ;;  %v1184_v61 = vld [vmem:[%s5887_s22 + $0x3b0] sm:$0xff]  ;;  %v1309_v63 = vld [vmem:[%s5887_s22 + $0x798] sm:$0xff] }
 0x247   : > { %4088 = vmatprep.subr.bf16.mxu0 %v4824_v13  ;;  %v1148_v13 = vld [vmem:[%s5887_s22 + $0x290] sm:$0xff] }
 0x248   : > { %3636 = vmatmul.mubr.bf16.gmra.mrb[40].mxu1 %v6109_v10  ;;  %4062 = vmatmul.mubr.bf16.gmra.mrb[52].mxu0 %v6109_v10  ;;  %v4741_v37 = vcombine.low %v1148_v13, %v1152_v14 }
 0x249   : > { %3645 = vmatprep.mubr.bf16.mxu1 %v6123_v40  ;;  %3805 = vmatpush1.bf16.msra.mxu1 %v4693_v21  ;;  %v4863_v21 = vcombine.low %v1269_v46, %v1273_v6  ;;  %v1313_v46 = vld [vmem:[%s5887_s22 + $0x7b8] sm:$0xff] }
 0x24a   : > { %4071 = vmatprep.mubr.bf16.mxu0 %v6123_v40  ;;  %4089 = vmatpush1.bf16.msra.mxu0 %v4823_v51  ;;  %v4742_v51 = vcombine.high %v1148_v13, %v1152_v14  ;;  %v1192_v13 = vld [vmem:[%s5887_s22 + $0x3f0] sm:$0xff]  ;;  %v1317_v14 = vld [vmem:[%s5887_s22 + $0x7d8] sm:$0xff] }
 0x24b   : > { %3806 = vmatprep.subr.bf16.mxu1 %v4702_v23  ;;  %4090 = vmatprep.subr.bf16.mxu0 %v4832_v25  ;;  %v4872_v23 = vcombine.high %v1277_v17, %v1281_v18  ;;  %v1156_v25 = vld [vmem:[%s5887_s22 + $0x2d0] sm:$0xff] }
 0x24c   : > { %v4749_v22 = vcombine.low %v1156_v25, %v1160_v27 }
 0x24d   : > { %3807 = vmatpush1.bf16.msra.mxu1 %v4701_v41  ;;  %v4871_v41 = vcombine.low %v1277_v17, %v1281_v18  ;;  %v1321_v17 = vld [vmem:[%s5887_s22 + $0x7f8] sm:$0xff] }
 0x24e   : > { %4091 = vmatpush1.bf16.msra.mxu0 %v4831_v43  ;;  %3808 = vmatprep.subr.bf16.mxu1 %v4710_v12  ;;  %v4750_v43 = vcombine.high %v1156_v25, %v1160_v27  ;;  %v4880_v12 = vcombine.high %v1285_v33, %v1289_v34  ;;  %v1200_v25 = vld [vmem:[%s5887_s22 + $0x430] sm:$0xff]  ;;  %v1325_v27 = vld [vmem:[%s5887_s22 + $0x818] sm:$0xff] }
 0x24f   : > { %4092 = vmatprep.subr.bf16.mxu0 %v4840_v48  ;;  %v1164_v48 = vld [vmem:[%s5887_s22 + $0x310] sm:$0xff] }
 0x250   : > { %3646 = vmatmul.mubr.bf16.gmra.mrb[44].mxu1 %v6132_v19  ;;  %4072 = vmatmul.mubr.bf16.gmra.mrb[56].mxu0 %v6132_v19 }
 0x251   : > { %3809 = vmatpush1.bf16.msra.mxu1 %v4709_v52  ;;  %3828 = vmatprep.mubr.bf16.mxu1 %v6076_v47  ;;  %v4855_v47 = vcombine.low %v1261_v2, %v1265_v38  ;;  %v4879_v52 = vcombine.low %v1285_v33, %v1289_v34  ;;  %v1305_v2 = vld [vmem:[%s5887_s22 + $0x778] sm:$0xff]  ;;  %v4757_v38 = vcombine.low %v1164_v48, %v1168_v16 }
 0x252   : > { %4093 = vmatpush1.bf16.msra.mxu0 %v4839_v28  ;;  %4112 = vmatprep.mubr.bf16.mxu0 %v6099_v42  ;;  %v4758_v28 = vcombine.high %v1164_v48, %v1168_v16  ;;  %v1329_v33 = vld [vmem:[%s5887_s22 + $0x838] sm:$0xff]  ;;  %v1208_v48 = vld [vmem:[%s5887_s22 + $0x470] sm:$0xff] }
 0x253   : > { %3810 = vmatprep.subr.bf16.mxu1 %v4718_v53  ;;  %4094 = vmatprep.subr.bf16.mxu0 %v4848_v54  ;;  %v4888_v53 = vcombine.high %v1293_v49, %v1297_v50  ;;  %v1172_v54 = vld [vmem:[%s5887_s22 + $0x350] sm:$0xff]  ;;  %v1333_v16 = vld [vmem:[%s5887_s22 + $0x858] sm:$0xff] }
 0x254   : > { %v4765_v6 = vcombine.low %v1172_v54, %v1176_v32 }
 0x255   : > { %3811 = vmatpush1.bf16.msra.mxu1 %v4717_v56  ;;  %v4887_v56 = vcombine.low %v1293_v49, %v1297_v50  ;;  %v1337_v49 = vld [vmem:[%s5887_s22 + $0x878] sm:$0xff] }
 0x256   : > { %4095 = vmatpush1.bf16.msra.mxu0 %v4847_v57  ;;  %3812 = vmatprep.subr.bf16.mxu1 %v4726_v39  ;;  %v4766_v57 = vcombine.high %v1172_v54, %v1176_v32  ;;  %v4896_v39 = vcombine.high %v1301_v0, %v1305_v2  ;;  %v1216_v54 = vld [vmem:[%s5887_s22 + $0x4b0] sm:$0xff]  ;;  %v1341_v32 = vld [vmem:[%s5887_s22 + $0x898] sm:$0xff] }
 0x257   : > { %4096 = vmatprep.subr.bf16.mxu0 %v4856_v59  ;;  %v1180_v59 = vld [vmem:[%s5887_s22 + $0x390] sm:$0xff] }
 0x258   : > { %v4773_v18 = vcombine.low %v1180_v59, %v1184_v61 }
 0x259   : > { %3813 = vmatpush1.bf16.msra.mxu1 %v4725_v8  ;;  %v4895_v8 = vcombine.low %v1301_v0, %v1305_v2  ;;  %v1345_v0 = vld [vmem:[%s5887_s22 + $0x8b8] sm:$0xff] }
 0x25a   : > { %4097 = vmatpush1.bf16.msra.mxu0 %v4855_v47  ;;  %3814 = vmatprep.subr.bf16.mxu1 %v4734_v9  ;;  %v4774_v47 = vcombine.high %v1180_v59, %v1184_v61  ;;  %v4904_v9 = vcombine.high %v1309_v63, %v1313_v46  ;;  %v1349_v59 = vld [vmem:[%s5887_s22 + $0x8d8] sm:$0xff] }
 0x25b   : > { %4098 = vmatprep.subr.bf16.mxu0 %v4864_v11  ;;  %v1188_v11 = vld [vmem:[%s5887_s22 + $0x3d0] sm:$0xff] }
 0x25c   : > { %v4781_v34 = vcombine.low %v1188_v11, %v1192_v13 }
 0x25d   : > { %3815 = vmatpush1.bf16.msra.mxu1 %v4733_v20  ;;  %v4903_v20 = vcombine.low %v1309_v63, %v1313_v46  ;;  %v4935_v63 = vcombine.low %v1341_v32, %v1345_v0 }
 0x25e   : > { %4099 = vmatpush1.bf16.msra.mxu0 %v4863_v21  ;;  %3816 = vmatprep.subr.bf16.mxu1 %v4742_v51  ;;  %v4782_v21 = vcombine.high %v1188_v11, %v1192_v13  ;;  %v4912_v51 = vcombine.high %v1317_v14, %v1321_v17  ;;  %v1361_v11 = vld [vmem:[%s5887_s22 + $0x938] sm:$0xff] }
 0x25f   : > { %4100 = vmatprep.subr.bf16.mxu0 %v4872_v23  ;;  %v1196_v23 = vld [vmem:[%s5887_s22 + $0x410] sm:$0xff] }
 0x260   : > { %v4789_v50 = vcombine.low %v1196_v23, %v1200_v25 }
 0x261   : > { %3817 = vmatpush1.bf16.msra.mxu1 %v4741_v37  ;;  %v4911_v37 = vcombine.low %v1317_v14, %v1321_v17 }
 0x262   : > { %4101 = vmatpush1.bf16.msra.mxu0 %v4871_v41  ;;  %3818 = vmatprep.subr.bf16.mxu1 %v4750_v43  ;;  %v4790_v41 = vcombine.high %v1196_v23, %v1200_v25  ;;  %v4920_v43 = vcombine.high %v1325_v27, %v1329_v33 }
 0x263   : > { %4102 = vmatprep.subr.bf16.mxu0 %v4880_v12  ;;  %v1204_v12 = vld [vmem:[%s5887_s22 + $0x450] sm:$0xff] }
 0x264   : > { %v4797_v2 = vcombine.low %v1204_v12, %v1208_v48 }
 0x265   : > { %3819 = vmatpush1.bf16.msra.mxu1 %v4749_v22  ;;  %v4919_v22 = vcombine.low %v1325_v27, %v1329_v33  ;;  %v1244_v33 = vld [vmem:[%s5887_s22 + $0x590] sm:$0xff] }
 0x266   : > { %4103 = vmatpush1.bf16.msra.mxu0 %v4879_v52  ;;  %3820 = vmatprep.subr.bf16.mxu1 %v4758_v28  ;;  %v4798_v52 = vcombine.high %v1204_v12, %v1208_v48  ;;  %v4928_v28 = vcombine.high %v1333_v16, %v1337_v49 }
 0x267   : > { %4104 = vmatprep.subr.bf16.mxu0 %v4888_v53  ;;  %v1212_v53 = vld [vmem:[%s5887_s22 + $0x490] sm:$0xff] }
 0x268   : > { %v4805_v61 = vcombine.low %v1212_v53, %v1216_v54 }
 0x269   : > { %3821 = vmatpush1.bf16.msra.mxu1 %v4757_v38  ;;  %v4806_v38 = vcombine.high %v1212_v53, %v1216_v54  ;;  %v1260_v54 = vld [vmem:[%s5887_s22 + $0x610] sm:$0xff] }
 0x26a   : > { %4105 = vmatpush1.bf16.msra.mxu0 %v4887_v56  ;;  %3822 = vmatprep.subr.bf16.mxu1 %v4766_v57  ;;  %v4936_v56 = vcombine.high %v1341_v32, %v1345_v0  ;;  %v1220_v57 = vld [vmem:[%s5887_s22 + $0x4d0] sm:$0xff]  ;;  %v1389_v0 = vld [vmem:[%s5887_s22 + $0xa18] sm:$0xff] }
 0x26b   : > { %4106 = vmatprep.subr.bf16.mxu0 %v4896_v39  ;;  %v1224_v39 = vld [vmem:[%s5887_s22 + $0x4f0] sm:$0xff] }
 0x26c   : > { %v4814_v46 = vcombine.high %v1220_v57, %v1224_v39  ;;  %v4813_v13 = vcombine.low %v1220_v57, %v1224_v39  ;;  %v1264_v32 = vld [vmem:[%s5887_s22 + $0x630] sm:$0xff] }
 0x26d   : > { %3823 = vmatpush1.bf16.msra.mxu1 %v4765_v6  ;;  %v1268_v57 = vld [vmem:[%s5887_s22 + $0x650] sm:$0xff] }
 0x26e   : > { %4107 = vmatpush1.bf16.msra.mxu0 %v4895_v8  ;;  %3824 = vmatprep.subr.bf16.mxu1 %v4774_v47  ;;  %v1228_v8 = vld [vmem:[%s5887_s22 + $0x510] sm:$0xff] }
 0x26f   : > { %4108 = vmatprep.subr.bf16.mxu0 %v4904_v9  ;;  %v1232_v47 = vld [vmem:[%s5887_s22 + $0x530] sm:$0xff]  ;;  %v1357_v9 = vld [vmem:[%s5887_s22 + $0x918] sm:$0xff] }
 0x270   : > { %v4822_v14 = vcombine.high %v1228_v8, %v1232_v47  ;;  %v4952_v17 = vcombine.high %v1357_v9, %v1361_v11  ;;  %v4951_v23 = vcombine.low %v1357_v9, %v1361_v11  ;;  %v1272_v39 = vld [vmem:[%s5887_s22 + $0x670] sm:$0xff]  ;;  %v1409_v9 = vld [vmem:[%s5887_s22 + $0xab8] sm:$0xff] }
 0x271   : > { %3825 = vmatpush1.bf16.msra.mxu1 %v4773_v18  ;;  %v1236_v18 = vld [vmem:[%s5887_s22 + $0x550] sm:$0xff]  ;;  %v4861_v11 = vcombine.low %v1268_v57, %v1272_v39 }
 0x272   : > { %4109 = vmatpush1.bf16.msra.mxu0 %v4903_v20  ;;  %3826 = vmatprep.subr.bf16.mxu1 %v4782_v21  ;;  %v1240_v20 = vld [vmem:[%s5887_s22 + $0x570] sm:$0xff]  ;;  %v1365_v21 = vld [vmem:[%s5887_s22 + $0x958] sm:$0xff] }
 0x273   : > { %4110 = vmatprep.subr.bf16.mxu0 %v4912_v51  ;;  %v4821_v51 = vcombine.low %v1228_v8, %v1232_v47  ;;  %v4830_v25 = vcombine.high %v1236_v18, %v1240_v20  ;;  %v1280_v8 = vld [vmem:[%s5887_s22 + $0x6b0] sm:$0xff]  ;;  %v1405_v47 = vld [vmem:[%s5887_s22 + $0xa98] sm:$0xff] }
 0x275   : > { %3827 = vmatpush1.bf16.msra.mxu1 %v4781_v34  ;;  %v1248_v34 = vld [vmem:[%s5887_s22 + $0x5b0] sm:$0xff] }
 0x276   : > { %4111 = vmatpush1.bf16.msra.mxu0 %v4911_v37  ;;  %3867 = vmatprep.subr.bf16.mxu1 %v4790_v41  ;;  %v1373_v37 = vld [vmem:[%s5887_s22 + $0x998] sm:$0xff]  ;;  %v4838_v12 = vcombine.high %v1244_v33, %v1248_v34 }
 0x277   : > { %4151 = vmatprep.subr.bf16.mxu0 %v4920_v43  ;;  %v1377_v41 = vld [vmem:[%s5887_s22 + $0x9b8] sm:$0xff]  ;;  %v4829_v43 = vcombine.low %v1236_v18, %v1240_v20  ;;  %v1288_v18 = vld [vmem:[%s5887_s22 + $0x6f0] sm:$0xff] }
 0x278   : > { %3829 = vmatmul.mubr.bf16.vlgmr.msra.gmra.mrb[48].mxu1 %v6074_v44  ;;  %v4927_v44 = vcombine.low %v1333_v16, %v1337_v49  ;;  %v4968_v48 = vcombine.high %v1373_v37, %v1377_v41  ;;  %v1252_v16 = vld [vmem:[%s5887_s22 + $0x5d0] sm:$0xff]  ;;  %v1413_v20 = vld [vmem:[%s5887_s22 + $0xad8] sm:$0xff] }
 0x279   : > { %4113 = vmatmul.mubr.bf16.vlgmr.msra.gmra.mrb[44].mxu0 %v6096_v58  ;;  %3838 = vmatprep.mubr.bf16.mxu1 %v6089_v55  ;;  %v1353_v55 = vld [vmem:[%s5887_s22 + $0x8f8] sm:$0xff]  ;;  %v1256_v49 = vld [vmem:[%s5887_s22 + $0x5f0] sm:$0xff] }
 0x27a   : > { %3868 = vmatpush1.bf16.msra.mxu1 %v4789_v50  ;;  %4122 = vmatprep.mubr.bf16.mxu0 %v6121_v35  ;;  %v4944_v6 = vcombine.high %v1349_v59, %v1353_v55  ;;  %v1381_v50 = vld [vmem:[%s5887_s22 + $0x9d8] sm:$0xff] }
 0x27b   : > { %4152 = vmatpush1.bf16.msra.mxu0 %v4919_v22  ;;  %3869 = vmatprep.subr.bf16.mxu1 %v4798_v52  ;;  %v4837_v22 = vcombine.low %v1244_v33, %v1248_v34  ;;  %v4967_v52 = vcombine.low %v1373_v37, %v1377_v41  ;;  %v1296_v33 = vld [vmem:[%s5887_s22 + $0x730] sm:$0xff]  ;;  %v1421_v34 = vld [vmem:[%s5887_s22 + $0xb18] sm:$0xff] }
 0x27c   : > { %4153 = vmatprep.subr.bf16.mxu0 %v4928_v28  ;;  %v4846_v28 = vcombine.high %v1252_v16, %v1256_v49  ;;  %v1425_v37 = vld [vmem:[%s5887_s22 + $0xb38] sm:$0xff] }
 0x27e   : > { %3870 = vmatpush1.bf16.msra.mxu1 %v4797_v2  ;;  %v1393_v2 = vld [vmem:[%s5887_s22 + $0xa38] sm:$0xff] }
 0x27f   : > { %4154 = vmatpush1.bf16.msra.mxu0 %v4927_v44  ;;  %3871 = vmatprep.subr.bf16.mxu1 %v4806_v38  ;;  %v4845_v44 = vcombine.low %v1252_v16, %v1256_v49  ;;  %v4854_v38 = vcombine.high %v1260_v54, %v1264_v32  ;;  %v1304_v16 = vld [vmem:[%s5887_s22 + $0x770] sm:$0xff]  ;;  %v1429_v49 = vld [vmem:[%s5887_s22 + $0xb58] sm:$0xff] }
 0x280   : > { %3839 = vmatmul.mubr.bf16.gmra.mrb[52].mxu1 %v6087_v29  ;;  %4155 = vmatprep.subr.bf16.mxu0 %v4936_v56  ;;  %v4943_v29 = vcombine.low %v1349_v59, %v1353_v55  ;;  %v4984_v56 = vcombine.high %v1389_v0, %v1393_v2  ;;  %v1397_v59 = vld [vmem:[%s5887_s22 + $0xa58] sm:$0xff]  ;;  %v4853_v55 = vcombine.low %v1260_v54, %v1264_v32  ;;  %v1312_v54 = vld [vmem:[%s5887_s22 + $0x7b0] sm:$0xff] }
 0x281   : > { %4123 = vmatmul.mubr.bf16.gmra.mrb[48].mxu0 %v6118_v30  ;;  %3848 = vmatprep.mubr.bf16.mxu1 %v6111_v15  ;;  %v1369_v15 = vld [vmem:[%s5887_s22 + $0x978] sm:$0xff] }
 0x282   : > { %3872 = vmatpush1.bf16.msra.mxu1 %v4805_v61  ;;  %4132 = vmatprep.mubr.bf16.mxu0 %v6141_v36  ;;  %v4960_v27 = vcombine.high %v1365_v21, %v1369_v15  ;;  %v4983_v61 = vcombine.low %v1389_v0, %v1393_v2  ;;  %v1437_v32 = vld [vmem:[%s5887_s22 + $0xb98] sm:$0xff] }
 0x283   : > { %4156 = vmatpush1.bf16.msra.mxu0 %v4935_v63  ;;  %3873 = vmatprep.subr.bf16.mxu1 %v4814_v46  ;;  %v4862_v63 = vcombine.high %v1268_v57, %v1272_v39  ;;  %v1441_v0 = vld [vmem:[%s5887_s22 + $0xbb8] sm:$0xff]  ;;  %v1320_v57 = vld [vmem:[%s5887_s22 + $0x7f0] sm:$0xff] }
 0x284   : > { %4157 = vmatprep.subr.bf16.mxu0 %v4944_v6  ;;  %v1276_v6 = vld [vmem:[%s5887_s22 + $0x690] sm:$0xff]  ;;  %v1445_v39 = vld [vmem:[%s5887_s22 + $0xbd8] sm:$0xff] }
 0x286   : > { %3874 = vmatpush1.bf16.msra.mxu1 %v4813_v13 }
 0x287   : > { %4158 = vmatpush1.bf16.msra.mxu0 %v4943_v29  ;;  %3875 = vmatprep.subr.bf16.mxu1 %v4822_v14  ;;  %v4870_v29 = vcombine.high %v1276_v6, %v1280_v8  ;;  %v5000_v14 = vcombine.high %v1405_v47, %v1409_v9 }
 0x288   : > { %3849 = vmatmul.mubr.bf16.gmra.mrb[56].mxu1 %v6109_v10  ;;  %4159 = vmatprep.subr.bf16.mxu0 %v4952_v17  ;;  %v4959_v10 = vcombine.low %v1365_v21, %v1369_v15  ;;  %v1284_v17 = vld [vmem:[%s5887_s22 + $0x6d0] sm:$0xff]  ;;  %v1417_v21 = vld [vmem:[%s5887_s22 + $0xaf8] sm:$0xff]  ;;  %v4869_v15 = vcombine.low %v1276_v6, %v1280_v8 }
 0x289   : > { %4133 = vmatmul.mubr.bf16.gmra.mrb[52].mxu0 %v6138_v60  ;;  %3858 = vmatprep.mubr.bf16.mxu1 %v6123_v40  ;;  %v1385_v40 = vld [vmem:[%s5887_s22 + $0x9f8] sm:$0xff]  ;;  %v4877_v41 = vcombine.low %v1284_v17, %v1288_v18  ;;  %v1328_v6 = vld [vmem:[%s5887_s22 + $0x830] sm:$0xff] }
 0x28a   : > { %3876 = vmatpush1.bf16.msra.mxu1 %v4821_v51  ;;  %4142 = vmatprep.mubr.bf16.mxu0 %v6149_v4  ;;  %v4976_v53 = vcombine.high %v1381_v50, %v1385_v40  ;;  %v4999_v51 = vcombine.low %v1405_v47, %v1409_v9 }
 0x28b   : > { %4160 = vmatpush1.bf16.msra.mxu0 %v4951_v23  ;;  %3877 = vmatprep.subr.bf16.mxu1 %v4830_v25  ;;  %v4878_v23 = vcombine.high %v1284_v17, %v1288_v18  ;;  %v5008_v25 = vcombine.high %v1413_v20, %v1417_v21  ;;  %v1340_v17 = vld [vmem:[%s5887_s22 + $0x890] sm:$0xff] }
 0x28c   : > { %4161 = vmatprep.subr.bf16.mxu0 %v4960_v27  ;;  %v1292_v27 = vld [vmem:[%s5887_s22 + $0x710] sm:$0xff] }
 0x28d   : > { %v1344_v18 = vld [vmem:[%s5887_s22 + $0x8b0] sm:$0xff] }
 0x28e   : > { %3878 = vmatpush1.bf16.msra.mxu1 %v4829_v43  ;;  %v5007_v43 = vcombine.low %v1413_v20, %v1417_v21  ;;  %v4934_v21 = vcombine.high %v1340_v17, %v1344_v18 }
 0x28f   : > { %4162 = vmatpush1.bf16.msra.mxu0 %v4959_v10  ;;  %3879 = vmatprep.subr.bf16.mxu1 %v4838_v12  ;;  %v4886_v10 = vcombine.high %v1292_v27, %v1296_v33  ;;  %v5016_v12 = vcombine.high %v1421_v34, %v1425_v37 }
 0x290   : > { %3859 = vmatmul.mubr.bf16.gmra.mrb[60].mxu1 %v6132_v19  ;;  %4163 = vmatprep.subr.bf16.mxu0 %v4968_v48  ;;  %v4975_v19 = vcombine.low %v1381_v50, %v1385_v40  ;;  %v1300_v48 = vld [vmem:[%s5887_s22 + $0x750] sm:$0xff]  ;;  %v1433_v50 = vld [vmem:[%s5887_s22 + $0xb78] sm:$0xff]  ;;  %v4885_v40 = vcombine.low %v1292_v27, %v1296_v33 }
 0x291   : > { %4143 = vmatmul.mubr.bf16.gmra.mrb[56].mxu0 %v6159_v24  ;;  %3899 = vmatprep.mubr.bf16.mxu1 %v6099_v42  ;;  %v1401_v42 = vld [vmem:[%s5887_s22 + $0xa78] sm:$0xff]  ;;  %v4893_v2 = vcombine.low %v1300_v48, %v1304_v16  ;;  %v1360_v27 = vld [vmem:[%s5887_s22 + $0x930] sm:$0xff] }
 0x292   : > { %3880 = vmatpush1.bf16.msra.mxu1 %v4837_v22  ;;  %4183 = vmatprep.mubr.bf16.mxu0 %v6241_v7  ;;  %v4992_v46 = vcombine.high %v1397_v59, %v1401_v42  ;;  %v4991_v13 = vcombine.low %v1397_v59, %v1401_v42  ;;  %v5015_v22 = vcombine.low %v1421_v34, %v1425_v37  ;;  %v1449_v59 = vld [vmem:[%s5887_s22 + $0xbf8] sm:$0xff]  ;;  %v1364_v34 = vld [vmem:[%s5887_s22 + $0x950] sm:$0xff] }
 0x293   : > { %4164 = vmatpush1.bf16.msra.mxu0 %v4967_v52  ;;  %3881 = vmatprep.subr.bf16.mxu1 %v4846_v28  ;;  %v4894_v52 = vcombine.high %v1300_v48, %v1304_v16  ;;  %v5024_v28 = vcombine.high %v1429_v49, %v1433_v50  ;;  %v5039_v47 = vcombine.low %v1445_v39, %v1449_v59  ;;  %v1368_v37 = vld [vmem:[%s5887_s22 + $0x970] sm:$0xff] }
 0x294   : > { %4165 = vmatprep.subr.bf16.mxu0 %v4976_v53  ;;  %v1308_v53 = vld [vmem:[%s5887_s22 + $0x790] sm:$0xff]  ;;  %v4957_v48 = vcombine.low %v1364_v34, %v1368_v37 }
 0x295   : > { %v4901_v42 = vcombine.low %v1308_v53, %v1312_v54 }
 0x296   : > { %3882 = vmatpush1.bf16.msra.mxu1 %v4845_v44  ;;  %v5023_v44 = vcombine.low %v1429_v49, %v1433_v50 }
 0x297   : > { %4166 = vmatpush1.bf16.msra.mxu0 %v4975_v19  ;;  %3883 = vmatprep.subr.bf16.mxu1 %v4854_v38  ;;  %v4902_v19 = vcombine.high %v1308_v53, %v1312_v54  ;;  %v5032_v38 = vcombine.high %v1437_v32, %v1441_v0 }
 0x298   : > { %4167 = vmatprep.subr.bf16.mxu0 %v4984_v56  ;;  %v1316_v56 = vld [vmem:[%s5887_s22 + $0x7d0] sm:$0xff] }
 0x299   : > { %v4909_v8 = vcombine.low %v1316_v56, %v1320_v57 }
 0x29a   : > { %3884 = vmatpush1.bf16.msra.mxu1 %v4853_v55  ;;  %v5031_v55 = vcombine.low %v1437_v32, %v1441_v0  ;;  %v1388_v32 = vld [vmem:[%s5887_s22 + $0xa10] sm:$0xff] }
 0x29b   : > { %4168 = vmatpush1.bf16.msra.mxu0 %v4983_v61  ;;  %3885 = vmatprep.subr.bf16.mxu1 %v4862_v63  ;;  %v4910_v61 = vcombine.high %v1316_v56, %v1320_v57  ;;  %v5040_v63 = vcombine.high %v1445_v39, %v1449_v59  ;;  %v1392_v0 = vld [vmem:[%s5887_s22 + $0xa30] sm:$0xff] }
 0x29c   : > { %4169 = vmatprep.subr.bf16.mxu0 %v4992_v46  ;;  %v1324_v46 = vld [vmem:[%s5887_s22 + $0x810] sm:$0xff] }
 0x29d   : > { %v4918_v9 = vcombine.high %v1324_v46, %v1328_v6  ;;  %v1396_v59 = vld [vmem:[%s5887_s22 + $0xa50] sm:$0xff] }
 0x29e   : > { %3886 = vmatpush1.bf16.msra.mxu1 %v4861_v11  ;;  %v1332_v11 = vld [vmem:[%s5887_s22 + $0x850] sm:$0xff] }
 0x29f   : > { %4170 = vmatpush1.bf16.msra.mxu0 %v4991_v13  ;;  %3887 = vmatprep.subr.bf16.mxu1 %v4870_v29  ;;  %v1336_v13 = vld [vmem:[%s5887_s22 + $0x870] sm:$0xff]  ;;  %v4917_v29 = vcombine.low %v1324_v46, %v1328_v6 }
 0x2a0   : > { %4171 = vmatprep.subr.bf16.mxu0 %v5000_v14  ;;  %v4926_v14 = vcombine.high %v1332_v11, %v1336_v13  ;;  %v4925_v20 = vcombine.low %v1332_v11, %v1336_v13  ;;  %v1404_v46 = vld [vmem:[%s5887_s22 + $0xa90] sm:$0xff] }
 0x2a1   : > { %v1408_v6 = vld [vmem:[%s5887_s22 + $0xab0] sm:$0xff] }
 0x2a2   : > { %3888 = vmatpush1.bf16.msra.mxu1 %v4869_v15  ;;  %v1348_v15 = vld [vmem:[%s5887_s22 + $0x8d0] sm:$0xff] }
 0x2a3   : > { %4172 = vmatpush1.bf16.msra.mxu0 %v4999_v51  ;;  %3889 = vmatprep.subr.bf16.mxu1 %v4878_v23  ;;  %v1352_v51 = vld [vmem:[%s5887_s22 + $0x8f0] sm:$0xff] }
 0x2a4   : > { %4173 = vmatprep.subr.bf16.mxu0 %v5008_v25  ;;  %v4942_v23 = vcombine.high %v1348_v15, %v1352_v51  ;;  %v1356_v25 = vld [vmem:[%s5887_s22 + $0x910] sm:$0xff] }
 0x2a5   : > { %v4950_v33 = vcombine.high %v1356_v25, %v1360_v27 }
 0x2a6   : > { %3890 = vmatpush1.bf16.msra.mxu1 %v4877_v41  ;;  %v4949_v41 = vcombine.low %v1356_v25, %v1360_v27  ;;  %v1424_v25 = vld [vmem:[%s5887_s22 + $0xb30] sm:$0xff] }
 0x2a7   : > { %4174 = vmatpush1.bf16.msra.mxu0 %v5007_v43  ;;  %3891 = vmatprep.subr.bf16.mxu1 %v4886_v10  ;;  %v1372_v43 = vld [vmem:[%s5887_s22 + $0x990] sm:$0xff] }
 0x2a8   : > { %4175 = vmatprep.subr.bf16.mxu0 %v5016_v12  ;;  %v1376_v10 = vld [vmem:[%s5887_s22 + $0x9b0] sm:$0xff] }
 0x2a9   : > { %v4966_v49 = vcombine.high %v1372_v43, %v1376_v10  ;;  %v4965_v53 = vcombine.low %v1372_v43, %v1376_v10  ;;  %v1428_v10 = vld [vmem:[%s5887_s22 + $0xb50] sm:$0xff] }
 0x2aa   : > { %3892 = vmatpush1.bf16.msra.mxu1 %v4885_v40 }
 0x2ab   : > { %4176 = vmatpush1.bf16.msra.mxu0 %v5015_v22  ;;  %3893 = vmatprep.subr.bf16.mxu1 %v4894_v52  ;;  %v1384_v22 = vld [vmem:[%s5887_s22 + $0x9f0] sm:$0xff] }
 0x2ac   : > { %4177 = vmatprep.subr.bf16.mxu0 %v5024_v28 }
 0x2ae   : > { %3894 = vmatpush1.bf16.msra.mxu1 %v4893_v2 }
 0x2af   : > { %4178 = vmatpush1.bf16.msra.mxu0 %v5023_v44  ;;  %3895 = vmatprep.subr.bf16.mxu1 %v4902_v19 }
 0x2b0   : > { %4179 = vmatprep.subr.bf16.mxu0 %v5032_v38 }
 0x2b2   : > { %3896 = vmatpush1.bf16.msra.mxu1 %v4901_v42 }
 0x2b3   : > { %4180 = vmatpush1.bf16.msra.mxu0 %v5031_v55  ;;  %3897 = vmatprep.subr.bf16.mxu1 %v4910_v61  ;;  %v4981_v61 = vcombine.low %v1388_v32, %v1392_v0 }
 0x2b4   : > { %4181 = vmatprep.subr.bf16.mxu0 %v5040_v63 }
 0x2b6   : > { %3898 = vmatpush1.bf16.msra.mxu1 %v4909_v8 }
 0x2b7   : > { %4182 = vmatpush1.bf16.msra.mxu0 %v5039_v47  ;;  %3938 = vmatprep.subr.bf16.mxu1 %v4918_v9 }
 0x2b9   : > { %3900 = vmatmul.mubr.bf16.vlgmr.msra.gmra.mrb[48].mxu1 %v6096_v58  ;;  %v4933_v58 = vcombine.low %v1340_v17, %v1344_v18  ;;  %v1412_v18 = vld [vmem:[%s5887_s22 + $0xad0] sm:$0xff] }
 0x2ba   : > { %4184 = vmatmul.mubr.bf16.vlgmr.msra.gmra.mrb[44].mxu0 %v6239_v5  ;;  %3909 = vmatprep.mubr.bf16.mxu1 %v6121_v35  ;;  %v4941_v35 = vcombine.low %v1348_v15, %v1352_v51  ;;  %v4997_v51 = vcombine.low %v1404_v46, %v1408_v6 }
 0x2bb   : > { %3939 = vmatpush1.bf16.msra.mxu1 %v4917_v29  ;;  %4193 = vmatprep.mubr.bf16.mxu0 %v6259_v45  ;;  %v4998_v29 = vcombine.high %v1404_v46, %v1408_v6 }
 0x2bc   : > { %3940 = vmatprep.subr.bf16.mxu1 %v4926_v14 }
 0x2bf   : > { %3941 = vmatpush1.bf16.msra.mxu1 %v4925_v20  ;;  %v1416_v20 = vld [vmem:[%s5887_s22 + $0xaf0] sm:$0xff] }
 0x2c0   : > { %3942 = vmatprep.subr.bf16.mxu1 %v4934_v21 }
 0x2c1   : > { %3910 = vmatmul.mubr.bf16.gmra.mrb[52].mxu1 %v6118_v30  ;;  %v4958_v30 = vcombine.high %v1364_v34, %v1368_v37 }
 0x2c2   : > { %4194 = vmatmul.mubr.bf16.gmra.mrb[48].mxu0 %v6257_v1  ;;  %3919 = vmatprep.mubr.bf16.mxu1 %v6141_v36 }
 0x2c3   : > { %3943 = vmatpush1.bf16.msra.mxu1 %v4933_v58  ;;  %4203 = vmatprep.mubr.bf16.mxu0 %v6275_v3  ;;  %v5006_v58 = vcombine.high %v1412_v18, %v1416_v20 }
 0x2c4   : > { %3944 = vmatprep.subr.bf16.mxu1 %v4942_v23  ;;  %v1420_v23 = vld [vmem:[%s5887_s22 + $0xb10] sm:$0xff] }
 0x2c7   : > { %3945 = vmatpush1.bf16.msra.mxu1 %v4941_v35 }
 0x2c8   : > { %3946 = vmatprep.subr.bf16.mxu1 %v4950_v33  ;;  %v5005_v33 = vcombine.low %v1412_v18, %v1416_v20 }
 0x2c9   : > { %3920 = vmatmul.mubr.bf16.gmra.mrb[56].mxu1 %v6138_v60 }
 0x2ca   : > { %4204 = vmatmul.mubr.bf16.gmra.mrb[52].mxu0 %v6273_v62  ;;  %3929 = vmatprep.mubr.bf16.mxu1 %v6149_v4  ;;  %v1380_v4 = vld [vmem:[%s5887_s22 + $0x9d0] sm:$0xff] }
 0x2cb   : > { %3947 = vmatpush1.bf16.msra.mxu1 %v4949_v41  ;;  %4213 = vmatprep.mubr.bf16.mxu0 %v6285_v26  ;;  %v6517_v36 = vpop.f32.mrb[16].mxu1  ;;  %v6519_v12 = vpop.f32.mrb[28].mxu0  ;;  %v4974_v54 = vcombine.high %v1380_v4, %v1384_v22  ;;  %v4973_v19 = vcombine.low %v1380_v4, %v1384_v22  ;;  %v5014_v41 = vcombine.high %v1420_v23, %v1424_v25 }
 0x2cc   : > { %3948 = vmatprep.subr.bf16.mxu1 %v4958_v30  ;;  %v6521_v60 = vpop.f32.mrb[17].mxu1  ;;  %v6523_v16 = vpop.f32.mrb[29].mxu0  ;;  %v5013_v22 = vcombine.low %v1420_v23, %v1424_v25  ;;  %4226 = vst [vmem:[%s5555_s28] sm:$0xff] (!%p5041_p7), %v6517_v36 }
 0x2cd   : > { %v6525_v50 = vpop.f32.mrb[18].mxu1  ;;  %v6527_v40 = vpop.f32.mrb[30].mxu0  ;;  %4227 = vst [vmem:[%s5555_s28 + $0x8] sm:$0xff] (!%p5041_p7), %v6521_v60 }
 0x2ce   : > { %v6531_v52 = vpop.f32.mrb[19].mxu1  ;;  %v6533_v28 = vpop.f32.mrb[31].mxu0  ;;  %4234 = vst [vmem:[%s5555_s28 + $0x40] sm:$0xff] (!%p5041_p7), %v6525_v50 }
 0x2cf   : > { %3949 = vmatpush1.bf16.msra.mxu1 %v4957_v48  ;;  %v1432_v48 = vld [vmem:[%s5887_s22 + $0xb70] sm:$0xff]  ;;  %4235 = vst [vmem:[%s5555_s28 + $0x48] sm:$0xff] (!%p5041_p7), %v6531_v52 }
 0x2d0   : > { %3950 = vmatprep.subr.bf16.mxu1 %v4966_v49 }
 0x2d1   : > { %3930 = vmatmul.mubr.bf16.gmra.mrb[60].mxu1 %v6159_v24  ;;  %v4982_v24 = vcombine.high %v1388_v32, %v1392_v0  ;;  %v1440_v32 = vld [vmem:[%s5887_s22 + $0xbb0] sm:$0xff]  ;;  %v5021_v0 = vcombine.low %v1428_v10, %v1432_v48 }
 0x2d2   : > { %4214 = vmatmul.mubr.bf16.gmra.mrb[56].mxu0 %v6290_v31  ;;  %3970 = vmatprep.mubr.bf16.mxu1 %v6241_v7  ;;  %v1400_v7 = vld [vmem:[%s5887_s22 + $0xa70] sm:$0xff] }
 0x2d3   : > { %3951 = vmatpush1.bf16.msra.mxu1 %v4965_v53  ;;  %v6540_v2 = vpop.f32.mrb[20].mxu1  ;;  %v6542_v44 = vpop.f32.mrb[32].mxu0  ;;  %v4990_v63 = vcombine.high %v1396_v59, %v1400_v7  ;;  %v4989_v9 = vcombine.low %v1396_v59, %v1400_v7  ;;  %v5022_v53 = vcombine.high %v1428_v10, %v1432_v48  ;;  %v1448_v59 = vld [vmem:[%s5887_s22 + $0xbf0] sm:$0xff] }
 0x2d4   : > { %3952 = vmatprep.subr.bf16.mxu1 %v4974_v54  ;;  %v6544_v38 = vpop.f32.mrb[21].mxu1  ;;  %v6546_v56 = vpop.f32.mrb[33].mxu0  ;;  %v1436_v54 = vld [vmem:[%s5887_s22 + $0xb90] sm:$0xff]  ;;  %4242 = vst [vmem:[%s5555_s28 + $0x80] sm:$0xff] (!%p5041_p7), %v6540_v2 }
 0x2d5   : > { %v6548_v57 = vpop.f32.mrb[22].mxu1  ;;  %v6550_v39 = vpop.f32.mrb[34].mxu0  ;;  %v5029_v7 = vcombine.low %v1436_v54, %v1440_v32  ;;  %4243 = vst [vmem:[%s5555_s28 + $0x88] sm:$0xff] (!%p5041_p7), %v6544_v38 }
 0x2d6   : > { %v6554_v42 = vpop.f32.mrb[23].mxu1  ;;  %v6556_v55 = vpop.f32.mrb[35].mxu0  ;;  %4250 = vst [vmem:[%s5555_s28 + $0xc0] sm:$0xff] (!%p5041_p7), %v6548_v57 }
 0x2d7   : > { %3953 = vmatpush1.bf16.msra.mxu1 %v4973_v19  ;;  %v5030_v19 = vcombine.high %v1436_v54, %v1440_v32  ;;  %4251 = vst [vmem:[%s5555_s28 + $0xc8] sm:$0xff] (!%p5041_p7), %v6554_v42 }
 0x2d8   : > { %3954 = vmatprep.subr.bf16.mxu1 %v4982_v24  ;;  %v1444_v24 = vld [vmem:[%s5887_s22 + $0xbd0] sm:$0xff] }
 0x2db   : > { %3955 = vmatpush1.bf16.msra.mxu1 %v4981_v61  ;;  %v6560_v8 = vpop.f32.mrb[24].mxu1  ;;  %v6562_v47 = vpop.f32.mrb[36].mxu0  ;;  %v5038_v61 = vcombine.high %v1444_v24, %v1448_v59 }
 0x2dc   : > { %3956 = vmatprep.subr.bf16.mxu1 %v4990_v63  ;;  %v6564_v11 = vpop.f32.mrb[25].mxu1  ;;  %v6566_v13 = vpop.f32.mrb[37].mxu0  ;;  %v5037_v63 = vcombine.low %v1444_v24, %v1448_v59  ;;  %4258 = vst [vmem:[%s5555_s28 + $0x100] sm:$0xff] (!%p5041_p7), %v6560_v8 }
 0x2dd   : > { %v6568_v14 = vpop.f32.mrb[26].mxu1  ;;  %v6570_v17 = vpop.f32.mrb[38].mxu0  ;;  %4259 = vst [vmem:[%s5555_s28 + $0x108] sm:$0xff] (!%p5041_p7), %v6564_v11 }
 0x2de   : > { %v6574_v21 = vpop.f32.mrb[27].mxu1  ;;  %v6576_v15 = vpop.f32.mrb[39].mxu0  ;;  %4266 = vst [vmem:[%s5555_s28 + $0x140] sm:$0xff] (!%p5041_p7), %v6568_v14 }
 0x2df   : > { %3957 = vmatpush1.bf16.msra.mxu1 %v4989_v9  ;;  %4267 = vst [vmem:[%s5555_s28 + $0x148] sm:$0xff] (!%p5041_p7), %v6574_v21 }
 0x2e0   : > { %3958 = vmatprep.subr.bf16.mxu1 %v4998_v29 }
 0x2e3   : > { %3959 = vmatpush1.bf16.msra.mxu1 %v4997_v51  ;;  %v6580_v27 = vpop.f32.mrb[28].mxu1  ;;  %v6582_v35 = vpop.f32.mrb[40].mxu0 }
 0x2e4   : > { %3960 = vmatprep.subr.bf16.mxu1 %v5006_v58  ;;  %v6584_v34 = vpop.f32.mrb[29].mxu1  ;;  %v3791_v37 = vpop.f32.mrb[41].mxu0  ;;  %4274 = vst [vmem:[%s5555_s28 + $0x180] sm:$0x1] (!%p5041_p7), %v6580_v27 }
 0x2e5   : > { %v3580_v30 = vpop.f32.mrb[30].mxu1  ;;  %v3793_v43 = vpop.f32.mrb[42].mxu0  ;;  %4275 = vst [vmem:[%s5555_s28 + $0x188] sm:$0x1] (!%p5041_p7), %v6584_v34 }
 0x2e6   : > { %v3581_v49 = vpop.f32.mrb[31].mxu1  ;;  %v3794_v4 = vpop.f32.mrb[43].mxu0 }
 0x2e7   : > { %3961 = vmatpush1.bf16.msra.mxu1 %v5005_v33 }
 0x2e8   : > { %3962 = vmatprep.subr.bf16.mxu1 %v5014_v41 }
 0x2eb   : > { %3963 = vmatpush1.bf16.msra.mxu1 %v5013_v22 }
 0x2ec   : > { %3964 = vmatprep.subr.bf16.mxu1 %v5022_v53 }
 0x2ef   : > { %3965 = vmatpush1.bf16.msra.mxu1 %v5021_v0 }
 0x2f0   : > { %3966 = vmatprep.subr.bf16.mxu1 %v5030_v19 }
 0x2f3   : > { %3967 = vmatpush1.bf16.msra.mxu1 %v5029_v7 }
 0x2f4   : > { %3968 = vmatprep.subr.bf16.mxu1 %v5038_v61 }
 0x2f7   : > { %3969 = vmatpush1.bf16.msra.mxu1 %v5037_v63 }
 0x2fa   : > { %3971 = vmatmul.mubr.bf16.vlgmr.msra.gmra.mrb[48].mxu1 %v6239_v5 }
 0x2fb   : > { %3980 = vmatprep.mubr.bf16.mxu1 %v6259_v45 }
 0x302   : > { %3981 = vmatmul.mubr.bf16.gmra.mrb[52].mxu1 %v6257_v1 }
 0x303   : > { %3990 = vmatprep.mubr.bf16.mxu1 %v6275_v3 }
 0x30a   : > { %3991 = vmatmul.mubr.bf16.gmra.mrb[56].mxu1 %v6273_v62 }
 0x30b   : > { %4000 = vmatprep.mubr.bf16.mxu1 %v6285_v26  ;;  %v3617_v46 = vpop.f32.mrb[32].mxu1 }
 0x30c   : > { %v6599_v6 = vadd.f32 %v6519_v12, %v3617_v46  ;;  %v3619_v9 = vpop.f32.mrb[33].mxu1 }
 0x30d   : > { %v6602_v29 = vadd.f32 %v6523_v16, %v3619_v9  ;;  %v3621_v18 = vpop.f32.mrb[34].mxu1 }
 0x30e   : > { %v6605_v5 = vadd.f32 %v6527_v40, %v3621_v18  ;;  %v3623_v45 = vpop.f32.mrb[35].mxu1  ;;  %4228 = vst [vmem:[%s5555_s28 + $0x10] sm:$0xff] (!%p5041_p7), %v6599_v6 }
 0x30f   : > { %v6608_v1 = vadd.f32 %v6533_v28, %v3623_v45  ;;  %4229 = vst [vmem:[%s5555_s28 + $0x18] sm:$0xff] (!%p5041_p7), %v6602_v29 }
 0x310   : > { %4236 = vst [vmem:[%s5555_s28 + $0x50] sm:$0xff] (!%p5041_p7), %v6605_v5 }
 0x311   : > { %4237 = vst [vmem:[%s5555_s28 + $0x58] sm:$0xff] (!%p5041_p7), %v6608_v1 }
 0x312   : > { %4001 = vmatmul.mubr.bf16.gmra.mrb[60].mxu1 %v6290_v31 }
 0x313   : > { %v3627_v62 = vpop.f32.mrb[36].mxu1 }
 0x314   : > { %v6612_v3 = vadd.f32 %v6542_v44, %v3627_v62  ;;  %v3629_v26 = vpop.f32.mrb[37].mxu1 }
 0x315   : > { %v6615_v12 = vadd.f32 %v6546_v56, %v3629_v26  ;;  %v3631_v16 = vpop.f32.mrb[38].mxu1 }
 0x316   : > { %v6618_v20 = vadd.f32 %v6550_v39, %v3631_v16  ;;  %v3633_v40 = vpop.f32.mrb[39].mxu1  ;;  %4244 = vst [vmem:[%s5555_s28 + $0x90] sm:$0xff] (!%p5041_p7), %v6612_v3 }
 0x317   : > { %v6621_v51 = vadd.f32 %v6556_v55, %v3633_v40  ;;  %4245 = vst [vmem:[%s5555_s28 + $0x98] sm:$0xff] (!%p5041_p7), %v6615_v12 }
 0x318   : > { %4252 = vst [vmem:[%s5555_s28 + $0xd0] sm:$0xff] (!%p5041_p7), %v6618_v20 }
 0x319   : > { %4253 = vst [vmem:[%s5555_s28 + $0xd8] sm:$0xff] (!%p5041_p7), %v6621_v51 }
 0x31b   : > { %v3637_v28 = vpop.f32.mrb[40].mxu1 }
 0x31c   : > { %v6624_v58 = vadd.f32 %v6562_v47, %v3637_v28  ;;  %v3639_v31 = vpop.f32.mrb[41].mxu1 }
 0x31d   : > { %v6627_v44 = vadd.f32 %v6566_v13, %v3639_v31  ;;  %v3641_v23 = vpop.f32.mrb[42].mxu1 }
 0x31e   : > { %v6630_v56 = vadd.f32 %v6570_v17, %v3641_v23  ;;  %v3643_v25 = vpop.f32.mrb[43].mxu1  ;;  %4260 = vst [vmem:[%s5555_s28 + $0x110] sm:$0xff] (!%p5041_p7), %v6624_v58 }
 0x31f   : > { %v6633_v39 = vadd.f32 %v6576_v15, %v3643_v25  ;;  %4261 = vst [vmem:[%s5555_s28 + $0x118] sm:$0xff] (!%p5041_p7), %v6627_v44 }
 0x320   : > { %4268 = vst [vmem:[%s5555_s28 + $0x150] sm:$0xff] (!%p5041_p7), %v6630_v56 }
 0x321   : > { %4269 = vst [vmem:[%s5555_s28 + $0x158] sm:$0xff] (!%p5041_p7), %v6633_v39 }
 0x323   : > { %v3647_v33 = vpop.f32.mrb[44].mxu1 }
 0x324   : > { %v6636_v55 = vadd.f32 %v6582_v35, %v3647_v33  ;;  %v3649_v41 = vpop.f32.mrb[45].mxu1 }
 0x325   : > { %v6638_v30 = vadd.f32 %v3791_v37, %v3649_v41  ;;  %v3651_v47 = vpop.f32.mrb[46].mxu1 }
 0x326   : > { %v3652_v43 = vpop.f32.mrb[47].mxu1  ;;  %4276 = vst [vmem:[%s5555_s28 + $0x190] sm:$0x1] (!%p5041_p7), %v6636_v55 }
 0x327   : > { %4277 = vst [vmem:[%s5555_s28 + $0x198] sm:$0x1] (!%p5041_p7), %v6638_v30 }
 0x38d   : > { %v6640_v10 = vpop.f32.mrb[44].mxu0 }
 0x38e   : > { %v6642_v13 = vpop.f32.mrb[45].mxu0  ;;  %4232 = vst [vmem:[%s5555_s28 + $0x30] sm:$0xff] (!%p5041_p7), %v6640_v10 }
 0x38f   : > { %v6644_v48 = vpop.f32.mrb[46].mxu0  ;;  %4233 = vst [vmem:[%s5555_s28 + $0x38] sm:$0xff] (!%p5041_p7), %v6642_v13 }
 0x390   : > { %v6646_v17 = vpop.f32.mrb[47].mxu0  ;;  %4240 = vst [vmem:[%s5555_s28 + $0x70] sm:$0xff] (!%p5041_p7), %v6644_v48 }
 0x391   : > { %4241 = vst [vmem:[%s5555_s28 + $0x78] sm:$0xff] (!%p5041_p7), %v6646_v17 }
 0x395   : > { %v6648_v49 = vpop.f32.mrb[48].mxu0 }
 0x396   : > { %v6650_v15 = vpop.f32.mrb[49].mxu0  ;;  %4248 = vst [vmem:[%s5555_s28 + $0xb0] sm:$0xff] (!%p5041_p7), %v6648_v49 }
 0x397   : > { %v6652_v4 = vpop.f32.mrb[50].mxu0  ;;  %4249 = vst [vmem:[%s5555_s28 + $0xb8] sm:$0xff] (!%p5041_p7), %v6650_v15 }
 0x398   : > { %v6654_v35 = vpop.f32.mrb[51].mxu0  ;;  %4256 = vst [vmem:[%s5555_s28 + $0xf0] sm:$0xff] (!%p5041_p7), %v6652_v4 }
 0x399   : > { %4257 = vst [vmem:[%s5555_s28 + $0xf8] sm:$0xff] (!%p5041_p7), %v6654_v35 }
 0x39d   : > { %v6656_v37 = vpop.f32.mrb[52].mxu0 }
 0x39e   : > { %v6658_v22 = vpop.f32.mrb[53].mxu0  ;;  %4264 = vst [vmem:[%s5555_s28 + $0x130] sm:$0xff] (!%p5041_p7), %v6656_v37 }
 0x39f   : > { %v6660_v53 = vpop.f32.mrb[54].mxu0  ;;  %4265 = vst [vmem:[%s5555_s28 + $0x138] sm:$0xff] (!%p5041_p7), %v6658_v22 }
 0x3a0   : > { %v6662_v54 = vpop.f32.mrb[55].mxu0  ;;  %4272 = vst [vmem:[%s5555_s28 + $0x170] sm:$0xff] (!%p5041_p7), %v6660_v53 }
 0x3a1   : > { %4273 = vst [vmem:[%s5555_s28 + $0x178] sm:$0xff] (!%p5041_p7), %v6662_v54 }
 0x3a5   : > { %v6664_v32 = vpop.f32.mrb[56].mxu0 }
 0x3a6   : > { %7003 = vst [vmem:[#allocation2_spill] sm:$0xff] %v6664_v32  ;;  %v6666_v0 = vpop.f32.mrb[57].mxu0  ;;  %4280 = vst [vmem:[%s5555_s28 + $0x1b0] sm:$0x1] (!%p5041_p7), %v6664_v32 }
 0x3a7   : > { %7004 = vst [vmem:[#allocation3_spill] sm:$0xff] %v6666_v0  ;;  %v4219_v19 = vpop.f32.mrb[58].mxu0  ;;  %4281 = vst [vmem:[%s5555_s28 + $0x1b8] sm:$0x1] (!%p5041_p7), %v6666_v0 }
 0x3a8   : > { %v4220_v24 = vpop.f32.mrb[59].mxu0 }
 0x3cd   : > { %v6668_v59 = vpop.f32.mrb[48].mxu1 }
 0x3ce   : > { %v6670_v7 = vpop.f32.mrb[49].mxu1  ;;  %4230 = vst [vmem:[%s5555_s28 + $0x20] sm:$0xff] (!%p5041_p7), %v6668_v59 }
 0x3cf   : > { %v6672_v61 = vpop.f32.mrb[50].mxu1  ;;  %4231 = vst [vmem:[%s5555_s28 + $0x28] sm:$0xff] (!%p5041_p7), %v6670_v7 }
 0x3d0   : > { %v6674_v63 = vpop.f32.mrb[51].mxu1  ;;  %4238 = vst [vmem:[%s5555_s28 + $0x60] sm:$0xff] (!%p5041_p7), %v6672_v61 }
 0x3d1   : > { %4239 = vst [vmem:[%s5555_s28 + $0x68] sm:$0xff] (!%p5041_p7), %v6674_v63 }
 0x3d5   : > { %v6676_v46 = vpop.f32.mrb[52].mxu1 }
 0x3d6   : > { %v6678_v9 = vpop.f32.mrb[53].mxu1  ;;  %4246 = vst [vmem:[%s5555_s28 + $0xa0] sm:$0xff] (!%p5041_p7), %v6676_v46 }
 0x3d7   : > { %v6680_v18 = vpop.f32.mrb[54].mxu1  ;;  %4247 = vst [vmem:[%s5555_s28 + $0xa8] sm:$0xff] (!%p5041_p7), %v6678_v9 }
 0x3d8   : > { %v6682_v45 = vpop.f32.mrb[55].mxu1  ;;  %4254 = vst [vmem:[%s5555_s28 + $0xe0] sm:$0xff] (!%p5041_p7), %v6680_v18 }
 0x3d9   : > { %4255 = vst [vmem:[%s5555_s28 + $0xe8] sm:$0xff] (!%p5041_p7), %v6682_v45 }
 0x3dd   : > { %v6684_v62 = vpop.f32.mrb[56].mxu1 }
 0x3de   : > { %v6686_v26 = vpop.f32.mrb[57].mxu1  ;;  %4262 = vst [vmem:[%s5555_s28 + $0x120] sm:$0xff] (!%p5041_p7), %v6684_v62 }
 0x3df   : > { %v6688_v16 = vpop.f32.mrb[58].mxu1  ;;  %4263 = vst [vmem:[%s5555_s28 + $0x128] sm:$0xff] (!%p5041_p7), %v6686_v26 }
 0x3e0   : > { %v6690_v40 = vpop.f32.mrb[59].mxu1  ;;  %4270 = vst [vmem:[%s5555_s28 + $0x160] sm:$0xff] (!%p5041_p7), %v6688_v16 }
 0x3e1   : > { %4271 = vst [vmem:[%s5555_s28 + $0x168] sm:$0xff] (!%p5041_p7), %v6690_v40 }
 0x3e2   : > { %4225 = sbr.rel (%p5041_p7) target bundleno = 1001 (0x3e9), region = 36 }
 0x3e5   : > { %v6692_v28 = vpop.f32.mrb[60].mxu1 }
 0x3e6   : > { %7005 = vst [vmem:[#allocation4_spill] sm:$0xff] %v6692_v28  ;;  %v6694_v31 = vpop.f32.mrb[61].mxu1  ;;  %4278 = vst [vmem:[%s5555_s28 + $0x1a0] sm:$0x1] (!%p5041_p7), %v6692_v28 }
 0x3e7   : > { %7006 = vst [vmem:[#allocation5_spill] sm:$0xff] %v6694_v31  ;;  %v4006_v23 = vpop.f32.mrb[62].mxu1  ;;  %4279 = vst [vmem:[%s5555_s28 + $0x1a8] sm:$0x1] (!%p5041_p7), %v6694_v31 }
 0x3e8   : > { %v4007_v25 = vpop.f32.mrb[63].mxu1 }
 0x3e9 PF: > { %p5042_p8 = scmp.le.s32.totalorder %s5476_s12, 0 }
 0x3ea   : > { %v4286_v33 = vld [vmem:[%s5555_s28] sm:$0xff] (!%p5042_p8)  ;;  %v4287_v41 = vld [vmem:[%s5555_s28 + $0x8] sm:$0xff] (!%p5042_p8)  ;;  %v4288_v47 = vld [vmem:[%s5555_s28 + $0x10] sm:$0xff] (!%p5042_p8) }
 0x3eb   : > { %4285 = sbr.rel (%p5042_p8) target bundleno = 1034 (0x40a), region = 40  ;;  %v4342_v43 = vadd.f32 (!%p5042_p8), %v4286_v33, %v6517_v36  ;;  %v4343_v19 = vadd.f32 (!%p5042_p8), %v4287_v41, %v6521_v60  ;;  %v4344_v24 = vadd.f32 (!%p5042_p8), %v6599_v6, %v4288_v47  ;;  %v4289_v23 = vld [vmem:[%s5555_s28 + $0x18] sm:$0xff] (!%p5042_p8)  ;;  %v4290_v25 = vld [vmem:[%s5555_s28 + $0x20] sm:$0xff] (!%p5042_p8)  ;;  %v4291_v0 = vld [vmem:[%s5555_s28 + $0x28] sm:$0xff] (!%p5042_p8) }
 0x3ec   : > { %v4345_v32 = vadd.f32 (!%p5042_p8), %v6602_v29, %v4289_v23  ;;  %v4346_v31 = vadd.f32 (!%p5042_p8), %v4290_v25, %v6668_v59  ;;  %v4347_v28 = vadd.f32 (!%p5042_p8), %v4291_v0, %v6670_v7  ;;  %v4292_v36 = vld [vmem:[%s5555_s28 + $0x30] sm:$0xff] (!%p5042_p8)  ;;  %v4293_v33 = vld [vmem:[%s5555_s28 + $0x38] sm:$0xff] (!%p5042_p8)  ;;  %v4294_v60 = vld [vmem:[%s5555_s28 + $0x40] sm:$0xff] (!%p5042_p8) }
 0x3ed   : > { %4398 = vst [vmem:[%s5555_s28] sm:$0xff] (!%p5042_p8), %v4342_v43  ;;  %4399 = vst [vmem:[%s5555_s28 + $0x8] sm:$0xff] (!%p5042_p8), %v4343_v19  ;;  %v4348_v6 = vadd.f32 (!%p5042_p8), %v4292_v36, %v6640_v10  ;;  %v4349_v29 = vadd.f32 (!%p5042_p8), %v4293_v33, %v6642_v13  ;;  %v4350_v59 = vadd.f32 (!%p5042_p8), %v4294_v60, %v6525_v50  ;;  %v4295_v41 = vld [vmem:[%s5555_s28 + $0x48] sm:$0xff] (!%p5042_p8)  ;;  %v4296_v0 = vld [vmem:[%s5555_s28 + $0x50] sm:$0xff] (!%p5042_p8) }
 0x3ee   : > { %4400 = vst [vmem:[%s5555_s28 + $0x10] sm:$0xff] (!%p5042_p8), %v4344_v24  ;;  %v4297_v7 = vld [vmem:[%s5555_s28 + $0x58] sm:$0xff] (!%p5042_p8)  ;;  %4401 = vst [vmem:[%s5555_s28 + $0x18] sm:$0xff] (!%p5042_p8), %v4345_v32  ;;  %v4351_v47 = vadd.f32 (!%p5042_p8), %v4295_v41, %v6531_v52  ;;  %v4352_v10 = vadd.f32 (!%p5042_p8), %v6605_v5, %v4296_v0  ;;  %v4298_v43 = vld [vmem:[%s5555_s28 + $0x60] sm:$0xff] (!%p5042_p8) }
 0x3ef   : > { %4402 = vst [vmem:[%s5555_s28 + $0x20] sm:$0xff] (!%p5042_p8), %v4346_v31  ;;  %4403 = vst [vmem:[%s5555_s28 + $0x28] sm:$0xff] (!%p5042_p8), %v4347_v28  ;;  %v4353_v13 = vadd.f32 (!%p5042_p8), %v6608_v1, %v4297_v7  ;;  %v4299_v50 = vld [vmem:[%s5555_s28 + $0x68] sm:$0xff] (!%p5042_p8)  ;;  %v4300_v19 = vld [vmem:[%s5555_s28 + $0x70] sm:$0xff] (!%p5042_p8)  ;;  %v4354_v32 = vadd.f32 (!%p5042_p8), %v4298_v43, %v6672_v61 }
 0x3f0   : > { %4404 = vst [vmem:[%s5555_s28 + $0x30] sm:$0xff] (!%p5042_p8), %v4348_v6  ;;  %4405 = vst [vmem:[%s5555_s28 + $0x38] sm:$0xff] (!%p5042_p8), %v4349_v29  ;;  %v4355_v52 = vadd.f32 (!%p5042_p8), %v4299_v50, %v6674_v63  ;;  %v4356_v5 = vadd.f32 (!%p5042_p8), %v4300_v19, %v6644_v48  ;;  %v4301_v28 = vld [vmem:[%s5555_s28 + $0x78] sm:$0xff] (!%p5042_p8)  ;;  %v4302_v1 = vld [vmem:[%s5555_s28 + $0x80] sm:$0xff] (!%p5042_p8) }
 0x3f1   : > { %4406 = vst [vmem:[%s5555_s28 + $0x40] sm:$0xff] (!%p5042_p8), %v4350_v59  ;;  %v4303_v31 = vld [vmem:[%s5555_s28 + $0x88] sm:$0xff] (!%p5042_p8)  ;;  %4407 = vst [vmem:[%s5555_s28 + $0x48] sm:$0xff] (!%p5042_p8), %v4351_v47  ;;  %v4357_v24 = vadd.f32 (!%p5042_p8), %v4301_v28, %v6646_v17  ;;  %v4358_v61 = vadd.f32 (!%p5042_p8), %v4302_v1, %v6540_v2  ;;  %v4304_v23 = vld [vmem:[%s5555_s28 + $0x90] sm:$0xff] (!%p5042_p8) }
 0x3f2   : > { %4408 = vst [vmem:[%s5555_s28 + $0x50] sm:$0xff] %v4352_v10  ;;  %4409 = vst [vmem:[%s5555_s28 + $0x58] sm:$0xff] %v4353_v13  ;;  %v4359_v63 = vadd.f32 %v4303_v31, %v6544_v38  ;;  %v4305_v48 = vld [vmem:[%s5555_s28 + $0x98] sm:$0xff]  ;;  %v4306_v25 = vld [vmem:[%s5555_s28 + $0xa0] sm:$0xff]  ;;  %v4360_v36 = vadd.f32 %v6612_v3, %v4304_v23 }
 0x3f3   : > { %4410 = vst [vmem:[%s5555_s28 + $0x60] sm:$0xff] %v4354_v32  ;;  %4411 = vst [vmem:[%s5555_s28 + $0x68] sm:$0xff] %v4355_v52  ;;  %v4361_v17 = vadd.f32 %v6615_v12, %v4305_v48  ;;  %v4362_v2 = vadd.f32 %v4306_v25, %v6676_v46  ;;  %v4307_v33 = vld [vmem:[%s5555_s28 + $0xa8] sm:$0xff]  ;;  %v4308_v38 = vld [vmem:[%s5555_s28 + $0xb0] sm:$0xff] }
 0x3f4   : > { %4412 = vst [vmem:[%s5555_s28 + $0x70] sm:$0xff] %v4356_v5  ;;  %v4309_v60 = vld [vmem:[%s5555_s28 + $0xb8] sm:$0xff]  ;;  %4413 = vst [vmem:[%s5555_s28 + $0x78] sm:$0xff] %v4357_v24  ;;  %v4363_v6 = vadd.f32 %v4307_v33, %v6678_v9  ;;  %v4364_v3 = vadd.f32 %v4308_v38, %v6648_v49  ;;  %v4310_v29 = vld [vmem:[%s5555_s28 + $0xc0] sm:$0xff] }
 0x3f5   : > { %4414 = vst [vmem:[%s5555_s28 + $0x80] sm:$0xff] %v4358_v61  ;;  %4415 = vst [vmem:[%s5555_s28 + $0x88] sm:$0xff] %v4359_v63  ;;  %v4365_v12 = vadd.f32 %v4309_v60, %v6650_v15  ;;  %v4311_v46 = vld [vmem:[%s5555_s28 + $0xc8] sm:$0xff]  ;;  %v4312_v59 = vld [vmem:[%s5555_s28 + $0xd0] sm:$0xff]  ;;  %v4366_v41 = vadd.f32 %v4310_v29, %v6548_v57 }
 0x3f6   : > { %4416 = vst [vmem:[%s5555_s28 + $0x90] sm:$0xff] %v4360_v36  ;;  %4417 = vst [vmem:[%s5555_s28 + $0x98] sm:$0xff] %v4361_v17  ;;  %v4367_v9 = vadd.f32 %v4311_v46, %v6554_v42  ;;  %v4368_v49 = vadd.f32 %v6618_v20, %v4312_v59  ;;  %v4313_v0 = vld [vmem:[%s5555_s28 + $0xd8] sm:$0xff]  ;;  %v4314_v15 = vld [vmem:[%s5555_s28 + $0xe0] sm:$0xff] }
 0x3f7   : > { %4418 = vst [vmem:[%s5555_s28 + $0xa0] sm:$0xff] %v4362_v2  ;;  %v4315_v7 = vld [vmem:[%s5555_s28 + $0xe8] sm:$0xff]  ;;  %4419 = vst [vmem:[%s5555_s28 + $0xa8] sm:$0xff] %v4363_v6  ;;  %v4369_v47 = vadd.f32 %v6621_v51, %v4313_v0  ;;  %v4370_v57 = vadd.f32 %v4314_v15, %v6680_v18  ;;  %v4316_v10 = vld [vmem:[%s5555_s28 + $0xf0] sm:$0xff] }
 0x3f8   : > { %4420 = vst [vmem:[%s5555_s28 + $0xb0] sm:$0xff] %v4364_v3  ;;  %4421 = vst [vmem:[%s5555_s28 + $0xb8] sm:$0xff] %v4365_v12  ;;  %v4371_v42 = vadd.f32 %v4315_v7, %v6682_v45  ;;  %v4317_v20 = vld [vmem:[%s5555_s28 + $0xf8] sm:$0xff]  ;;  %v4318_v13 = vld [vmem:[%s5555_s28 + $0x100] sm:$0xff]  ;;  %v4372_v43 = vadd.f32 %v4316_v10, %v6652_v4 }
 0x3f9   : > { %4422 = vst [vmem:[%s5555_s28 + $0xc0] sm:$0xff] %v4366_v41  ;;  %4423 = vst [vmem:[%s5555_s28 + $0xc8] sm:$0xff] %v4367_v9  ;;  %v4373_v51 = vadd.f32 %v4317_v20, %v6654_v35  ;;  %v4374_v18 = vadd.f32 %v4318_v13, %v6560_v8  ;;  %v4319_v50 = vld [vmem:[%s5555_s28 + $0x108] sm:$0xff]  ;;  %v4320_v45 = vld [vmem:[%s5555_s28 + $0x110] sm:$0xff] }
 0x3fa   : > { %4424 = vst [vmem:[%s5555_s28 + $0xd0] sm:$0xff] %v4368_v49  ;;  %v4321_v19 = vld [vmem:[%s5555_s28 + $0x118] sm:$0xff]  ;;  %4425 = vst [vmem:[%s5555_s28 + $0xd8] sm:$0xff] %v4369_v47  ;;  %v4375_v32 = vadd.f32 %v4319_v50, %v6564_v11  ;;  %v4376_v4 = vadd.f32 %v6624_v58, %v4320_v45  ;;  %v4322_v52 = vld [vmem:[%s5555_s28 + $0x120] sm:$0xff] }
 0x3fb   : > { %4426 = vst [vmem:[%s5555_s28 + $0xe0] sm:$0xff] %v4370_v57  ;;  %4427 = vst [vmem:[%s5555_s28 + $0xe8] sm:$0xff] %v4371_v42  ;;  %v4377_v35 = vadd.f32 %v6627_v44, %v4321_v19  ;;  %v4323_v8 = vld [vmem:[%s5555_s28 + $0x128] sm:$0xff]  ;;  %v4324_v5 = vld [vmem:[%s5555_s28 + $0x130] sm:$0xff]  ;;  %v4378_v28 = vadd.f32 %v4322_v52, %v6684_v62 }
 0x3fc   : > { %4428 = vst [vmem:[%s5555_s28 + $0xf0] sm:$0xff] %v4372_v43  ;;  %4429 = vst [vmem:[%s5555_s28 + $0xf8] sm:$0xff] %v4373_v51  ;;  %v4379_v11 = vadd.f32 %v4323_v8, %v6686_v26  ;;  %v4380_v58 = vadd.f32 %v4324_v5, %v6656_v37  ;;  %v4325_v1 = vld [vmem:[%s5555_s28 + $0x138] sm:$0xff]  ;;  %v4326_v44 = vld [vmem:[%s5555_s28 + $0x140] sm:$0xff] }
 0x3fd   : > { %4430 = vst [vmem:[%s5555_s28 + $0x100] sm:$0xff] %v4374_v18  ;;  %v4327_v31 = vld [vmem:[%s5555_s28 + $0x148] sm:$0xff]  ;;  %4431 = vst [vmem:[%s5555_s28 + $0x108] sm:$0xff] %v4375_v32  ;;  %v4381_v24 = vadd.f32 %v4325_v1, %v6658_v22  ;;  %v4382_v62 = vadd.f32 %v4326_v44, %v6568_v14  ;;  %v4328_v61 = vld [vmem:[%s5555_s28 + $0x150] sm:$0xff] }
 0x3fe   : > { %4432 = vst [vmem:[%s5555_s28 + $0x110] sm:$0xff] %v4376_v4  ;;  %4433 = vst [vmem:[%s5555_s28 + $0x118] sm:$0xff] %v4377_v35  ;;  %v4383_v26 = vadd.f32 %v4327_v31, %v6574_v21  ;;  %v4329_v37 = vld [vmem:[%s5555_s28 + $0x158] sm:$0xff]  ;;  %v4330_v63 = vld [vmem:[%s5555_s28 + $0x160] sm:$0xff]  ;;  %v4384_v23 = vadd.f32 %v6630_v56, %v4328_v61 }
 0x3ff   : > { %4434 = vst [vmem:[%s5555_s28 + $0x120] sm:$0xff] %v4378_v28  ;;  %4435 = vst [vmem:[%s5555_s28 + $0x128] sm:$0xff] %v4379_v11  ;;  %v4385_v22 = vadd.f32 %v6633_v39, %v4329_v37  ;;  %v4386_v14 = vadd.f32 %v4330_v63, %v6688_v16  ;;  %v4331_v48 = vld [vmem:[%s5555_s28 + $0x168] sm:$0xff]  ;;  %v4332_v21 = vld [vmem:[%s5555_s28 + $0x170] sm:$0xff] }
 0x400   : > { %4436 = vst [vmem:[%s5555_s28 + $0x130] sm:$0xff] %v4380_v58  ;;  %v4333_v25 = vld [vmem:[%s5555_s28 + $0x178] sm:$0xff]  ;;  %4437 = vst [vmem:[%s5555_s28 + $0x138] sm:$0xff] %v4381_v24  ;;  %v4387_v36 = vadd.f32 %v4331_v48, %v6690_v40  ;;  %v4388_v56 = vadd.f32 %v4332_v21, %v6660_v53  ;;  %v4334_v17 = vld [vmem:[%s5555_s28 + $0x180] sm:$0x1] }
 0x401   : > { %4438 = vst [vmem:[%s5555_s28 + $0x140] sm:$0xff] %v4382_v62  ;;  %4439 = vst [vmem:[%s5555_s28 + $0x148] sm:$0xff] %v4383_v26  ;;  %v4389_v39 = vadd.f32 %v4333_v25, %v6662_v54  ;;  %v4335_v16 = vld [vmem:[%s5555_s28 + $0x188] sm:$0x1]  ;;  %v4336_v2 = vld [vmem:[%s5555_s28 + $0x190] sm:$0x1]  ;;  %v4390_v33 = vadd.f32 %v4334_v17, %v6580_v27 }
 0x402   : > { %4440 = vst [vmem:[%s5555_s28 + $0x150] sm:$0xff] %v4384_v23  ;;  %4441 = vst [vmem:[%s5555_s28 + $0x158] sm:$0xff] %v4385_v22  ;;  %v4391_v40 = vadd.f32 %v4335_v16, %v6584_v34  ;;  %v4392_v53 = vadd.f32 %v6636_v55, %v4336_v2  ;;  %v4337_v38 = vld [vmem:[%s5555_s28 + $0x198] sm:$0x1]  ;;  %v4338_v54 = vld [vmem:[%s5555_s28 + $0x1a0] sm:$0x1] }
 0x403   : > { %4442 = vst [vmem:[%s5555_s28 + $0x160] sm:$0xff] %v4386_v14  ;;  %v4339_v60 = vld [vmem:[%s5555_s28 + $0x1a8] sm:$0x1]  ;;  %4443 = vst [vmem:[%s5555_s28 + $0x168] sm:$0xff] %v4387_v36  ;;  %v4393_v6 = vadd.f32 %v6638_v30, %v4337_v38  ;;  %v7007_v3 = vld [vmem:[#allocation4_spill] sm:$0xff] }
 0x404   : > { %4444 = vst [vmem:[%s5555_s28 + $0x170] sm:$0xff] %v4388_v56  ;;  %4445 = vst [vmem:[%s5555_s28 + $0x178] sm:$0xff] %v4389_v39  ;;  %v4394_v27 = vadd.f32 %v4338_v54, %v7007_v3  ;;  %v7008_v12 = vld [vmem:[#allocation5_spill] sm:$0xff]  ;;  %v4340_v34 = vld [vmem:[%s5555_s28 + $0x1b0] sm:$0x1] }
 0x405   : > { %v4395_v29 = vadd.f32 %v4339_v60, %v7008_v12  ;;  %v4341_v46 = vld [vmem:[%s5555_s28 + $0x1b8] sm:$0x1]  ;;  %4446 = vst [vmem:[%s5555_s28 + $0x180] sm:$0x1] %v4390_v33  ;;  %4447 = vst [vmem:[%s5555_s28 + $0x188] sm:$0x1] %v4391_v40 }
 0x406   : > { %4448 = vst [vmem:[%s5555_s28 + $0x190] sm:$0x1] %v4392_v53  ;;  %v7009_v55 = vld [vmem:[#allocation2_spill] sm:$0xff]  ;;  %v7010_v41 = vld [vmem:[#allocation3_spill] sm:$0xff]  ;;  %4449 = vst [vmem:[%s5555_s28 + $0x198] sm:$0x1] %v4393_v6 }
 0x407   : > { %v4396_v59 = vadd.f32 %v4340_v34, %v7009_v55  ;;  %v4397_v9 = vadd.f32 %v4341_v46, %v7010_v41  ;;  %4450 = vst [vmem:[%s5555_s28 + $0x1a0] sm:$0x1] %v4394_v27  ;;  %4451 = vst [vmem:[%s5555_s28 + $0x1a8] sm:$0x1] %v4395_v29 }
 0x409   : > { %4452 = vst [vmem:[%s5555_s28 + $0x1b0] sm:$0x1] %v4396_v59  ;;  %4453 = vst [vmem:[%s5555_s28 + $0x1b8] sm:$0x1] %v4397_v9 }
 0x40a PF: > { %s13_s16 = sadd.s32 1, %s5492_s16   ;;  %s7011_s12 = smov %s5484_s14 }
 0x40b   : > { %p10_p9 = scmp.ge.s32.totalorder %s13_s16, 8   ;;  %s7012_s13 = smov %s5488_s15 }
 0x40c   : > { %s7013_s14 = smov %s7016_s17  ;;  %s7014_s15 = smov %s7020_s18 }
 0x40d   :  { %12 = sbr.rel (!%p10_p9) target bundleno = 3 (0x3), region = 71 }

</bundles_post_ra>
